<compile_context>
chip_gen: v7x
topology: tpu7x:2x2x1
jax: 0.10.0
libtpu: 0.0.40
codegen_flags: <defaults>
</compile_context>

<pallas_src>
import functools

import jax
import jax.numpy as jnp
from jax.experimental import pallas as pl
from jax.experimental.pallas import tpu as pltpu


ROW_TILE = 512                    # node-row tile (multiple of 128 for v5e too)
K_TILE_MAX = 2048                 # adj contraction tile upper bound
LANE = 128                        # feature-dim padding granularity
BN_EPS = 1e-5
VMEM_LIMIT = 48 * 1024 * 1024     # conservative under v7x's 64 MiB physical
XW_RESIDENT_MAX_BYTES = 16 * 1024 * 1024   # cap for fully-resident xw copy


def _round_up(x, m):
    return (x + m - 1) // m * m


def _pick_k_tile(n_pad):
    for tk in (K_TILE_MAX, 1024, 512, 256, 128):
        if tk <= n_pad and n_pad % tk == 0:
            return tk
    return n_pad


# --------------------------------------------------------------------------
# Phase 1: per-layer feature transform (one fused matmul per row tile)
#   [xw | res_pre] = x @ [W_rel | W_res] + [c_rel | c_res]
#   xw  -> bf16 (consumed by the adjacency matmul; NO b_rel here)
#   res -> relu(res_pre) in bf16
# The previous layer's BatchNorm affine is folded into W_*/c_* by the caller.
# --------------------------------------------------------------------------
def _transform_kernel(x_ref, w_ref, b_ref, xw_ref, res_ref, *, f_out_pad):
    xb = jnp.dot(x_ref[...], w_ref[...],
                 preferred_element_type=jnp.float32) + b_ref[...]
    xw_ref[...] = xb[:, :f_out_pad].astype(xw_ref.dtype)
    res_ref[...] = jnp.maximum(xb[:, f_out_pad:], 0.0).astype(res_ref.dtype)


def feature_transform(x_bf16, w_cat_bf16, b_cat):
    n_pad, f_in_pad = x_bf16.shape
    two_f = w_cat_bf16.shape[1]
    f_out_pad = two_f // 2
    tm = ROW_TILE
    grid_m = n_pad // tm
    kernel = functools.partial(_transform_kernel, f_out_pad=f_out_pad)
    return pl.pallas_call(
        kernel,
        out_shape=(jax.ShapeDtypeStruct((n_pad, f_out_pad), jnp.bfloat16),
                   jax.ShapeDtypeStruct((n_pad, f_out_pad), jnp.bfloat16)),
        grid_spec=pltpu.PrefetchScalarGridSpec(
            num_scalar_prefetch=0,
            grid=(grid_m,),
            in_specs=[
                pl.BlockSpec((tm, f_in_pad), lambda i: (i, 0)),
                pl.BlockSpec((f_in_pad, two_f), lambda i: (0, 0)),
                pl.BlockSpec((1, two_f), lambda i: (0, 0)),
            ],
            out_specs=[
                pl.BlockSpec((tm, f_out_pad), lambda i: (i, 0)),
                pl.BlockSpec((tm, f_out_pad), lambda i: (i, 0)),
            ]),
        compiler_params=pltpu.CompilerParams(
            dimension_semantics=("parallel",),
            vmem_limit_bytes=VMEM_LIMIT),
    )(x_bf16, w_cat_bf16, b_cat)


# --------------------------------------------------------------------------
# Phase 2: tiled adjacency matmul, finalize = (+b_rel, ReLU, +res, zero the
#          padded rows) plus per-row-tile partial BatchNorm statistics.
#   grid = (row tiles [parallel], adj column tiles [arbitrary reduction])
#   adj arrives as int8 and is widened to bf16 in-kernel (VPU, hides under DMA)
# --------------------------------------------------------------------------
def _aggregate_kernel(adj_ref, xw_ref, res_ref, b_rel_ref,
                      y_ref, sum_ref, sq_ref, acc_ref,
                      *, n_actual, row_tile, k_tile, xw_resident):
    # Grid queries hoisted to the main body: pl.program_id/num_programs must
    # not appear inside a pl.when branch (no lowering rule inside cond jaxprs).
    i = pl.program_id(0)
    k = pl.program_id(1)
    last_k = pl.num_programs(1) - 1

    @pl.when(k == 0)
    def _():
        acc_ref[...] = jnp.zeros_like(acc_ref)

    adj = adj_ref[...].astype(jnp.bfloat16)            # int8 HBM -> bf16 MXU
    if xw_resident:
        xw = xw_ref[pl.ds(k * k_tile, k_tile), :]       # slice resident copy
    else:
        xw = xw_ref[...]                                # streamed (tk, F) tile
    acc_ref[...] += jnp.dot(adj, xw, preferred_element_type=jnp.float32)

    @pl.when(k == last_k)
    def _():
        # b_rel applied once to the aggregated message (PyG GraphConv).
        y = (jnp.maximum(acc_ref[...] + b_rel_ref[...], 0.0)
             + res_ref[...].astype(jnp.float32))
        rows = jax.lax.broadcasted_iota(jnp.int32, y.shape, 0) + i * row_tile
        y = jnp.where(rows < n_actual, y, 0.0)          # zero padded node rows
        y_ref[...] = y.astype(y_ref.dtype)
        sum_ref[...] = jnp.sum(y, axis=0, keepdims=True)
        sq_ref[...] = jnp.sum(y * y, axis=0, keepdims=True)


def aggregate(adj_i8, xw_bf16, res_bf16, b_rel, n_actual, out_dtype):
    n_pad = adj_i8.shape[0]
    f_out_pad = xw_bf16.shape[1]
    tm = ROW_TILE
    tk = _pick_k_tile(n_pad)
    grid_m, grid_k = n_pad // tm, n_pad // tk

    xw_resident = (n_pad * f_out_pad * 2) <= XW_RESIDENT_MAX_BYTES
    if xw_resident:
        # Full xw kept in VMEM (constant block index -> fetched once, also
        # avoids re-streaming per TensorCore on v7x dual-TC sharding).
        xw_spec = pl.BlockSpec((n_pad, f_out_pad), lambda i, k: (0, 0))
    else:
        xw_spec = pl.BlockSpec((tk, f_out_pad), lambda i, k: (k, 0))

    kernel = functools.partial(_aggregate_kernel, n_actual=n_actual,
                               row_tile=tm, k_tile=tk, xw_resident=xw_resident)
    return pl.pallas_call(
        kernel,
        out_shape=(jax.ShapeDtypeStruct((n_pad, f_out_pad), out_dtype),
                   jax.ShapeDtypeStruct((grid_m, f_out_pad), jnp.float32),
                   jax.ShapeDtypeStruct((grid_m, f_out_pad), jnp.float32)),
        grid_spec=pltpu.PrefetchScalarGridSpec(
            num_scalar_prefetch=0,
            grid=(grid_m, grid_k),
            in_specs=[
                pl.BlockSpec((tm, tk), lambda i, k: (i, k)),            # adj int8
                xw_spec,                                                # xw bf16
                pl.BlockSpec((tm, f_out_pad), lambda i, k: (i, 0)),     # res bf16
                pl.BlockSpec((1, f_out_pad), lambda i, k: (0, 0)),      # b_rel
            ],
            out_specs=[
                pl.BlockSpec((tm, f_out_pad), lambda i, k: (i, 0)),     # y (pre-BN)
                pl.BlockSpec((1, f_out_pad), lambda i, k: (i, 0)),      # partial sum
                pl.BlockSpec((1, f_out_pad), lambda i, k: (i, 0)),      # partial sumsq
            ],
            scratch_shapes=[pltpu.VMEM((tm, f_out_pad), jnp.float32)]),
        compiler_params=pltpu.CompilerParams(
            dimension_semantics=("parallel", "arbitrary"),
            vmem_limit_bytes=VMEM_LIMIT),
    )(adj_i8, xw_bf16, res_bf16, b_rel)


# --------------------------------------------------------------------------
# Phase 3 (final layer only): BatchNorm normalize as a single FMA with
# precomputed scale/shift.  Hidden layers fold this into the next layer's
# weights instead.
# --------------------------------------------------------------------------
def _bn_apply_kernel(y_ref, scale_ref, shift_ref, o_ref):
    o_ref[...] = (y_ref[...].astype(jnp.float32) * scale_ref[...]
                  + shift_ref[...]).astype(o_ref.dtype)


def batchnorm_apply(y, scale, shift):
    n_pad, f_out_pad = y.shape
    tm = ROW_TILE
    grid_m = n_pad // tm
    return pl.pallas_call(
        _bn_apply_kernel,
        out_shape=jax.ShapeDtypeStruct((n_pad, f_out_pad), jnp.float32),
        grid_spec=pltpu.PrefetchScalarGridSpec(
            num_scalar_prefetch=0,
            grid=(grid_m,),
            in_specs=[
                pl.BlockSpec((tm, f_out_pad), lambda i: (i, 0)),
                pl.BlockSpec((1, f_out_pad), lambda i: (0, 0)),
                pl.BlockSpec((1, f_out_pad), lambda i: (0, 0)),
            ],
            out_specs=pl.BlockSpec((tm, f_out_pad), lambda i: (i, 0))),
        compiler_params=pltpu.CompilerParams(
            dimension_semantics=("parallel",),
            vmem_limit_bytes=VMEM_LIMIT),
    )(y, scale, shift)


# --------------------------------------------------------------------------
# Layer / stack wrappers
# --------------------------------------------------------------------------
def _bn_scale_shift(psum, psq, gamma, beta, n_actual):
    """Cross-tile reduction of partial stats -> BN affine (scale, shift)."""
    n_f = jnp.float32(n_actual)
    total = jnp.sum(psum, axis=0, keepdims=True)
    total_sq = jnp.sum(psq, axis=0, keepdims=True)
    mean = total / n_f
    var = jnp.maximum(total_sq / n_f - mean * mean, 0.0)   # biased (training)
    scale = gamma * jax.lax.rsqrt(var + BN_EPS)
    shift = beta - mean * scale
    return scale, shift


def init_gcn_params(key, in_feats, hidden_feats):
    """Torch-Linear-style init, stored pre-padded to 128-lane feature dims."""
    def pad2(a, shape):
        return jnp.zeros(shape, jnp.float32).at[:a.shape[0], :a.shape[1]].set(a)

    params = []
    f_in = in_feats
    for f_out in hidden_feats:
        key, k1, k2, k3, k4 = jax.random.split(key, 5)
        f_in_pad = _round_up(f_in, LANE)
        f_out_pad = _round_up(f_out, LANE)
        bound = 1.0 / float(f_in) ** 0.5
        layer = dict(
            w_rel=pad2(jax.random.uniform(k1, (f_in, f_out), jnp.float32, -bound, bound),
                       (f_in_pad, f_out_pad)),
            b_rel=pad2(jax.random.uniform(k2, (1, f_out), jnp.float32, -bound, bound),
                       (1, f_out_pad)),
            w_res=pad2(jax.random.uniform(k3, (f_in, f_out), jnp.float32, -bound, bound),
                       (f_in_pad, f_out_pad)),
            b_res=pad2(jax.random.uniform(k4, (1, f_out), jnp.float32, -bound, bound),
                       (1, f_out_pad)),
            gamma=pad2(jnp.ones((1, f_out), jnp.float32), (1, f_out_pad)),
            beta=jnp.zeros((1, f_out_pad), jnp.float32),
        )
        params.append(layer)
        f_in = f_out
    return params


def edge_index_to_dense_adj_int8(edge_index, num_nodes_padded):
    # adj[dst, src] = number of edges src -> dst (PyG source_to_target flow).
    # Built directly in int8 (no f32 materialize + cast pass).
    # TODO(synk): edge multiplicities > 127 would overflow int8.
    src = edge_index[0]
    dst = edge_index[1]
    adj = jnp.zeros((num_nodes_padded, num_nodes_padded), jnp.int8)
    return adj.at[dst, src].add(jnp.int8(1))


@functools.partial(jax.jit, static_argnames=("out_feats",))
def gcn_forward(feats, edge_index, params, *, out_feats):
    num_nodes, in_feats = feats.shape
    n_pad = _round_up(num_nodes, ROW_TILE)
    f_in_pad = _round_up(in_feats, LANE)

    x = jnp.zeros((n_pad, f_in_pad), jnp.float32)
    x = x.at[:num_nodes, :in_feats].set(feats).astype(jnp.bfloat16)

    adj = edge_index_to_dense_adj_int8(edge_index, n_pad)

    y = None
    scale = shift = None
    n_layers = len(params)
    for idx, layer in enumerate(params):
        is_last = idx == n_layers - 1
        if scale is None:
            # First layer: input is raw features, no preceding BN to fold.
            w_rel_eff, w_res_eff = layer["w_rel"], layer["w_res"]
            c_rel = jnp.zeros_like(layer["b_rel"])
            c_res = layer["b_res"]
        else:
            # Fold previous layer's BN affine: z = y*scale + shift
            #   z @ W = y @ (diag(scale) @ W) + shift @ W
            s_col = scale[0][:, None]                        # (f_in_pad, 1)
            w_rel_eff = s_col * layer["w_rel"]
            w_res_eff = s_col * layer["w_res"]
            c_rel = shift @ layer["w_rel"]                   # per-node, pre-aggr
            c_res = layer["b_res"] + shift @ layer["w_res"]
        w_cat = jnp.concatenate([w_rel_eff, w_res_eff], axis=1).astype(jnp.bfloat16)
        b_cat = jnp.concatenate([c_rel, c_res], axis=1)

        xw, res = feature_transform(x, w_cat, b_cat)
        y, psum, psq = aggregate(
            adj, xw, res, layer["b_rel"], num_nodes,
            jnp.float32 if is_last else jnp.bfloat16)
        scale, shift = _bn_scale_shift(psum, psq, layer["gamma"], layer["beta"],
                                       num_nodes)
        x = y   # next layer consumes the pre-BN y; BN folded into its weights

    out = batchnorm_apply(y, scale, shift)   # explicit BN only for last layer
    return out[:num_nodes, :out_feats]


if __name__ == "__main__":
    key = jax.random.PRNGKey(0)

    num_nodes = 16
    in_feats = 8
    hidden_feats = [32, 32]
    num_edges = 40

    k_feat, k_src, k_dst, k_param = jax.random.split(key, 4)
    feats = jax.random.normal(k_feat, (num_nodes, in_feats), jnp.float32)
    src = jax.random.randint(k_src, (num_edges,), 0, num_nodes, jnp.int32)
    dst = jax.random.randint(k_dst, (num_edges,), 0, num_nodes, jnp.int32)
    edge_index = jnp.stack([src, dst], axis=0)  # [2, E]

    params = init_gcn_params(k_param, in_feats, hidden_feats)

    out = gcn_forward(feats, edge_index, params, out_feats=hidden_feats[-1])
    jax.block_until_ready(out)
    assert out.shape == (num_nodes, hidden_feats[-1])
    assert bool(jnp.all(jnp.isfinite(out)))
    print("KERNEL_OK")
</pallas_src>

<mosaic_0001>
module attributes {stable_mosaic.version = 11 : i64} {
  func.func @_transform_kernel(%arg0: i32, %arg1: memref<512x128xbf16, #tpu.memory_space<vmem>>, %arg2: memref<128x256xbf16, #tpu.memory_space<vmem>>, %arg3: memref<1x256xf32, #tpu.memory_space<vmem>>, %arg4: memref<512x128xbf16, #tpu.memory_space<vmem>>, %arg5: memref<512x128xbf16, #tpu.memory_space<vmem>>) attributes {dimension_semantics = [#tpu.dimension_semantics<parallel>], iteration_bounds = array<i64: 1>, scalar_prefetch = 0 : i64, scratch_operands = 0 : i64, tpu.core_type = #tpu.core_type<tc>, window_params = [{transform_indices = @transform_0, window_bounds = array<i64: 512, 128>}, {pipeline_mode = #tpu.pipeline_mode<synchronous>, transform_indices = @transform_1, window_bounds = array<i64: 128, 256>}, {pipeline_mode = #tpu.pipeline_mode<synchronous>, transform_indices = @transform_2, window_bounds = array<i64: 1, 256>}, {transform_indices = @transform_3, window_bounds = array<i64: 512, 128>}, {transform_indices = @transform_4, window_bounds = array<i64: 512, 128>}]} {
    %c0 = arith.constant 0 : index
    %c0_0 = arith.constant 0 : index
    %0 = vector.load %arg1[%c0, %c0_0] : memref<512x128xbf16, #tpu.memory_space<vmem>>, vector<512x128xbf16>
    %c0_1 = arith.constant 0 : index
    %c0_2 = arith.constant 0 : index
    %1 = vector.load %arg2[%c0_1, %c0_2] : memref<128x256xbf16, #tpu.memory_space<vmem>>, vector<128x256xbf16>
    %cst = arith.constant dense<0.000000e+00> : vector<512x256xf32>
    %2 = tpu.matmul %0, %1, %cst {dimension_numbers = #tpu.dot_dimension_numbers<[1], [0], [0], [1], [0, 0, 1, 1], [], []>} : vector<512x128xbf16>, vector<128x256xbf16>, vector<512x256xf32> -> vector<512x256xf32>
    %c0_3 = arith.constant 0 : index
    %c0_4 = arith.constant 0 : index
    %3 = vector.load %arg3[%c0_3, %c0_4] : memref<1x256xf32, #tpu.memory_space<vmem>>, vector<1x256xf32>
    %4 = vector.broadcast %3 : vector<1x256xf32> to vector<512x256xf32>
    %5 = arith.addf %2, %4 : vector<512x256xf32>
    %6 = vector.extract_strided_slice %5 {offsets = [0, 0], sizes = [512, 128], strides = [1, 1]} : vector<512x256xf32> to vector<512x128xf32>
    %7 = arith.truncf %6 : vector<512x128xf32> to vector<512x128xbf16>
    %c0_5 = arith.constant 0 : index
    %c0_6 = arith.constant 0 : index
    %8 = vector.load %arg4[%c0_5, %c0_6] : memref<512x128xbf16, #tpu.memory_space<vmem>>, vector<512x128xbf16>
    tpu.vector_store %arg4[%c0_5, %c0_6], %7 {strides = array<i32>} : memref<512x128xbf16, #tpu.memory_space<vmem>>, vector<512x128xbf16>,
    %9 = vector.extract_strided_slice %5 {offsets = [0, 128], sizes = [512, 128], strides = [1, 1]} : vector<512x256xf32> to vector<512x128xf32>
    %cst_7 = arith.constant 0.000000e+00 : f32
    %10 = vector.broadcast %cst_7 : f32 to vector<512x128xf32>
    %11 = arith.maximumf %9, %10 : vector<512x128xf32>
    %12 = arith.truncf %11 : vector<512x128xf32> to vector<512x128xbf16>
    %c0_8 = arith.constant 0 : index
    %c0_9 = arith.constant 0 : index
    %13 = vector.load %arg5[%c0_8, %c0_9] : memref<512x128xbf16, #tpu.memory_space<vmem>>, vector<512x128xbf16>
    tpu.vector_store %arg5[%c0_8, %c0_9], %12 {strides = array<i32>} : memref<512x128xbf16, #tpu.memory_space<vmem>>, vector<512x128xbf16>,
    return
  }
  func.func @transform_0(%arg0: i32) -> (i32, i32) {
    %c0_i32 = arith.constant 0 : i32
    %c0_i32_0 = arith.constant 0 : i32
    return %arg0, %c0_i32 : i32, i32
  }
  func.func @transform_1(%arg0: i32) -> (i32, i32) {
    %c0_i32 = arith.constant 0 : i32
    %c0_i32_0 = arith.constant 0 : i32
    %c0_i32_1 = arith.constant 0 : i32
    return %c0_i32, %c0_i32_0 : i32, i32
  }
  func.func @transform_2(%arg0: i32) -> (i32, i32) {
    %c0_i32 = arith.constant 0 : i32
    %c0_i32_0 = arith.constant 0 : i32
    %c0_i32_1 = arith.constant 0 : i32
    return %c0_i32, %c0_i32_0 : i32, i32
  }
  func.func @transform_3(%arg0: i32) -> (i32, i32) {
    %c0_i32 = arith.constant 0 : i32
    %c0_i32_0 = arith.constant 0 : i32
    return %arg0, %c0_i32 : i32, i32
  }
  func.func @transform_4(%arg0: i32) -> (i32, i32) {
    %c0_i32 = arith.constant 0 : i32
    %c0_i32_0 = arith.constant 0 : i32
    return %arg0, %c0_i32 : i32, i32
  }
}

module attributes {stable_mosaic.version = 11 : i64} {
  func.func @_aggregate_kernel(%arg0: i32, %arg1: i32, %arg2: memref<512x512xi8, #tpu.memory_space<vmem>>, %arg3: memref<512x128xbf16, #tpu.memory_space<vmem>>, %arg4: memref<512x128xbf16, #tpu.memory_space<vmem>>, %arg5: memref<1x128xf32, #tpu.memory_space<vmem>>, %arg6: memref<512x128xbf16, #tpu.memory_space<vmem>>, %arg7: memref<1x128xf32, #tpu.memory_space<vmem>>, %arg8: memref<1x128xf32, #tpu.memory_space<vmem>>, %arg9: memref<512x128xf32, #tpu.memory_space<vmem>>) attributes {dimension_semantics = [#tpu.dimension_semantics<parallel>, #tpu.dimension_semantics<arbitrary>], iteration_bounds = array<i64: 1, 1>, scalar_prefetch = 0 : i64, scratch_operands = 1 : i64, tpu.core_type = #tpu.core_type<tc>, window_params = [{transform_indices = @transform_0, window_bounds = array<i64: 512, 512>}, {pipeline_mode = #tpu.pipeline_mode<synchronous>, transform_indices = @transform_1, window_bounds = array<i64: 512, 128>}, {transform_indices = @transform_2, window_bounds = array<i64: 512, 128>}, {pipeline_mode = #tpu.pipeline_mode<synchronous>, transform_indices = @transform_3, window_bounds = array<i64: 1, 128>}, {transform_indices = @transform_4, window_bounds = array<i64: 512, 128>}, {transform_indices = @transform_5, window_bounds = array<i64: 1, 128>}, {transform_indices = @transform_6, window_bounds = array<i64: 1, 128>}]} {
    %c0_i32 = arith.constant 0 : i32
    %0 = arith.cmpi eq, %arg1, %c0_i32 : i32
    %1 = arith.extui %0 : i1 to i32
    %c0_i32_0 = arith.constant 0 : i32
    %2 = arith.cmpi ne, %1, %c0_i32_0 : i32
    scf.if %2 {
      %cst_9 = arith.constant 0.000000e+00 : f32
      %15 = vector.broadcast %cst_9 : f32 to vector<512x128xf32>
      %c0_10 = arith.constant 0 : index
      %c0_11 = arith.constant 0 : index
      %16 = vector.load %arg9[%c0_10, %c0_11] : memref<512x128xf32, #tpu.memory_space<vmem>>, vector<512x128xf32>
      tpu.vector_store %arg9[%c0_10, %c0_11], %15 {strides = array<i32>} : memref<512x128xf32, #tpu.memory_space<vmem>>, vector<512x128xf32>,
    } else {
    }
    %c0 = arith.constant 0 : index
    %c0_1 = arith.constant 0 : index
    %3 = vector.load %arg2[%c0, %c0_1] : memref<512x512xi8, #tpu.memory_space<vmem>>, vector<512x512xi8>
    %4 = arith.sitofp %3 : vector<512x512xi8> to vector<512x512xbf16>
    %c512_i32 = arith.constant 512 : i32
    %5 = arith.muli %arg1, %c512_i32 : i32
    %6 = arith.index_cast %5 : i32 to index
    %c0_2 = arith.constant 0 : index
    %7 = vector.load %arg3[%6, %c0_2] : memref<512x128xbf16, #tpu.memory_space<vmem>>, vector<512x128xbf16>
    %c0_3 = arith.constant 0 : index
    %c0_4 = arith.constant 0 : index
    %8 = vector.load %arg9[%c0_3, %c0_4] : memref<512x128xf32, #tpu.memory_space<vmem>>, vector<512x128xf32>
    %cst = arith.constant dense<0.000000e+00> : vector<512x128xf32>
    %9 = tpu.matmul %4, %7, %cst {dimension_numbers = #tpu.dot_dimension_numbers<[1], [0], [0], [1], [0, 0, 1, 1], [], []>} : vector<512x512xbf16>, vector<512x128xbf16>, vector<512x128xf32> -> vector<512x128xf32>
    %10 = arith.addf %8, %9 : vector<512x128xf32>
    %c0_5 = arith.constant 0 : index
    %c0_6 = arith.constant 0 : index
    %11 = vector.load %arg9[%c0_5, %c0_6] : memref<512x128xf32, #tpu.memory_space<vmem>>, vector<512x128xf32>
    tpu.vector_store %arg9[%c0_5, %c0_6], %10 {strides = array<i32>} : memref<512x128xf32, #tpu.memory_space<vmem>>, vector<512x128xf32>,
    %c0_i32_7 = arith.constant 0 : i32
    %12 = arith.cmpi eq, %arg1, %c0_i32_7 : i32
    %13 = arith.extui %12 : i1 to i32
    %c0_i32_8 = arith.constant 0 : i32
    %14 = arith.cmpi ne, %13, %c0_i32_8 : i32
    scf.if %14 {
      %c0_9 = arith.constant 0 : index
      %c0_10 = arith.constant 0 : index
      %15 = vector.load %arg9[%c0_9, %c0_10] : memref<512x128xf32, #tpu.memory_space<vmem>>, vector<512x128xf32>
      %c0_11 = arith.constant 0 : index
      %c0_12 = arith.constant 0 : index
      %16 = vector.load %arg5[%c0_11, %c0_12] : memref<1x128xf32, #tpu.memory_space<vmem>>, vector<1x128xf32>
      %17 = vector.broadcast %16 : vector<1x128xf32> to vector<512x128xf32>
      %18 = arith.addf %15, %17 : vector<512x128xf32>
      %cst_13 = arith.constant 0.000000e+00 : f32
      %19 = vector.broadcast %cst_13 : f32 to vector<512x128xf32>
      %20 = arith.maximumf %18, %19 : vector<512x128xf32>
      %c0_14 = arith.constant 0 : index
      %c0_15 = arith.constant 0 : index
      %21 = vector.load %arg4[%c0_14, %c0_15] : memref<512x128xbf16, #tpu.memory_space<vmem>>, vector<512x128xbf16>
      %22 = arith.extf %21 : vector<512x128xbf16> to vector<512x128xf32>
      %23 = arith.addf %20, %22 : vector<512x128xf32>
      %24 = tpu.iota {dimensions = array<i32: 0>} : vector<512x128xi32>
      %c512_i32_16 = arith.constant 512 : i32
      %25 = arith.muli %arg0, %c512_i32_16 : i32
      %26 = vector.broadcast %25 : i32 to vector<512x128xi32>
      %27 = arith.addi %24, %26 : vector<512x128xi32>
      %c16_i32 = arith.constant 16 : i32
      %28 = vector.broadcast %c16_i32 : i32 to vector<512x128xi32>
      %29 = arith.cmpi slt, %27, %28 : vector<512x128xi32>
      %cst_17 = arith.constant 0.000000e+00 : f32
      %30 = vector.broadcast %cst_17 : f32 to vector<512x128xf32>
      %31 = arith.select %29, %23, %30 : vector<512x128xi1>, vector<512x128xf32>
      %32 = arith.truncf %31 : vector<512x128xf32> to vector<512x128xbf16>
      %c0_18 = arith.constant 0 : index
      %c0_19 = arith.constant 0 : index
      %33 = vector.load %arg6[%c0_18, %c0_19] : memref<512x128xbf16, #tpu.memory_space<vmem>>, vector<512x128xbf16>
      tpu.vector_store %arg6[%c0_18, %c0_19], %32 {strides = array<i32>} : memref<512x128xbf16, #tpu.memory_space<vmem>>, vector<512x128xbf16>,
      %cst_20 = arith.constant dense<0.000000e+00> : vector<128xf32>
      %34 = vector.multi_reduction <add>, %31, %cst_20 [0] : vector<512x128xf32> to vector<128xf32>
      %35 = vector.shape_cast %34 : vector<128xf32> to vector<1x128xf32>
      %c0_21 = arith.constant 0 : index
      %c0_22 = arith.constant 0 : index
      %36 = vector.load %arg7[%c0_21, %c0_22] : memref<1x128xf32, #tpu.memory_space<vmem>>, vector<1x128xf32>
      tpu.vector_store %arg7[%c0_21, %c0_22], %35 {strides = array<i32>} : memref<1x128xf32, #tpu.memory_space<vmem>>, vector<1x128xf32>,
      %37 = arith.mulf %31, %31 : vector<512x128xf32>
      %cst_23 = arith.constant dense<0.000000e+00> : vector<128xf32>
      %38 = vector.multi_reduction <add>, %37, %cst_23 [0] : vector<512x128xf32> to vector<128xf32>
      %39 = vector.shape_cast %38 : vector<128xf32> to vector<1x128xf32>
      %c0_24 = arith.constant 0 : index
      %c0_25 = arith.constant 0 : index
      %40 = vector.load %arg8[%c0_24, %c0_25] : memref<1x128xf32, #tpu.memory_space<vmem>>, vector<1x128xf32>
      tpu.vector_store %arg8[%c0_24, %c0_25], %39 {strides = array<i32>} : memref<1x128xf32, #tpu.memory_space<vmem>>, vector<1x128xf32>,
    } else {
    }
    return
  }
  func.func @transform_0(%arg0: i32, %arg1: i32) -> (i32, i32) {
    %c0_i32 = arith.constant 0 : i32
    return %arg0, %arg1 : i32, i32
  }
  func.func @transform_1(%arg0: i32, %arg1: i32) -> (i32, i32) {
    %c0_i32 = arith.constant 0 : i32
    %c0_i32_0 = arith.constant 0 : i32
    %c0_i32_1 = arith.constant 0 : i32
    return %c0_i32, %c0_i32_0 : i32, i32
  }
  func.func @transform_2(%arg0: i32, %arg1: i32) -> (i32, i32) {
    %c0_i32 = arith.constant 0 : i32
    %c0_i32_0 = arith.constant 0 : i32
    return %arg0, %c0_i32 : i32, i32
  }
  func.func @transform_3(%arg0: i32, %arg1: i32) -> (i32, i32) {
    %c0_i32 = arith.constant 0 : i32
    %c0_i32_0 = arith.constant 0 : i32
    %c0_i32_1 = arith.constant 0 : i32
    return %c0_i32, %c0_i32_0 : i32, i32
  }
  func.func @transform_4(%arg0: i32, %arg1: i32) -> (i32, i32) {
    %c0_i32 = arith.constant 0 : i32
    %c0_i32_0 = arith.constant 0 : i32
    return %arg0, %c0_i32 : i32, i32
  }
  func.func @transform_5(%arg0: i32, %arg1: i32) -> (i32, i32) {
    %c0_i32 = arith.constant 0 : i32
    %c0_i32_0 = arith.constant 0 : i32
    return %arg0, %c0_i32 : i32, i32
  }
  func.func @transform_6(%arg0: i32, %arg1: i32) -> (i32, i32) {
    %c0_i32 = arith.constant 0 : i32
    %c0_i32_0 = arith.constant 0 : i32
    return %arg0, %c0_i32 : i32, i32
  }
}

module attributes {stable_mosaic.version = 11 : i64} {
  func.func @_aggregate_kernel(%arg0: i32, %arg1: i32, %arg2: memref<512x512xi8, #tpu.memory_space<vmem>>, %arg3: memref<512x128xbf16, #tpu.memory_space<vmem>>, %arg4: memref<512x128xbf16, #tpu.memory_space<vmem>>, %arg5: memref<1x128xf32, #tpu.memory_space<vmem>>, %arg6: memref<512x128xf32, #tpu.memory_space<vmem>>, %arg7: memref<1x128xf32, #tpu.memory_space<vmem>>, %arg8: memref<1x128xf32, #tpu.memory_space<vmem>>, %arg9: memref<512x128xf32, #tpu.memory_space<vmem>>) attributes {dimension_semantics = [#tpu.dimension_semantics<parallel>, #tpu.dimension_semantics<arbitrary>], iteration_bounds = array<i64: 1, 1>, scalar_prefetch = 0 : i64, scratch_operands = 1 : i64, tpu.core_type = #tpu.core_type<tc>, window_params = [{transform_indices = @transform_0, window_bounds = array<i64: 512, 512>}, {pipeline_mode = #tpu.pipeline_mode<synchronous>, transform_indices = @transform_1, window_bounds = array<i64: 512, 128>}, {transform_indices = @transform_2, window_bounds = array<i64: 512, 128>}, {pipeline_mode = #tpu.pipeline_mode<synchronous>, transform_indices = @transform_3, window_bounds = array<i64: 1, 128>}, {transform_indices = @transform_4, window_bounds = array<i64: 512, 128>}, {transform_indices = @transform_5, window_bounds = array<i64: 1, 128>}, {transform_indices = @transform_6, window_bounds = array<i64: 1, 128>}]} {
    %c0_i32 = arith.constant 0 : i32
    %0 = arith.cmpi eq, %arg1, %c0_i32 : i32
    %1 = arith.extui %0 : i1 to i32
    %c0_i32_0 = arith.constant 0 : i32
    %2 = arith.cmpi ne, %1, %c0_i32_0 : i32
    scf.if %2 {
      %cst_9 = arith.constant 0.000000e+00 : f32
      %15 = vector.broadcast %cst_9 : f32 to vector<512x128xf32>
      %c0_10 = arith.constant 0 : index
      %c0_11 = arith.constant 0 : index
      %16 = vector.load %arg9[%c0_10, %c0_11] : memref<512x128xf32, #tpu.memory_space<vmem>>, vector<512x128xf32>
      tpu.vector_store %arg9[%c0_10, %c0_11], %15 {strides = array<i32>} : memref<512x128xf32, #tpu.memory_space<vmem>>, vector<512x128xf32>,
    } else {
    }
    %c0 = arith.constant 0 : index
    %c0_1 = arith.constant 0 : index
    %3 = vector.load %arg2[%c0, %c0_1] : memref<512x512xi8, #tpu.memory_space<vmem>>, vector<512x512xi8>
    %4 = arith.sitofp %3 : vector<512x512xi8> to vector<512x512xbf16>
    %c512_i32 = arith.constant 512 : i32
    %5 = arith.muli %arg1, %c512_i32 : i32
    %6 = arith.index_cast %5 : i32 to index
    %c0_2 = arith.constant 0 : index
    %7 = vector.load %arg3[%6, %c0_2] : memref<512x128xbf16, #tpu.memory_space<vmem>>, vector<512x128xbf16>
    %c0_3 = arith.constant 0 : index
    %c0_4 = arith.constant 0 : index
    %8 = vector.load %arg9[%c0_3, %c0_4] : memref<512x128xf32, #tpu.memory_space<vmem>>, vector<512x128xf32>
    %cst = arith.constant dense<0.000000e+00> : vector<512x128xf32>
    %9 = tpu.matmul %4, %7, %cst {dimension_numbers = #tpu.dot_dimension_numbers<[1], [0], [0], [1], [0, 0, 1, 1], [], []>} : vector<512x512xbf16>, vector<512x128xbf16>, vector<512x128xf32> -> vector<512x128xf32>
    %10 = arith.addf %8, %9 : vector<512x128xf32>
    %c0_5 = arith.constant 0 : index
    %c0_6 = arith.constant 0 : index
    %11 = vector.load %arg9[%c0_5, %c0_6] : memref<512x128xf32, #tpu.memory_space<vmem>>, vector<512x128xf32>
    tpu.vector_store %arg9[%c0_5, %c0_6], %10 {strides = array<i32>} : memref<512x128xf32, #tpu.memory_space<vmem>>, vector<512x128xf32>,
    %c0_i32_7 = arith.constant 0 : i32
    %12 = arith.cmpi eq, %arg1, %c0_i32_7 : i32
    %13 = arith.extui %12 : i1 to i32
    %c0_i32_8 = arith.constant 0 : i32
    %14 = arith.cmpi ne, %13, %c0_i32_8 : i32
    scf.if %14 {
      %c0_9 = arith.constant 0 : index
      %c0_10 = arith.constant 0 : index
      %15 = vector.load %arg9[%c0_9, %c0_10] : memref<512x128xf32, #tpu.memory_space<vmem>>, vector<512x128xf32>
      %c0_11 = arith.constant 0 : index
      %c0_12 = arith.constant 0 : index
      %16 = vector.load %arg5[%c0_11, %c0_12] : memref<1x128xf32, #tpu.memory_space<vmem>>, vector<1x128xf32>
      %17 = vector.broadcast %16 : vector<1x128xf32> to vector<512x128xf32>
      %18 = arith.addf %15, %17 : vector<512x128xf32>
      %cst_13 = arith.constant 0.000000e+00 : f32
      %19 = vector.broadcast %cst_13 : f32 to vector<512x128xf32>
      %20 = arith.maximumf %18, %19 : vector<512x128xf32>
      %c0_14 = arith.constant 0 : index
      %c0_15 = arith.constant 0 : index
      %21 = vector.load %arg4[%c0_14, %c0_15] : memref<512x128xbf16, #tpu.memory_space<vmem>>, vector<512x128xbf16>
      %22 = arith.extf %21 : vector<512x128xbf16> to vector<512x128xf32>
      %23 = arith.addf %20, %22 : vector<512x128xf32>
      %24 = tpu.iota {dimensions = array<i32: 0>} : vector<512x128xi32>
      %c512_i32_16 = arith.constant 512 : i32
      %25 = arith.muli %arg0, %c512_i32_16 : i32
      %26 = vector.broadcast %25 : i32 to vector<512x128xi32>
      %27 = arith.addi %24, %26 : vector<512x128xi32>
      %c16_i32 = arith.constant 16 : i32
      %28 = vector.broadcast %c16_i32 : i32 to vector<512x128xi32>
      %29 = arith.cmpi slt, %27, %28 : vector<512x128xi32>
      %cst_17 = arith.constant 0.000000e+00 : f32
      %30 = vector.broadcast %cst_17 : f32 to vector<512x128xf32>
      %31 = arith.select %29, %23, %30 : vector<512x128xi1>, vector<512x128xf32>
      %c0_18 = arith.constant 0 : index
      %c0_19 = arith.constant 0 : index
      %32 = vector.load %arg6[%c0_18, %c0_19] : memref<512x128xf32, #tpu.memory_space<vmem>>, vector<512x128xf32>
      tpu.vector_store %arg6[%c0_18, %c0_19], %31 {strides = array<i32>} : memref<512x128xf32, #tpu.memory_space<vmem>>, vector<512x128xf32>,
      %cst_20 = arith.constant dense<0.000000e+00> : vector<128xf32>
      %33 = vector.multi_reduction <add>, %31, %cst_20 [0] : vector<512x128xf32> to vector<128xf32>
      %34 = vector.shape_cast %33 : vector<128xf32> to vector<1x128xf32>
      %c0_21 = arith.constant 0 : index
      %c0_22 = arith.constant 0 : index
      %35 = vector.load %arg7[%c0_21, %c0_22] : memref<1x128xf32, #tpu.memory_space<vmem>>, vector<1x128xf32>
      tpu.vector_store %arg7[%c0_21, %c0_22], %34 {strides = array<i32>} : memref<1x128xf32, #tpu.memory_space<vmem>>, vector<1x128xf32>,
      %36 = arith.mulf %31, %31 : vector<512x128xf32>
      %cst_23 = arith.constant dense<0.000000e+00> : vector<128xf32>
      %37 = vector.multi_reduction <add>, %36, %cst_23 [0] : vector<512x128xf32> to vector<128xf32>
      %38 = vector.shape_cast %37 : vector<128xf32> to vector<1x128xf32>
      %c0_24 = arith.constant 0 : index
      %c0_25 = arith.constant 0 : index
      %39 = vector.load %arg8[%c0_24, %c0_25] : memref<1x128xf32, #tpu.memory_space<vmem>>, vector<1x128xf32>
      tpu.vector_store %arg8[%c0_24, %c0_25], %38 {strides = array<i32>} : memref<1x128xf32, #tpu.memory_space<vmem>>, vector<1x128xf32>,
    } else {
    }
    return
  }
  func.func @transform_0(%arg0: i32, %arg1: i32) -> (i32, i32) {
    %c0_i32 = arith.constant 0 : i32
    return %arg0, %arg1 : i32, i32
  }
  func.func @transform_1(%arg0: i32, %arg1: i32) -> (i32, i32) {
    %c0_i32 = arith.constant 0 : i32
    %c0_i32_0 = arith.constant 0 : i32
    %c0_i32_1 = arith.constant 0 : i32
    return %c0_i32, %c0_i32_0 : i32, i32
  }
  func.func @transform_2(%arg0: i32, %arg1: i32) -> (i32, i32) {
    %c0_i32 = arith.constant 0 : i32
    %c0_i32_0 = arith.constant 0 : i32
    return %arg0, %c0_i32 : i32, i32
  }
  func.func @transform_3(%arg0: i32, %arg1: i32) -> (i32, i32) {
    %c0_i32 = arith.constant 0 : i32
    %c0_i32_0 = arith.constant 0 : i32
    %c0_i32_1 = arith.constant 0 : i32
    return %c0_i32, %c0_i32_0 : i32, i32
  }
  func.func @transform_4(%arg0: i32, %arg1: i32) -> (i32, i32) {
    %c0_i32 = arith.constant 0 : i32
    %c0_i32_0 = arith.constant 0 : i32
    return %arg0, %c0_i32 : i32, i32
  }
  func.func @transform_5(%arg0: i32, %arg1: i32) -> (i32, i32) {
    %c0_i32 = arith.constant 0 : i32
    %c0_i32_0 = arith.constant 0 : i32
    return %arg0, %c0_i32 : i32, i32
  }
  func.func @transform_6(%arg0: i32, %arg1: i32) -> (i32, i32) {
    %c0_i32 = arith.constant 0 : i32
    %c0_i32_0 = arith.constant 0 : i32
    return %arg0, %c0_i32 : i32, i32
  }
}

module attributes {stable_mosaic.version = 11 : i64} {
  func.func @_bn_apply_kernel(%arg0: i32, %arg1: memref<512x128xf32, #tpu.memory_space<vmem>>, %arg2: memref<1x128xf32, #tpu.memory_space<vmem>>, %arg3: memref<1x128xf32, #tpu.memory_space<vmem>>, %arg4: memref<512x128xf32, #tpu.memory_space<vmem>>) attributes {dimension_semantics = [#tpu.dimension_semantics<parallel>], iteration_bounds = array<i64: 1>, scalar_prefetch = 0 : i64, scratch_operands = 0 : i64, tpu.core_type = #tpu.core_type<tc>, window_params = [{transform_indices = @transform_0, window_bounds = array<i64: 512, 128>}, {pipeline_mode = #tpu.pipeline_mode<synchronous>, transform_indices = @transform_1, window_bounds = array<i64: 1, 128>}, {pipeline_mode = #tpu.pipeline_mode<synchronous>, transform_indices = @transform_2, window_bounds = array<i64: 1, 128>}, {transform_indices = @transform_3, window_bounds = array<i64: 512, 128>}]} {
    %c0 = arith.constant 0 : index
    %c0_0 = arith.constant 0 : index
    %0 = vector.load %arg1[%c0, %c0_0] : memref<512x128xf32, #tpu.memory_space<vmem>>, vector<512x128xf32>
    %c0_1 = arith.constant 0 : index
    %c0_2 = arith.constant 0 : index
    %1 = vector.load %arg2[%c0_1, %c0_2] : memref<1x128xf32, #tpu.memory_space<vmem>>, vector<1x128xf32>
    %2 = vector.broadcast %1 : vector<1x128xf32> to vector<512x128xf32>
    %3 = arith.mulf %0, %2 : vector<512x128xf32>
    %c0_3 = arith.constant 0 : index
    %c0_4 = arith.constant 0 : index
    %4 = vector.load %arg3[%c0_3, %c0_4] : memref<1x128xf32, #tpu.memory_space<vmem>>, vector<1x128xf32>
    %5 = vector.broadcast %4 : vector<1x128xf32> to vector<512x128xf32>
    %6 = arith.addf %3, %5 : vector<512x128xf32>
    %c0_5 = arith.constant 0 : index
    %c0_6 = arith.constant 0 : index
    %7 = vector.load %arg4[%c0_5, %c0_6] : memref<512x128xf32, #tpu.memory_space<vmem>>, vector<512x128xf32>
    tpu.vector_store %arg4[%c0_5, %c0_6], %6 {strides = array<i32>} : memref<512x128xf32, #tpu.memory_space<vmem>>, vector<512x128xf32>,
    return
  }
  func.func @transform_0(%arg0: i32) -> (i32, i32) {
    %c0_i32 = arith.constant 0 : i32
    %c0_i32_0 = arith.constant 0 : i32
    return %arg0, %c0_i32 : i32, i32
  }
  func.func @transform_1(%arg0: i32) -> (i32, i32) {
    %c0_i32 = arith.constant 0 : i32
    %c0_i32_0 = arith.constant 0 : i32
    %c0_i32_1 = arith.constant 0 : i32
    return %c0_i32, %c0_i32_0 : i32, i32
  }
  func.func @transform_2(%arg0: i32) -> (i32, i32) {
    %c0_i32 = arith.constant 0 : i32
    %c0_i32_0 = arith.constant 0 : i32
    %c0_i32_1 = arith.constant 0 : i32
    return %c0_i32, %c0_i32_0 : i32, i32
  }
  func.func @transform_3(%arg0: i32) -> (i32, i32) {
    %c0_i32 = arith.constant 0 : i32
    %c0_i32_0 = arith.constant 0 : i32
    return %arg0, %c0_i32 : i32, i32
  }
}

</mosaic_0001>

<bundles_post_ra>
// kernel: gcn_forward.5
= control target key start
LH: loop header
LB: loop body
LE: loop exit
PB: predicated region body
PF: predicated region fallthrough
CT: control target
= control target key end

     0   :  { %v2205_v1 = vmov 0   ;;  %v99_v49 = vlaneseq  ;;  %s2734_s1 = inlined_call_operand.vmem [shape: bf16[128,256], index: 1, kind: input, shape index: {}]   ;;  %s2735_s0 = inlined_call_operand.vmem [shape: bf16[512,128], index: 0, kind: input, shape index: {}]   ;;  %s2736_s2 = inlined_call_operand.vmem [shape: f32[1,256], index: 2, kind: input, shape index: {}]   ;;  %s2737_s3 = inlined_call_operand.vmem [shape: bf16[512,128], index: 3, kind: output, shape index: {0}]   ;;  %s2738_s4 = inlined_call_operand.vmem [shape: bf16[512,128], index: 4, kind: output, shape index: {1}]  }
   0x1   :  { %v2149_v0 = vld [vmem:[%s2734_s1 + $0x4] ss:$8 sps:$4 sm:$0xff]   ;;  %413 = vmatprep.mubr.bf16.mxu0 %v2205_v1  ;;  %573 = vmatprep.mubr.bf16.mxu1 %v2205_v1  ;;  %v2151_v2 = vld [vmem:[%s2734_s1] ss:$8 sps:$4 sm:$0xff]   ;;  %v2152_v3 = vld [vmem:[%s2734_s1 + $0x14] ss:$8 sps:$4 sm:$0xff]  }
   0x2   :  { %381 = vmatprep.subr.bf16.mxu0 %v2149_v0  ;;  %2132 = vmatprep.subr.bf16.mxu1 %v2149_v0  ;;  %v2154_v4 = vld [vmem:[%s2734_s1 + $0x10] ss:$8 sps:$4 sm:$0xff]   ;;  %v2155_v5 = vld [vmem:[%s2734_s1 + $0x24] ss:$8 sps:$4 sm:$0xff]   ;;  %v2157_v6 = vld [vmem:[%s2734_s1 + $0x20] ss:$8 sps:$4 sm:$0xff]  }
   0x3   :  { %382 = vmatpush1.bf16.msra.mxu0 %v2151_v2  ;;  %2140 = vmatpush1.bf16.msra.mxu1 %v2151_v2  ;;  %v2158_v7 = vld [vmem:[%s2734_s1 + $0x34] ss:$8 sps:$4 sm:$0xff]   ;;  %v2160_v8 = vld [vmem:[%s2734_s1 + $0x30] ss:$8 sps:$4 sm:$0xff]   ;;  %v2161_v9 = vld [vmem:[%s2734_s1 + $0x44] ss:$8 sps:$4 sm:$0xff]  }
   0x4   :  { %383 = vmatprep.subr.bf16.mxu0 %v2152_v3  ;;  %2133 = vmatprep.subr.bf16.mxu1 %v2152_v3  ;;  %v2163_v10 = vld [vmem:[%s2734_s1 + $0x40] ss:$8 sps:$4 sm:$0xff]   ;;  %v2164_v11 = vld [vmem:[%s2734_s1 + $0x54] ss:$8 sps:$4 sm:$0xff]   ;;  %v2166_v12 = vld [vmem:[%s2734_s1 + $0x50] ss:$8 sps:$4 sm:$0xff]  }
   0x5   :  { %v2167_v13 = vld [vmem:[%s2734_s1 + $0x64] ss:$8 sps:$4 sm:$0xff]   ;;  %v2169_v14 = vld [vmem:[%s2734_s1 + $0x60] ss:$8 sps:$4 sm:$0xff]   ;;  %v2170_v15 = vld [vmem:[%s2734_s1 + $0x74] ss:$8 sps:$4 sm:$0xff]  }
   0x6   :  { %v2172_v16 = vld [vmem:[%s2734_s1 + $0x70] ss:$8 sps:$4 sm:$0xff]   ;;  %v2173_v17 = vld [vmem:[%s2735_s0] sm:$0xff]   ;;  %v2175_v19 = vld [vmem:[%s2735_s0 + $0x8] sm:$0xff]   ;;  %v100_v50 = vshrl.u32 %v99_v49, 7 }
   0x7   :  { %384 = vmatpush1.bf16.msra.mxu0 %v2154_v4  ;;  %2141 = vmatpush1.bf16.msra.mxu1 %v2154_v4  ;;  %v2174_v18 = vld [vmem:[%s2735_s0 + $0x80] sm:$0xff]   ;;  %v2176_v20 = vld [vmem:[%s2735_s0 + $0x88] sm:$0xff]   ;;  %v2177_v21 = vld [vmem:[%s2735_s0 + $0x10] sm:$0xff]  }
   0x8   :  { %385 = vmatprep.subr.bf16.mxu0 %v2155_v5  ;;  %2134 = vmatprep.subr.bf16.mxu1 %v2155_v5  ;;  %v2178_v22 = vld [vmem:[%s2735_s0 + $0x90] sm:$0xff]   ;;  %v2179_v23 = vld [vmem:[%s2735_s0 + $0x18] sm:$0xff]   ;;  %v2181_v25 = vld [vmem:[%s2735_s0 + $0x20] sm:$0xff]   ;;  %v105_v51 = vsub.s32 1, %v100_v50  ;;  %v101_v53 = vsub.s32 0, %v100_v50 }
   0x9   :  { %v2180_v24 = vld [vmem:[%s2735_s0 + $0x98] sm:$0xff]   ;;  %v2182_v26 = vld [vmem:[%s2735_s0 + $0xa0] sm:$0xff]   ;;  %v2183_v27 = vld [vmem:[%s2735_s0 + $0x28] sm:$0xff]  }
   0xa   :  { %v2184_v28 = vld [vmem:[%s2735_s0 + $0xa8] sm:$0xff]   ;;  %v2185_v29 = vld [vmem:[%s2735_s0 + $0x30] sm:$0xff]   ;;  %v2187_v31 = vld [vmem:[%s2735_s0 + $0x38] sm:$0xff]  }
   0xb   :  { %386 = vmatpush1.bf16.msra.mxu0 %v2157_v6  ;;  %2142 = vmatpush1.bf16.msra.mxu1 %v2157_v6  ;;  %v2186_v30 = vld [vmem:[%s2735_s0 + $0xb0] sm:$0xff]   ;;  %v2188_v32 = vld [vmem:[%s2735_s0 + $0xb8] sm:$0xff]   ;;  %v2189_v33 = vld [vmem:[%s2735_s0 + $0x40] sm:$0xff]  }
   0xc   :  { %387 = vmatprep.subr.bf16.mxu0 %v2158_v7  ;;  %2135 = vmatprep.subr.bf16.mxu1 %v2158_v7  ;;  %v2190_v34 = vld [vmem:[%s2735_s0 + $0xc0] sm:$0xff]   ;;  %v2191_v35 = vld [vmem:[%s2735_s0 + $0x48] sm:$0xff]   ;;  %v2193_v37 = vld [vmem:[%s2735_s0 + $0x50] sm:$0xff]  }
   0xd   :  { %v2192_v36 = vld [vmem:[%s2735_s0 + $0xc8] sm:$0xff]   ;;  %v2194_v38 = vld [vmem:[%s2735_s0 + $0xd0] sm:$0xff]   ;;  %v2195_v39 = vld [vmem:[%s2735_s0 + $0x58] sm:$0xff]  }
   0xe   :  { %v2196_v40 = vld [vmem:[%s2735_s0 + $0xd8] sm:$0xff]   ;;  %v2197_v41 = vld [vmem:[%s2735_s0 + $0x60] sm:$0xff]   ;;  %v2199_v43 = vld [vmem:[%s2735_s0 + $0x68] sm:$0xff]  }
   0xf   :  { %388 = vmatpush1.bf16.msra.mxu0 %v2160_v8  ;;  %2143 = vmatpush1.bf16.msra.mxu1 %v2160_v8  ;;  %v2198_v42 = vld [vmem:[%s2735_s0 + $0xe0] sm:$0xff]   ;;  %v2200_v44 = vld [vmem:[%s2735_s0 + $0xe8] sm:$0xff]   ;;  %v2201_v45 = vld [vmem:[%s2735_s0 + $0x70] sm:$0xff]  }
  0x10   :  { %389 = vmatprep.subr.bf16.mxu0 %v2161_v9  ;;  %2136 = vmatprep.subr.bf16.mxu1 %v2161_v9  ;;  %v2202_v46 = vld [vmem:[%s2735_s0 + $0xf0] sm:$0xff]   ;;  %v2203_v47 = vld [vmem:[%s2735_s0 + $0x78] sm:$0xff]   ;;  %v97_v52 = vld [vmem:[%s2736_s2] sm:$0x3] }
  0x11   :  { %v2204_v48 = vld [vmem:[%s2735_s0 + $0xf8] sm:$0xff]   ;;  %v2410_v54 = vrot.slane %v97_v52, %v105_v51  ;;  %v2412_v55 = vrot.slane %v97_v52, %v101_v53 }
  0x13   :  { %390 = vmatpush1.bf16.msra.mxu0 %v2163_v10  ;;  %2144 = vmatpush1.bf16.msra.mxu1 %v2163_v10 }
  0x14   :  { %391 = vmatprep.subr.bf16.mxu0 %v2164_v11  ;;  %2137 = vmatprep.subr.bf16.mxu1 %v2164_v11 }
  0x17   :  { %392 = vmatpush1.bf16.msra.mxu0 %v2166_v12  ;;  %2145 = vmatpush1.bf16.msra.mxu1 %v2166_v12 }
  0x18   :  { %393 = vmatprep.subr.bf16.mxu0 %v2167_v13  ;;  %2138 = vmatprep.subr.bf16.mxu1 %v2167_v13 }
  0x1b   :  { %394 = vmatpush1.bf16.msra.mxu0 %v2169_v14  ;;  %2146 = vmatpush1.bf16.msra.mxu1 %v2169_v14 }
  0x1c   :  { %395 = vmatprep.subr.bf16.mxu0 %v2170_v15  ;;  %2139 = vmatprep.subr.bf16.mxu1 %v2170_v15 }
  0x1f   :  { %396 = vmatpush1.bf16.msra.mxu0 %v2172_v16  ;;  %2147 = vmatpush1.bf16.msra.mxu1 %v2172_v16 }
  0x22   :  { %414 = vmatmul.mubr.bf16.vlgmr.msra.gmra.mrb[0].mxu0 %v2173_v17  ;;  %574 = vmatmul.mubr.bf16.vlgmr.msra.gmra.mrb[0].mxu1 %v2174_v18 }
  0x23   :  { %423 = vmatprep.mubr.bf16.mxu0 %v2205_v1  ;;  %583 = vmatprep.mubr.bf16.mxu1 %v2205_v1 }
  0x2a   :  { %424 = vmatmul.mubr.bf16.gmra.mrb[4].mxu0 %v2175_v19  ;;  %584 = vmatmul.mubr.bf16.gmra.mrb[4].mxu1 %v2176_v20 }
  0x2b   :  { %433 = vmatprep.mubr.bf16.mxu0 %v2205_v1  ;;  %593 = vmatprep.mubr.bf16.mxu1 %v2205_v1 }
  0x32   :  { %434 = vmatmul.mubr.bf16.gmra.mrb[8].mxu0 %v2177_v21  ;;  %594 = vmatmul.mubr.bf16.gmra.mrb[8].mxu1 %v2178_v22 }
  0x33   :  { %443 = vmatprep.mubr.bf16.mxu0 %v2205_v1  ;;  %603 = vmatprep.mubr.bf16.mxu1 %v2205_v1 }
  0x3a   :  { %444 = vmatmul.mubr.bf16.gmra.mrb[12].mxu0 %v2179_v23  ;;  %604 = vmatmul.mubr.bf16.gmra.mrb[12].mxu1 %v2180_v24 }
  0x3b   :  { %453 = vmatprep.mubr.bf16.mxu0 %v2205_v1  ;;  %613 = vmatprep.mubr.bf16.mxu1 %v2205_v1 }
  0x42   :  { %454 = vmatmul.mubr.bf16.gmra.mrb[16].mxu0 %v2181_v25  ;;  %614 = vmatmul.mubr.bf16.gmra.mrb[16].mxu1 %v2182_v26 }
  0x43   :  { %463 = vmatprep.mubr.bf16.mxu0 %v2205_v1  ;;  %623 = vmatprep.mubr.bf16.mxu1 %v2205_v1 }
  0x4a   :  { %464 = vmatmul.mubr.bf16.gmra.mrb[20].mxu0 %v2183_v27  ;;  %624 = vmatmul.mubr.bf16.gmra.mrb[20].mxu1 %v2184_v28 }
  0x4b   :  { %473 = vmatprep.mubr.bf16.mxu0 %v2205_v1  ;;  %633 = vmatprep.mubr.bf16.mxu1 %v2205_v1 }
  0x52   :  { %474 = vmatmul.mubr.bf16.gmra.mrb[24].mxu0 %v2185_v29  ;;  %634 = vmatmul.mubr.bf16.gmra.mrb[24].mxu1 %v2186_v30 }
  0x53   :  { %483 = vmatprep.mubr.bf16.mxu0 %v2205_v1  ;;  %643 = vmatprep.mubr.bf16.mxu1 %v2205_v1 }
  0x5a   :  { %484 = vmatmul.mubr.bf16.gmra.mrb[28].mxu0 %v2187_v31  ;;  %644 = vmatmul.mubr.bf16.gmra.mrb[28].mxu1 %v2188_v32 }
  0x5b   :  { %493 = vmatprep.mubr.bf16.mxu0 %v2205_v1  ;;  %653 = vmatprep.mubr.bf16.mxu1 %v2205_v1 }
  0x62   :  { %494 = vmatmul.mubr.bf16.gmra.mrb[32].mxu0 %v2189_v33  ;;  %654 = vmatmul.mubr.bf16.gmra.mrb[32].mxu1 %v2190_v34 }
  0x63   :  { %503 = vmatprep.mubr.bf16.mxu0 %v2205_v1  ;;  %663 = vmatprep.mubr.bf16.mxu1 %v2205_v1 }
  0x6a   :  { %504 = vmatmul.mubr.bf16.gmra.mrb[36].mxu0 %v2191_v35  ;;  %664 = vmatmul.mubr.bf16.gmra.mrb[36].mxu1 %v2192_v36 }
  0x6b   :  { %513 = vmatprep.mubr.bf16.mxu0 %v2205_v1  ;;  %673 = vmatprep.mubr.bf16.mxu1 %v2205_v1 }
  0x72   :  { %514 = vmatmul.mubr.bf16.gmra.mrb[40].mxu0 %v2193_v37  ;;  %674 = vmatmul.mubr.bf16.gmra.mrb[40].mxu1 %v2194_v38 }
  0x73   :  { %523 = vmatprep.mubr.bf16.mxu0 %v2205_v1  ;;  %683 = vmatprep.mubr.bf16.mxu1 %v2205_v1 }
  0x7a   :  { %524 = vmatmul.mubr.bf16.gmra.mrb[44].mxu0 %v2195_v39  ;;  %684 = vmatmul.mubr.bf16.gmra.mrb[44].mxu1 %v2196_v40 }
  0x7b   :  { %533 = vmatprep.mubr.bf16.mxu0 %v2205_v1  ;;  %693 = vmatprep.mubr.bf16.mxu1 %v2205_v1 }
  0x82   :  { %534 = vmatmul.mubr.bf16.gmra.mrb[48].mxu0 %v2197_v41  ;;  %694 = vmatmul.mubr.bf16.gmra.mrb[48].mxu1 %v2198_v42 }
  0x83   :  { %543 = vmatprep.mubr.bf16.mxu0 %v2205_v1  ;;  %703 = vmatprep.mubr.bf16.mxu1 %v2205_v1 }
  0x8a   :  { %544 = vmatmul.mubr.bf16.gmra.mrb[52].mxu0 %v2199_v43  ;;  %704 = vmatmul.mubr.bf16.gmra.mrb[52].mxu1 %v2200_v44 }
  0x8b   :  { %553 = vmatprep.mubr.bf16.mxu0 %v2205_v1  ;;  %713 = vmatprep.mubr.bf16.mxu1 %v2205_v1 }
  0x92   :  { %554 = vmatmul.mubr.bf16.gmra.mrb[56].mxu0 %v2201_v45  ;;  %714 = vmatmul.mubr.bf16.gmra.mrb[56].mxu1 %v2202_v46 }
  0x93   :  { %563 = vmatprep.mubr.bf16.mxu0 %v2205_v1  ;;  %723 = vmatprep.mubr.bf16.mxu1 %v2205_v1 }
  0x9a   :  { %564 = vmatmul.mubr.bf16.gmra.mrb[60].mxu0 %v2203_v47  ;;  %724 = vmatmul.mubr.bf16.gmra.mrb[60].mxu1 %v2204_v48 }
  0xf5   :  { %v415_v56 = vpop.f32.mrb[0].mxu0  ;;  %v575_v57 = vpop.f32.mrb[0].mxu1 }
  0xf6   :  { %v417_v58 = vpop.f32.mrb[1].mxu0  ;;  %v577_v59 = vpop.f32.mrb[1].mxu1  ;;  %v416_v0 = vadd.f32 %v415_v56, %v2412_v55  ;;  %v576_v1 = vadd.f32 %v575_v57, %v2412_v55 }
  0xf7   :  { %v418_v60 = vadd.f32 %v417_v58, %v2410_v54  ;;  %v578_v61 = vadd.f32 %v577_v59, %v2410_v54  ;;  %v419_v62 = vpop.f32.mrb[2].mxu0  ;;  %v579_v63 = vpop.f32.mrb[2].mxu1 }
  0xf8   :  { %v420_v2 = vadd.f32 %v419_v62, %v2412_v55  ;;  %v580_v3 = vadd.f32 %v579_v63, %v2412_v55  ;;  %v421_v4 = vpop.f32.mrb[3].mxu0  ;;  %v581_v5 = vpop.f32.mrb[3].mxu1 }
  0xf9   :  { %v422_v6 = vadd.f32 %v421_v4, %v2410_v54  ;;  %v582_v7 = vadd.f32 %v581_v5, %v2410_v54  ;;  %v1054_v10 = vmax.f32 %v418_v60, 0.0  ;;  %v1086_v11 = vmax.f32 %v578_v61, 0.0 }
  0xfa   :  { %v1753_v8 = vpack.c.bf16 %v420_v2, %v416_v0  ;;  %v1833_v9 = vpack.c.bf16 %v580_v3, %v576_v1 }
  0xfb   :  { %v1055_v12 = vmax.f32 %v422_v6, 0.0  ;;  %v1087_v13 = vmax.f32 %v582_v7, 0.0 }
  0xfc   :  { %1754 = vst [vmem:[%s2737_s3] sm:$0xff] %v1753_v8   ;;  %2085 = vst [vmem:[%s2737_s3 + $0x80] sm:$0xff] %v1833_v9  }
  0xfd   :  { %v1913_v14 = vpack.c.bf16 %v1055_v12, %v1054_v10  ;;  %v1993_v15 = vpack.c.bf16 %v1087_v13, %v1086_v11  ;;  %v425_v16 = vpop.f32.mrb[4].mxu0  ;;  %v585_v17 = vpop.f32.mrb[4].mxu1 }
  0xfe   :  { %v427_v18 = vpop.f32.mrb[5].mxu0  ;;  %v587_v19 = vpop.f32.mrb[5].mxu1  ;;  %v426_v24 = vadd.f32 %v425_v16, %v2412_v55  ;;  %v586_v25 = vadd.f32 %v585_v17, %v2412_v55 }
  0xff   :  { %1914 = vst [vmem:[%s2738_s4] sm:$0xff] %v1913_v14   ;;  %2116 = vst [vmem:[%s2738_s4 + $0x80] sm:$0xff] %v1993_v15   ;;  %v428_v20 = vadd.f32 %v427_v18, %v2410_v54  ;;  %v588_v21 = vadd.f32 %v587_v19, %v2410_v54  ;;  %v429_v22 = vpop.f32.mrb[6].mxu0  ;;  %v589_v23 = vpop.f32.mrb[6].mxu1 }
 0x100   :  { %v430_v26 = vadd.f32 %v429_v22, %v2412_v55  ;;  %v590_v27 = vadd.f32 %v589_v23, %v2412_v55  ;;  %v431_v28 = vpop.f32.mrb[7].mxu0  ;;  %v591_v29 = vpop.f32.mrb[7].mxu1 }
 0x101   :  { %v432_v30 = vadd.f32 %v431_v28, %v2410_v54  ;;  %v592_v31 = vadd.f32 %v591_v29, %v2410_v54  ;;  %v1056_v34 = vmax.f32 %v428_v20, 0.0  ;;  %v1088_v35 = vmax.f32 %v588_v21, 0.0 }
 0x102   :  { %v1758_v32 = vpack.c.bf16 %v430_v26, %v426_v24  ;;  %v1838_v33 = vpack.c.bf16 %v590_v27, %v586_v25 }
 0x103   :  { %v1057_v36 = vmax.f32 %v432_v30, 0.0  ;;  %v1089_v37 = vmax.f32 %v592_v31, 0.0 }
 0x104   :  { %2070 = vst [vmem:[%s2737_s3 + $0x8] sm:$0xff] %v1758_v32   ;;  %2086 = vst [vmem:[%s2737_s3 + $0x88] sm:$0xff] %v1838_v33  }
 0x105   :  { %v1918_v38 = vpack.c.bf16 %v1057_v36, %v1056_v34  ;;  %v1998_v39 = vpack.c.bf16 %v1089_v37, %v1088_v35  ;;  %v435_v40 = vpop.f32.mrb[8].mxu0  ;;  %v595_v41 = vpop.f32.mrb[8].mxu1 }
 0x106   :  { %v437_v42 = vpop.f32.mrb[9].mxu0  ;;  %v597_v43 = vpop.f32.mrb[9].mxu1  ;;  %v436_v48 = vadd.f32 %v435_v40, %v2412_v55  ;;  %v596_v49 = vadd.f32 %v595_v41, %v2412_v55 }
 0x107   :  { %2101 = vst [vmem:[%s2738_s4 + $0x8] sm:$0xff] %v1918_v38   ;;  %2117 = vst [vmem:[%s2738_s4 + $0x88] sm:$0xff] %v1998_v39   ;;  %v438_v44 = vadd.f32 %v437_v42, %v2410_v54  ;;  %v598_v45 = vadd.f32 %v597_v43, %v2410_v54  ;;  %v439_v46 = vpop.f32.mrb[10].mxu0  ;;  %v599_v47 = vpop.f32.mrb[10].mxu1 }
 0x108   :  { %v440_v50 = vadd.f32 %v439_v46, %v2412_v55  ;;  %v600_v51 = vadd.f32 %v599_v47, %v2412_v55  ;;  %v441_v52 = vpop.f32.mrb[11].mxu0  ;;  %v601_v53 = vpop.f32.mrb[11].mxu1 }
 0x109   :  { %v442_v56 = vadd.f32 %v441_v52, %v2410_v54  ;;  %v602_v57 = vadd.f32 %v601_v53, %v2410_v54  ;;  %v1058_v60 = vmax.f32 %v438_v44, 0.0  ;;  %v1090_v61 = vmax.f32 %v598_v45, 0.0 }
 0x10a   :  { %v1763_v58 = vpack.c.bf16 %v440_v50, %v436_v48  ;;  %v1843_v59 = vpack.c.bf16 %v600_v51, %v596_v49 }
 0x10b   :  { %v1059_v62 = vmax.f32 %v442_v56, 0.0  ;;  %v1091_v63 = vmax.f32 %v602_v57, 0.0 }
 0x10c   :  { %2071 = vst [vmem:[%s2737_s3 + $0x10] sm:$0xff] %v1763_v58   ;;  %2087 = vst [vmem:[%s2737_s3 + $0x90] sm:$0xff] %v1843_v59  }
 0x10d   :  { %v1923_v0 = vpack.c.bf16 %v1059_v62, %v1058_v60  ;;  %v2003_v1 = vpack.c.bf16 %v1091_v63, %v1090_v61  ;;  %v445_v2 = vpop.f32.mrb[12].mxu0  ;;  %v605_v3 = vpop.f32.mrb[12].mxu1 }
 0x10e   :  { %v447_v4 = vpop.f32.mrb[13].mxu0  ;;  %v607_v5 = vpop.f32.mrb[13].mxu1  ;;  %v446_v10 = vadd.f32 %v445_v2, %v2412_v55  ;;  %v606_v11 = vadd.f32 %v605_v3, %v2412_v55 }
 0x10f   :  { %2102 = vst [vmem:[%s2738_s4 + $0x10] sm:$0xff] %v1923_v0   ;;  %2118 = vst [vmem:[%s2738_s4 + $0x90] sm:$0xff] %v2003_v1   ;;  %v448_v6 = vadd.f32 %v447_v4, %v2410_v54  ;;  %v608_v7 = vadd.f32 %v607_v5, %v2410_v54  ;;  %v449_v8 = vpop.f32.mrb[14].mxu0  ;;  %v609_v9 = vpop.f32.mrb[14].mxu1 }
 0x110   :  { %v450_v12 = vadd.f32 %v449_v8, %v2412_v55  ;;  %v610_v13 = vadd.f32 %v609_v9, %v2412_v55  ;;  %v451_v14 = vpop.f32.mrb[15].mxu0  ;;  %v611_v15 = vpop.f32.mrb[15].mxu1 }
 0x111   :  { %v452_v16 = vadd.f32 %v451_v14, %v2410_v54  ;;  %v612_v17 = vadd.f32 %v611_v15, %v2410_v54  ;;  %v1060_v20 = vmax.f32 %v448_v6, 0.0  ;;  %v1092_v21 = vmax.f32 %v608_v7, 0.0 }
 0x112   :  { %v1768_v18 = vpack.c.bf16 %v450_v12, %v446_v10  ;;  %v1848_v19 = vpack.c.bf16 %v610_v13, %v606_v11 }
 0x113   :  { %v1061_v22 = vmax.f32 %v452_v16, 0.0  ;;  %v1093_v23 = vmax.f32 %v612_v17, 0.0 }
 0x114   :  { %2072 = vst [vmem:[%s2737_s3 + $0x18] sm:$0xff] %v1768_v18   ;;  %2088 = vst [vmem:[%s2737_s3 + $0x98] sm:$0xff] %v1848_v19  }
 0x115   :  { %v1928_v24 = vpack.c.bf16 %v1061_v22, %v1060_v20  ;;  %v2008_v25 = vpack.c.bf16 %v1093_v23, %v1092_v21  ;;  %v455_v26 = vpop.f32.mrb[16].mxu0  ;;  %v615_v27 = vpop.f32.mrb[16].mxu1 }
 0x116   :  { %v457_v28 = vpop.f32.mrb[17].mxu0  ;;  %v617_v29 = vpop.f32.mrb[17].mxu1  ;;  %v456_v34 = vadd.f32 %v455_v26, %v2412_v55  ;;  %v616_v35 = vadd.f32 %v615_v27, %v2412_v55 }
 0x117   :  { %2103 = vst [vmem:[%s2738_s4 + $0x18] sm:$0xff] %v1928_v24   ;;  %2119 = vst [vmem:[%s2738_s4 + $0x98] sm:$0xff] %v2008_v25   ;;  %v458_v30 = vadd.f32 %v457_v28, %v2410_v54  ;;  %v618_v31 = vadd.f32 %v617_v29, %v2410_v54  ;;  %v459_v32 = vpop.f32.mrb[18].mxu0  ;;  %v619_v33 = vpop.f32.mrb[18].mxu1 }
 0x118   :  { %v460_v36 = vadd.f32 %v459_v32, %v2412_v55  ;;  %v620_v37 = vadd.f32 %v619_v33, %v2412_v55  ;;  %v461_v38 = vpop.f32.mrb[19].mxu0  ;;  %v621_v39 = vpop.f32.mrb[19].mxu1 }
 0x119   :  { %v462_v40 = vadd.f32 %v461_v38, %v2410_v54  ;;  %v622_v41 = vadd.f32 %v621_v39, %v2410_v54  ;;  %v1062_v44 = vmax.f32 %v458_v30, 0.0  ;;  %v1094_v45 = vmax.f32 %v618_v31, 0.0 }
 0x11a   :  { %v1773_v42 = vpack.c.bf16 %v460_v36, %v456_v34  ;;  %v1853_v43 = vpack.c.bf16 %v620_v37, %v616_v35 }
 0x11b   :  { %v1063_v46 = vmax.f32 %v462_v40, 0.0  ;;  %v1095_v47 = vmax.f32 %v622_v41, 0.0 }
 0x11c   :  { %2073 = vst [vmem:[%s2737_s3 + $0x20] sm:$0xff] %v1773_v42   ;;  %2089 = vst [vmem:[%s2737_s3 + $0xa0] sm:$0xff] %v1853_v43  }
 0x11d   :  { %v1933_v48 = vpack.c.bf16 %v1063_v46, %v1062_v44  ;;  %v2013_v49 = vpack.c.bf16 %v1095_v47, %v1094_v45  ;;  %v465_v50 = vpop.f32.mrb[20].mxu0  ;;  %v625_v51 = vpop.f32.mrb[20].mxu1 }
 0x11e   :  { %v467_v52 = vpop.f32.mrb[21].mxu0  ;;  %v627_v53 = vpop.f32.mrb[21].mxu1  ;;  %v466_v60 = vadd.f32 %v465_v50, %v2412_v55  ;;  %v626_v61 = vadd.f32 %v625_v51, %v2412_v55 }
 0x11f   :  { %2104 = vst [vmem:[%s2738_s4 + $0x20] sm:$0xff] %v1933_v48   ;;  %2120 = vst [vmem:[%s2738_s4 + $0xa0] sm:$0xff] %v2013_v49   ;;  %v468_v56 = vadd.f32 %v467_v52, %v2410_v54  ;;  %v628_v57 = vadd.f32 %v627_v53, %v2410_v54  ;;  %v469_v58 = vpop.f32.mrb[22].mxu0  ;;  %v629_v59 = vpop.f32.mrb[22].mxu1 }
 0x120   :  { %v470_v62 = vadd.f32 %v469_v58, %v2412_v55  ;;  %v630_v63 = vadd.f32 %v629_v59, %v2412_v55  ;;  %v471_v0 = vpop.f32.mrb[23].mxu0  ;;  %v631_v1 = vpop.f32.mrb[23].mxu1 }
 0x121   :  { %v472_v2 = vadd.f32 %v471_v0, %v2410_v54  ;;  %v632_v3 = vadd.f32 %v631_v1, %v2410_v54  ;;  %v1064_v6 = vmax.f32 %v468_v56, 0.0  ;;  %v1096_v7 = vmax.f32 %v628_v57, 0.0 }
 0x122   :  { %v1778_v4 = vpack.c.bf16 %v470_v62, %v466_v60  ;;  %v1858_v5 = vpack.c.bf16 %v630_v63, %v626_v61 }
 0x123   :  { %v1065_v8 = vmax.f32 %v472_v2, 0.0  ;;  %v1097_v9 = vmax.f32 %v632_v3, 0.0 }
 0x124   :  { %2074 = vst [vmem:[%s2737_s3 + $0x28] sm:$0xff] %v1778_v4   ;;  %2090 = vst [vmem:[%s2737_s3 + $0xa8] sm:$0xff] %v1858_v5  }
 0x125   :  { %v1938_v10 = vpack.c.bf16 %v1065_v8, %v1064_v6  ;;  %v2018_v11 = vpack.c.bf16 %v1097_v9, %v1096_v7  ;;  %v475_v12 = vpop.f32.mrb[24].mxu0  ;;  %v635_v13 = vpop.f32.mrb[24].mxu1 }
 0x126   :  { %v477_v14 = vpop.f32.mrb[25].mxu0  ;;  %v637_v15 = vpop.f32.mrb[25].mxu1  ;;  %v476_v20 = vadd.f32 %v475_v12, %v2412_v55  ;;  %v636_v21 = vadd.f32 %v635_v13, %v2412_v55 }
 0x127   :  { %2105 = vst [vmem:[%s2738_s4 + $0x28] sm:$0xff] %v1938_v10   ;;  %2121 = vst [vmem:[%s2738_s4 + $0xa8] sm:$0xff] %v2018_v11   ;;  %v478_v16 = vadd.f32 %v477_v14, %v2410_v54  ;;  %v638_v17 = vadd.f32 %v637_v15, %v2410_v54  ;;  %v479_v18 = vpop.f32.mrb[26].mxu0  ;;  %v639_v19 = vpop.f32.mrb[26].mxu1 }
 0x128   :  { %v480_v22 = vadd.f32 %v479_v18, %v2412_v55  ;;  %v640_v23 = vadd.f32 %v639_v19, %v2412_v55  ;;  %v481_v24 = vpop.f32.mrb[27].mxu0  ;;  %v641_v25 = vpop.f32.mrb[27].mxu1 }
 0x129   :  { %v482_v26 = vadd.f32 %v481_v24, %v2410_v54  ;;  %v642_v27 = vadd.f32 %v641_v25, %v2410_v54  ;;  %v1066_v30 = vmax.f32 %v478_v16, 0.0  ;;  %v1098_v31 = vmax.f32 %v638_v17, 0.0 }
 0x12a   :  { %v1783_v28 = vpack.c.bf16 %v480_v22, %v476_v20  ;;  %v1863_v29 = vpack.c.bf16 %v640_v23, %v636_v21 }
 0x12b   :  { %v1067_v32 = vmax.f32 %v482_v26, 0.0  ;;  %v1099_v33 = vmax.f32 %v642_v27, 0.0 }
 0x12c   :  { %2075 = vst [vmem:[%s2737_s3 + $0x30] sm:$0xff] %v1783_v28   ;;  %2091 = vst [vmem:[%s2737_s3 + $0xb0] sm:$0xff] %v1863_v29  }
 0x12d   :  { %v1943_v34 = vpack.c.bf16 %v1067_v32, %v1066_v30  ;;  %v2023_v35 = vpack.c.bf16 %v1099_v33, %v1098_v31  ;;  %v485_v36 = vpop.f32.mrb[28].mxu0  ;;  %v645_v37 = vpop.f32.mrb[28].mxu1 }
 0x12e   :  { %v487_v38 = vpop.f32.mrb[29].mxu0  ;;  %v647_v39 = vpop.f32.mrb[29].mxu1  ;;  %v486_v44 = vadd.f32 %v485_v36, %v2412_v55  ;;  %v646_v45 = vadd.f32 %v645_v37, %v2412_v55 }
 0x12f   :  { %2106 = vst [vmem:[%s2738_s4 + $0x30] sm:$0xff] %v1943_v34   ;;  %2122 = vst [vmem:[%s2738_s4 + $0xb0] sm:$0xff] %v2023_v35   ;;  %v488_v40 = vadd.f32 %v487_v38, %v2410_v54  ;;  %v648_v41 = vadd.f32 %v647_v39, %v2410_v54  ;;  %v489_v42 = vpop.f32.mrb[30].mxu0  ;;  %v649_v43 = vpop.f32.mrb[30].mxu1 }
 0x130   :  { %v490_v46 = vadd.f32 %v489_v42, %v2412_v55  ;;  %v650_v47 = vadd.f32 %v649_v43, %v2412_v55  ;;  %v491_v48 = vpop.f32.mrb[31].mxu0  ;;  %v651_v49 = vpop.f32.mrb[31].mxu1 }
 0x131   :  { %v492_v50 = vadd.f32 %v491_v48, %v2410_v54  ;;  %v652_v51 = vadd.f32 %v651_v49, %v2410_v54  ;;  %v1068_v56 = vmax.f32 %v488_v40, 0.0  ;;  %v1100_v57 = vmax.f32 %v648_v41, 0.0 }
 0x132   :  { %v1788_v52 = vpack.c.bf16 %v490_v46, %v486_v44  ;;  %v1868_v53 = vpack.c.bf16 %v650_v47, %v646_v45 }
 0x133   :  { %v1069_v58 = vmax.f32 %v492_v50, 0.0  ;;  %v1101_v59 = vmax.f32 %v652_v51, 0.0 }
 0x134   :  { %2076 = vst [vmem:[%s2737_s3 + $0x38] sm:$0xff] %v1788_v52   ;;  %2092 = vst [vmem:[%s2737_s3 + $0xb8] sm:$0xff] %v1868_v53  }
 0x135   :  { %v1948_v60 = vpack.c.bf16 %v1069_v58, %v1068_v56  ;;  %v2028_v61 = vpack.c.bf16 %v1101_v59, %v1100_v57  ;;  %v495_v62 = vpop.f32.mrb[32].mxu0  ;;  %v655_v63 = vpop.f32.mrb[32].mxu1 }
 0x136   :  { %v497_v0 = vpop.f32.mrb[33].mxu0  ;;  %v657_v1 = vpop.f32.mrb[33].mxu1  ;;  %v496_v6 = vadd.f32 %v495_v62, %v2412_v55  ;;  %v656_v7 = vadd.f32 %v655_v63, %v2412_v55 }
 0x137   :  { %2107 = vst [vmem:[%s2738_s4 + $0x38] sm:$0xff] %v1948_v60   ;;  %2123 = vst [vmem:[%s2738_s4 + $0xb8] sm:$0xff] %v2028_v61   ;;  %v498_v2 = vadd.f32 %v497_v0, %v2410_v54  ;;  %v658_v3 = vadd.f32 %v657_v1, %v2410_v54  ;;  %v499_v4 = vpop.f32.mrb[34].mxu0  ;;  %v659_v5 = vpop.f32.mrb[34].mxu1 }
 0x138   :  { %v500_v8 = vadd.f32 %v499_v4, %v2412_v55  ;;  %v660_v9 = vadd.f32 %v659_v5, %v2412_v55  ;;  %v501_v10 = vpop.f32.mrb[35].mxu0  ;;  %v661_v11 = vpop.f32.mrb[35].mxu1 }
 0x139   :  { %v502_v12 = vadd.f32 %v501_v10, %v2410_v54  ;;  %v662_v13 = vadd.f32 %v661_v11, %v2410_v54  ;;  %v1070_v16 = vmax.f32 %v498_v2, 0.0  ;;  %v1102_v17 = vmax.f32 %v658_v3, 0.0 }
 0x13a   :  { %v1793_v14 = vpack.c.bf16 %v500_v8, %v496_v6  ;;  %v1873_v15 = vpack.c.bf16 %v660_v9, %v656_v7 }
 0x13b   :  { %v1071_v18 = vmax.f32 %v502_v12, 0.0  ;;  %v1103_v19 = vmax.f32 %v662_v13, 0.0 }
 0x13c   :  { %2077 = vst [vmem:[%s2737_s3 + $0x40] sm:$0xff] %v1793_v14   ;;  %2093 = vst [vmem:[%s2737_s3 + $0xc0] sm:$0xff] %v1873_v15  }
 0x13d   :  { %v1953_v20 = vpack.c.bf16 %v1071_v18, %v1070_v16  ;;  %v2033_v21 = vpack.c.bf16 %v1103_v19, %v1102_v17  ;;  %v505_v22 = vpop.f32.mrb[36].mxu0  ;;  %v665_v23 = vpop.f32.mrb[36].mxu1 }
 0x13e   :  { %v507_v24 = vpop.f32.mrb[37].mxu0  ;;  %v667_v25 = vpop.f32.mrb[37].mxu1  ;;  %v506_v30 = vadd.f32 %v505_v22, %v2412_v55  ;;  %v666_v31 = vadd.f32 %v665_v23, %v2412_v55 }
 0x13f   :  { %2108 = vst [vmem:[%s2738_s4 + $0x40] sm:$0xff] %v1953_v20   ;;  %2124 = vst [vmem:[%s2738_s4 + $0xc0] sm:$0xff] %v2033_v21   ;;  %v508_v26 = vadd.f32 %v507_v24, %v2410_v54  ;;  %v668_v27 = vadd.f32 %v667_v25, %v2410_v54  ;;  %v509_v28 = vpop.f32.mrb[38].mxu0  ;;  %v669_v29 = vpop.f32.mrb[38].mxu1 }
 0x140   :  { %v510_v32 = vadd.f32 %v509_v28, %v2412_v55  ;;  %v670_v33 = vadd.f32 %v669_v29, %v2412_v55  ;;  %v511_v34 = vpop.f32.mrb[39].mxu0  ;;  %v671_v35 = vpop.f32.mrb[39].mxu1 }
 0x141   :  { %v512_v36 = vadd.f32 %v511_v34, %v2410_v54  ;;  %v672_v37 = vadd.f32 %v671_v35, %v2410_v54  ;;  %v1072_v40 = vmax.f32 %v508_v26, 0.0  ;;  %v1104_v41 = vmax.f32 %v668_v27, 0.0 }
 0x142   :  { %v1798_v38 = vpack.c.bf16 %v510_v32, %v506_v30  ;;  %v1878_v39 = vpack.c.bf16 %v670_v33, %v666_v31 }
 0x143   :  { %v1073_v42 = vmax.f32 %v512_v36, 0.0  ;;  %v1105_v43 = vmax.f32 %v672_v37, 0.0 }
 0x144   :  { %2078 = vst [vmem:[%s2737_s3 + $0x48] sm:$0xff] %v1798_v38   ;;  %2094 = vst [vmem:[%s2737_s3 + $0xc8] sm:$0xff] %v1878_v39  }
 0x145   :  { %v1958_v44 = vpack.c.bf16 %v1073_v42, %v1072_v40  ;;  %v2038_v45 = vpack.c.bf16 %v1105_v43, %v1104_v41  ;;  %v515_v46 = vpop.f32.mrb[40].mxu0  ;;  %v675_v47 = vpop.f32.mrb[40].mxu1 }
 0x146   :  { %v517_v48 = vpop.f32.mrb[41].mxu0  ;;  %v677_v49 = vpop.f32.mrb[41].mxu1  ;;  %v516_v56 = vadd.f32 %v515_v46, %v2412_v55  ;;  %v676_v57 = vadd.f32 %v675_v47, %v2412_v55 }
 0x147   :  { %2109 = vst [vmem:[%s2738_s4 + $0x48] sm:$0xff] %v1958_v44   ;;  %2125 = vst [vmem:[%s2738_s4 + $0xc8] sm:$0xff] %v2038_v45   ;;  %v518_v50 = vadd.f32 %v517_v48, %v2410_v54  ;;  %v678_v51 = vadd.f32 %v677_v49, %v2410_v54  ;;  %v519_v52 = vpop.f32.mrb[42].mxu0  ;;  %v679_v53 = vpop.f32.mrb[42].mxu1 }
 0x148   :  { %v520_v58 = vadd.f32 %v519_v52, %v2412_v55  ;;  %v680_v59 = vadd.f32 %v679_v53, %v2412_v55  ;;  %v521_v60 = vpop.f32.mrb[43].mxu0  ;;  %v681_v61 = vpop.f32.mrb[43].mxu1 }
 0x149   :  { %v522_v62 = vadd.f32 %v521_v60, %v2410_v54  ;;  %v682_v63 = vadd.f32 %v681_v61, %v2410_v54  ;;  %v1074_v2 = vmax.f32 %v518_v50, 0.0  ;;  %v1106_v3 = vmax.f32 %v678_v51, 0.0 }
 0x14a   :  { %v1803_v0 = vpack.c.bf16 %v520_v58, %v516_v56  ;;  %v1883_v1 = vpack.c.bf16 %v680_v59, %v676_v57 }
 0x14b   :  { %v1075_v4 = vmax.f32 %v522_v62, 0.0  ;;  %v1107_v5 = vmax.f32 %v682_v63, 0.0 }
 0x14c   :  { %2079 = vst [vmem:[%s2737_s3 + $0x50] sm:$0xff] %v1803_v0   ;;  %2095 = vst [vmem:[%s2737_s3 + $0xd0] sm:$0xff] %v1883_v1  }
 0x14d   :  { %v1963_v6 = vpack.c.bf16 %v1075_v4, %v1074_v2  ;;  %v2043_v7 = vpack.c.bf16 %v1107_v5, %v1106_v3  ;;  %v525_v8 = vpop.f32.mrb[44].mxu0  ;;  %v685_v9 = vpop.f32.mrb[44].mxu1 }
 0x14e   :  { %v527_v10 = vpop.f32.mrb[45].mxu0  ;;  %v687_v11 = vpop.f32.mrb[45].mxu1  ;;  %v526_v16 = vadd.f32 %v525_v8, %v2412_v55  ;;  %v686_v17 = vadd.f32 %v685_v9, %v2412_v55 }
 0x14f   :  { %2110 = vst [vmem:[%s2738_s4 + $0x50] sm:$0xff] %v1963_v6   ;;  %2126 = vst [vmem:[%s2738_s4 + $0xd0] sm:$0xff] %v2043_v7   ;;  %v528_v12 = vadd.f32 %v527_v10, %v2410_v54  ;;  %v688_v13 = vadd.f32 %v687_v11, %v2410_v54  ;;  %v529_v14 = vpop.f32.mrb[46].mxu0  ;;  %v689_v15 = vpop.f32.mrb[46].mxu1 }
 0x150   :  { %v530_v18 = vadd.f32 %v529_v14, %v2412_v55  ;;  %v690_v19 = vadd.f32 %v689_v15, %v2412_v55  ;;  %v531_v20 = vpop.f32.mrb[47].mxu0  ;;  %v691_v21 = vpop.f32.mrb[47].mxu1 }
 0x151   :  { %v532_v22 = vadd.f32 %v531_v20, %v2410_v54  ;;  %v692_v23 = vadd.f32 %v691_v21, %v2410_v54  ;;  %v1076_v26 = vmax.f32 %v528_v12, 0.0  ;;  %v1108_v27 = vmax.f32 %v688_v13, 0.0 }
 0x152   :  { %v1808_v24 = vpack.c.bf16 %v530_v18, %v526_v16  ;;  %v1888_v25 = vpack.c.bf16 %v690_v19, %v686_v17 }
 0x153   :  { %v1077_v28 = vmax.f32 %v532_v22, 0.0  ;;  %v1109_v29 = vmax.f32 %v692_v23, 0.0 }
 0x154   :  { %2080 = vst [vmem:[%s2737_s3 + $0x58] sm:$0xff] %v1808_v24   ;;  %2096 = vst [vmem:[%s2737_s3 + $0xd8] sm:$0xff] %v1888_v25  }
 0x155   :  { %v1968_v30 = vpack.c.bf16 %v1077_v28, %v1076_v26  ;;  %v2048_v31 = vpack.c.bf16 %v1109_v29, %v1108_v27  ;;  %v535_v32 = vpop.f32.mrb[48].mxu0  ;;  %v695_v33 = vpop.f32.mrb[48].mxu1 }
 0x156   :  { %v537_v34 = vpop.f32.mrb[49].mxu0  ;;  %v697_v35 = vpop.f32.mrb[49].mxu1  ;;  %v536_v40 = vadd.f32 %v535_v32, %v2412_v55  ;;  %v696_v41 = vadd.f32 %v695_v33, %v2412_v55 }
 0x157   :  { %2111 = vst [vmem:[%s2738_s4 + $0x58] sm:$0xff] %v1968_v30   ;;  %2127 = vst [vmem:[%s2738_s4 + $0xd8] sm:$0xff] %v2048_v31   ;;  %v538_v36 = vadd.f32 %v537_v34, %v2410_v54  ;;  %v698_v37 = vadd.f32 %v697_v35, %v2410_v54  ;;  %v539_v38 = vpop.f32.mrb[50].mxu0  ;;  %v699_v39 = vpop.f32.mrb[50].mxu1 }
 0x158   :  { %v540_v42 = vadd.f32 %v539_v38, %v2412_v55  ;;  %v700_v43 = vadd.f32 %v699_v39, %v2412_v55  ;;  %v541_v44 = vpop.f32.mrb[51].mxu0  ;;  %v701_v45 = vpop.f32.mrb[51].mxu1 }
 0x159   :  { %v542_v46 = vadd.f32 %v541_v44, %v2410_v54  ;;  %v702_v47 = vadd.f32 %v701_v45, %v2410_v54  ;;  %v1078_v50 = vmax.f32 %v538_v36, 0.0  ;;  %v1110_v51 = vmax.f32 %v698_v37, 0.0 }
 0x15a   :  { %v1813_v48 = vpack.c.bf16 %v540_v42, %v536_v40  ;;  %v1893_v49 = vpack.c.bf16 %v700_v43, %v696_v41 }
 0x15b   :  { %v1079_v52 = vmax.f32 %v542_v46, 0.0  ;;  %v1111_v53 = vmax.f32 %v702_v47, 0.0 }
 0x15c   :  { %2081 = vst [vmem:[%s2737_s3 + $0x60] sm:$0xff] %v1813_v48   ;;  %2097 = vst [vmem:[%s2737_s3 + $0xe0] sm:$0xff] %v1893_v49  }
 0x15d   :  { %v1973_v56 = vpack.c.bf16 %v1079_v52, %v1078_v50  ;;  %v2053_v57 = vpack.c.bf16 %v1111_v53, %v1110_v51  ;;  %v545_v58 = vpop.f32.mrb[52].mxu0  ;;  %v705_v59 = vpop.f32.mrb[52].mxu1 }
 0x15e   :  { %v547_v60 = vpop.f32.mrb[53].mxu0  ;;  %v707_v61 = vpop.f32.mrb[53].mxu1  ;;  %v546_v2 = vadd.f32 %v545_v58, %v2412_v55  ;;  %v706_v3 = vadd.f32 %v705_v59, %v2412_v55 }
 0x15f   :  { %2112 = vst [vmem:[%s2738_s4 + $0x60] sm:$0xff] %v1973_v56   ;;  %2128 = vst [vmem:[%s2738_s4 + $0xe0] sm:$0xff] %v2053_v57   ;;  %v548_v62 = vadd.f32 %v547_v60, %v2410_v54  ;;  %v708_v63 = vadd.f32 %v707_v61, %v2410_v54  ;;  %v549_v0 = vpop.f32.mrb[54].mxu0  ;;  %v709_v1 = vpop.f32.mrb[54].mxu1 }
 0x160   :  { %v550_v4 = vadd.f32 %v549_v0, %v2412_v55  ;;  %v710_v5 = vadd.f32 %v709_v1, %v2412_v55  ;;  %v551_v6 = vpop.f32.mrb[55].mxu0  ;;  %v711_v7 = vpop.f32.mrb[55].mxu1 }
 0x161   :  { %v552_v8 = vadd.f32 %v551_v6, %v2410_v54  ;;  %v712_v9 = vadd.f32 %v711_v7, %v2410_v54  ;;  %v1080_v12 = vmax.f32 %v548_v62, 0.0  ;;  %v1112_v13 = vmax.f32 %v708_v63, 0.0 }
 0x162   :  { %v1818_v10 = vpack.c.bf16 %v550_v4, %v546_v2  ;;  %v1898_v11 = vpack.c.bf16 %v710_v5, %v706_v3 }
 0x163   :  { %v1081_v14 = vmax.f32 %v552_v8, 0.0  ;;  %v1113_v15 = vmax.f32 %v712_v9, 0.0 }
 0x164   :  { %2082 = vst [vmem:[%s2737_s3 + $0x68] sm:$0xff] %v1818_v10   ;;  %2098 = vst [vmem:[%s2737_s3 + $0xe8] sm:$0xff] %v1898_v11  }
 0x165   :  { %v1978_v16 = vpack.c.bf16 %v1081_v14, %v1080_v12  ;;  %v2058_v17 = vpack.c.bf16 %v1113_v15, %v1112_v13  ;;  %v555_v18 = vpop.f32.mrb[56].mxu0  ;;  %v715_v19 = vpop.f32.mrb[56].mxu1 }
 0x166   :  { %v557_v20 = vpop.f32.mrb[57].mxu0  ;;  %v717_v21 = vpop.f32.mrb[57].mxu1  ;;  %v556_v26 = vadd.f32 %v555_v18, %v2412_v55  ;;  %v716_v27 = vadd.f32 %v715_v19, %v2412_v55 }
 0x167   :  { %2113 = vst [vmem:[%s2738_s4 + $0x68] sm:$0xff] %v1978_v16   ;;  %2129 = vst [vmem:[%s2738_s4 + $0xe8] sm:$0xff] %v2058_v17   ;;  %v558_v22 = vadd.f32 %v557_v20, %v2410_v54  ;;  %v718_v23 = vadd.f32 %v717_v21, %v2410_v54  ;;  %v559_v24 = vpop.f32.mrb[58].mxu0  ;;  %v719_v25 = vpop.f32.mrb[58].mxu1 }
 0x168   :  { %v560_v28 = vadd.f32 %v559_v24, %v2412_v55  ;;  %v720_v29 = vadd.f32 %v719_v25, %v2412_v55  ;;  %v561_v30 = vpop.f32.mrb[59].mxu0  ;;  %v721_v31 = vpop.f32.mrb[59].mxu1 }
 0x169   :  { %v562_v32 = vadd.f32 %v561_v30, %v2410_v54  ;;  %v722_v33 = vadd.f32 %v721_v31, %v2410_v54  ;;  %v1082_v36 = vmax.f32 %v558_v22, 0.0  ;;  %v1114_v37 = vmax.f32 %v718_v23, 0.0 }
 0x16a   :  { %v1823_v34 = vpack.c.bf16 %v560_v28, %v556_v26  ;;  %v1903_v35 = vpack.c.bf16 %v720_v29, %v716_v27 }
 0x16b   :  { %v1083_v38 = vmax.f32 %v562_v32, 0.0  ;;  %v1115_v39 = vmax.f32 %v722_v33, 0.0 }
 0x16c   :  { %2083 = vst [vmem:[%s2737_s3 + $0x70] sm:$0xff] %v1823_v34   ;;  %2099 = vst [vmem:[%s2737_s3 + $0xf0] sm:$0xff] %v1903_v35  }
 0x16d   :  { %v1983_v40 = vpack.c.bf16 %v1083_v38, %v1082_v36  ;;  %v2063_v41 = vpack.c.bf16 %v1115_v39, %v1114_v37  ;;  %v565_v42 = vpop.f32.mrb[60].mxu0  ;;  %v725_v43 = vpop.f32.mrb[60].mxu1 }
 0x16e   :  { %v567_v44 = vpop.f32.mrb[61].mxu0  ;;  %v727_v45 = vpop.f32.mrb[61].mxu1  ;;  %v566_v50 = vadd.f32 %v565_v42, %v2412_v55  ;;  %v726_v51 = vadd.f32 %v725_v43, %v2412_v55 }
 0x16f   :  { %2114 = vst [vmem:[%s2738_s4 + $0x70] sm:$0xff] %v1983_v40   ;;  %2130 = vst [vmem:[%s2738_s4 + $0xf0] sm:$0xff] %v2063_v41   ;;  %v568_v46 = vadd.f32 %v567_v44, %v2410_v54  ;;  %v728_v47 = vadd.f32 %v727_v45, %v2410_v54  ;;  %v569_v48 = vpop.f32.mrb[62].mxu0  ;;  %v729_v49 = vpop.f32.mrb[62].mxu1 }
 0x170   :  { %v570_v52 = vadd.f32 %v569_v48, %v2412_v55  ;;  %v730_v53 = vadd.f32 %v729_v49, %v2412_v55  ;;  %v571_v56 = vpop.f32.mrb[63].mxu0  ;;  %v731_v57 = vpop.f32.mrb[63].mxu1 }
 0x171   :  { %v572_v58 = vadd.f32 %v571_v56, %v2410_v54  ;;  %v732_v59 = vadd.f32 %v731_v57, %v2410_v54  ;;  %v1084_v62 = vmax.f32 %v568_v46, 0.0  ;;  %v1116_v63 = vmax.f32 %v728_v47, 0.0 }
 0x172   :  { %v1828_v60 = vpack.c.bf16 %v570_v52, %v566_v50  ;;  %v1908_v61 = vpack.c.bf16 %v730_v53, %v726_v51 }
 0x173   :  { %v1085_v0 = vmax.f32 %v572_v58, 0.0  ;;  %v1117_v1 = vmax.f32 %v732_v59, 0.0 }
 0x174   :  { %2084 = vst [vmem:[%s2737_s3 + $0x78] sm:$0xff] %v1828_v60   ;;  %2100 = vst [vmem:[%s2737_s3 + $0xf8] sm:$0xff] %v1908_v61  }
 0x175   :  { %v1988_v55 = vpack.c.bf16 %v1085_v0, %v1084_v62  ;;  %v2068_v2 = vpack.c.bf16 %v1117_v1, %v1116_v63 }
 0x177   :  { %2115 = vst [vmem:[%s2738_s4 + $0x78] sm:$0xff] %v1988_v55   ;;  %2131 = vst [vmem:[%s2738_s4 + $0xf8] sm:$0xff] %v2068_v2  }

// kernel: gcn_forward.9
= control target key start
LH: loop header
LB: loop body
LE: loop exit
PB: predicated region body
PF: predicated region fallthrough
CT: control target
= control target key end

     0   :  { %s832_s0 = inlined_call_operand.vmem [shape: f32[512,128], index: 0, kind: input, shape index: {}]   ;;  %s833_s1 = inlined_call_operand.vmem [shape: f32[1,128], index: 1, kind: input, shape index: {}]   ;;  %s834_s2 = inlined_call_operand.vmem [shape: f32[1,128], index: 2, kind: input, shape index: {}]   ;;  %s835_s3 = inlined_call_operand.vmem [shape: f32[512,128], index: 3, kind: output, shape index: {}]  }
   0x1   :  { %v14_v0 = vld [vmem:[%s832_s0] sm:$0xff]  ;;  %v15_v4 = vld [vmem:[%s832_s0 + $0x8] sm:$0xff]  ;;  %v16_v5 = vld [vmem:[%s832_s0 + $0x10] sm:$0xff] }
   0x2   :  { %v316_v1 = vld [vmem:[%s833_s1] ss:$0 sm:$0xff]  ;;  %v17_v6 = vld [vmem:[%s832_s0 + $0x18] sm:$0xff]  ;;  %v19_v11 = vld [vmem:[%s832_s0 + $0x28] sm:$0xff] }
   0x3   :  { %v321_v2 = vld [vmem:[%s834_s2] ss:$0 sm:$0xff]  ;;  %v85_v3 = vmul.f32 %v316_v1, %v14_v0  ;;  %v86_v7 = vmul.f32 %v316_v1, %v15_v4  ;;  %v87_v8 = vmul.f32 %v316_v1, %v16_v5  ;;  %v88_v9 = vmul.f32 %v316_v1, %v17_v6  ;;  %v20_v12 = vld [vmem:[%s832_s0 + $0x30] sm:$0xff]  ;;  %v21_v17 = vld [vmem:[%s832_s0 + $0x38] sm:$0xff] }
   0x4   :  { %v18_v10 = vld [vmem:[%s832_s0 + $0x20] sm:$0xff]  ;;  %v90_v15 = vmul.f32 %v316_v1, %v19_v11  ;;  %v91_v16 = vmul.f32 %v316_v1, %v20_v12  ;;  %v23_v19 = vld [vmem:[%s832_s0 + $0x48] sm:$0xff]  ;;  %v92_v23 = vmul.f32 %v316_v1, %v21_v17  ;;  %v24_v24 = vld [vmem:[%s832_s0 + $0x50] sm:$0xff] }
   0x5   :  { %v156_v13 = vadd.f32 %v321_v2, %v85_v3  ;;  %v89_v14 = vmul.f32 %v316_v1, %v18_v10  ;;  %v22_v18 = vld [vmem:[%s832_s0 + $0x40] sm:$0xff]  ;;  %v157_v20 = vadd.f32 %v321_v2, %v86_v7  ;;  %v158_v21 = vadd.f32 %v321_v2, %v87_v8  ;;  %v25_v25 = vld [vmem:[%s832_s0 + $0x58] sm:$0xff]  ;;  %v27_v31 = vld [vmem:[%s832_s0 + $0x68] sm:$0xff] }
   0x6   :  { %v159_v22 = vadd.f32 %v321_v2, %v88_v9  ;;  %v26_v26 = vld [vmem:[%s832_s0 + $0x60] sm:$0xff]  ;;  %v161_v28 = vadd.f32 %v321_v2, %v90_v15  ;;  %v162_v29 = vadd.f32 %v321_v2, %v91_v16  ;;  %v93_v30 = vmul.f32 %v316_v1, %v22_v18  ;;  %v28_v32 = vld [vmem:[%s832_s0 + $0x70] sm:$0xff]  ;;  %v29_v33 = vld [vmem:[%s832_s0 + $0x78] sm:$0xff] }
   0x7   :  { %220 = vst [vmem:[%s835_s3] sm:$0xff] %v156_v13  ;;  %v160_v27 = vadd.f32 %v321_v2, %v89_v14  ;;  %221 = vst [vmem:[%s835_s3 + $0x8] sm:$0xff] %v157_v20  ;;  %v163_v34 = vadd.f32 %v321_v2, %v92_v23  ;;  %v94_v35 = vmul.f32 %v316_v1, %v23_v19  ;;  %v30_v38 = vld [vmem:[%s832_s0 + $0x80] sm:$0xff]  ;;  %v31_v43 = vld [vmem:[%s832_s0 + $0x88] sm:$0xff] }
   0x8   :  { %222 = vst [vmem:[%s835_s3 + $0x10] sm:$0xff] %v158_v21  ;;  %223 = vst [vmem:[%s835_s3 + $0x18] sm:$0xff] %v159_v22  ;;  %v95_v36 = vmul.f32 %v316_v1, %v24_v24  ;;  %v96_v37 = vmul.f32 %v316_v1, %v25_v25  ;;  %v164_v39 = vadd.f32 %v321_v2, %v93_v30  ;;  %v32_v44 = vld [vmem:[%s832_s0 + $0x90] sm:$0xff]  ;;  %v33_v45 = vld [vmem:[%s832_s0 + $0x98] sm:$0xff] }
   0x9   :  { %224 = vst [vmem:[%s835_s3 + $0x20] sm:$0xff] %v160_v27  ;;  %225 = vst [vmem:[%s835_s3 + $0x28] sm:$0xff] %v161_v28  ;;  %v97_v40 = vmul.f32 %v316_v1, %v26_v26  ;;  %v98_v41 = vmul.f32 %v316_v1, %v27_v31  ;;  %v99_v42 = vmul.f32 %v316_v1, %v28_v32  ;;  %v34_v50 = vld [vmem:[%s832_s0 + $0xa0] sm:$0xff]  ;;  %v35_v51 = vld [vmem:[%s832_s0 + $0xa8] sm:$0xff] }
   0xa   :  { %226 = vst [vmem:[%s835_s3 + $0x30] sm:$0xff] %v162_v29  ;;  %227 = vst [vmem:[%s835_s3 + $0x38] sm:$0xff] %v163_v34  ;;  %v165_v46 = vadd.f32 %v321_v2, %v94_v35  ;;  %v166_v47 = vadd.f32 %v321_v2, %v95_v36  ;;  %v167_v48 = vadd.f32 %v321_v2, %v96_v37  ;;  %v36_v52 = vld [vmem:[%s832_s0 + $0xb0] sm:$0xff]  ;;  %v37_v57 = vld [vmem:[%s832_s0 + $0xb8] sm:$0xff] }
   0xb   :  { %v100_v49 = vmul.f32 %v316_v1, %v29_v33  ;;  %228 = vst [vmem:[%s835_s3 + $0x40] sm:$0xff] %v164_v39  ;;  %v168_v53 = vadd.f32 %v321_v2, %v97_v40  ;;  %v169_v54 = vadd.f32 %v321_v2, %v98_v41  ;;  %v170_v55 = vadd.f32 %v321_v2, %v99_v42  ;;  %v38_v62 = vld [vmem:[%s832_s0 + $0xc0] sm:$0xff]  ;;  %v39_v5 = vld [vmem:[%s832_s0 + $0xc8] sm:$0xff]  ;;  %v40_v6 = vld [vmem:[%s832_s0 + $0xd0] sm:$0xff] }
   0xc   :  { %v101_v56 = vmul.f32 %v316_v1, %v30_v38  ;;  %229 = vst [vmem:[%s835_s3 + $0x48] sm:$0xff] %v165_v46  ;;  %230 = vst [vmem:[%s835_s3 + $0x50] sm:$0xff] %v166_v47  ;;  %v102_v59 = vmul.f32 %v316_v1, %v31_v43  ;;  %v103_v60 = vmul.f32 %v316_v1, %v32_v44  ;;  %v41_v7 = vld [vmem:[%s832_s0 + $0xd8] sm:$0xff]  ;;  %v42_v12 = vld [vmem:[%s832_s0 + $0xe0] sm:$0xff] }
   0xd   :  { %231 = vst [vmem:[%s835_s3 + $0x58] sm:$0xff] %v167_v48  ;;  %v171_v58 = vadd.f32 %v321_v2, %v100_v49  ;;  %v104_v61 = vmul.f32 %v316_v1, %v33_v45  ;;  %232 = vst [vmem:[%s835_s3 + $0x60] sm:$0xff] %v168_v53  ;;  %v105_v0 = vmul.f32 %v316_v1, %v34_v50  ;;  %v43_v13 = vld [vmem:[%s832_s0 + $0xe8] sm:$0xff]  ;;  %v44_v14 = vld [vmem:[%s832_s0 + $0xf0] sm:$0xff] }
   0xe   :  { %233 = vst [vmem:[%s835_s3 + $0x68] sm:$0xff] %v169_v54  ;;  %234 = vst [vmem:[%s835_s3 + $0x70] sm:$0xff] %v170_v55  ;;  %v172_v63 = vadd.f32 %v321_v2, %v101_v56  ;;  %v106_v3 = vmul.f32 %v316_v1, %v35_v51  ;;  %v107_v4 = vmul.f32 %v316_v1, %v36_v52  ;;  %v45_v19 = vld [vmem:[%s832_s0 + $0xf8] sm:$0xff]  ;;  %v46_v24 = vld [vmem:[%s832_s0 + $0x100] sm:$0xff] }
   0xf   :  { %235 = vst [vmem:[%s835_s3 + $0x78] sm:$0xff] %v171_v58  ;;  %v173_v8 = vadd.f32 %v321_v2, %v102_v59  ;;  %v174_v9 = vadd.f32 %v321_v2, %v103_v60  ;;  %v175_v10 = vadd.f32 %v321_v2, %v104_v61  ;;  %v108_v11 = vmul.f32 %v316_v1, %v37_v57  ;;  %v47_v29 = vld [vmem:[%s832_s0 + $0x108] sm:$0xff]  ;;  %v48_v30 = vld [vmem:[%s832_s0 + $0x110] sm:$0xff]  ;;  %v49_v31 = vld [vmem:[%s832_s0 + $0x118] sm:$0xff] }
  0x10   :  { %236 = vst [vmem:[%s835_s3 + $0x80] sm:$0xff] %v172_v63  ;;  %v176_v15 = vadd.f32 %v321_v2, %v105_v0  ;;  %v177_v16 = vadd.f32 %v321_v2, %v106_v3  ;;  %v178_v17 = vadd.f32 %v321_v2, %v107_v4  ;;  %v109_v18 = vmul.f32 %v316_v1, %v38_v62  ;;  %v50_v36 = vld [vmem:[%s832_s0 + $0x120] sm:$0xff]  ;;  %v51_v37 = vld [vmem:[%s832_s0 + $0x128] sm:$0xff]  ;;  %v52_v38 = vld [vmem:[%s832_s0 + $0x130] sm:$0xff] }
  0x11   :  { %237 = vst [vmem:[%s835_s3 + $0x88] sm:$0xff] %v173_v8  ;;  %238 = vst [vmem:[%s835_s3 + $0x90] sm:$0xff] %v174_v9  ;;  %v179_v20 = vadd.f32 %v321_v2, %v108_v11  ;;  %v110_v21 = vmul.f32 %v316_v1, %v39_v5  ;;  %v111_v22 = vmul.f32 %v316_v1, %v40_v6  ;;  %v53_v43 = vld [vmem:[%s832_s0 + $0x138] sm:$0xff]  ;;  %v54_v48 = vld [vmem:[%s832_s0 + $0x140] sm:$0xff] }
  0x12   :  { %239 = vst [vmem:[%s835_s3 + $0x98] sm:$0xff] %v175_v10  ;;  %v112_v23 = vmul.f32 %v316_v1, %v41_v7  ;;  %240 = vst [vmem:[%s835_s3 + $0xa0] sm:$0xff] %v176_v15  ;;  %v180_v25 = vadd.f32 %v321_v2, %v109_v18  ;;  %v113_v26 = vmul.f32 %v316_v1, %v42_v12  ;;  %v55_v53 = vld [vmem:[%s832_s0 + $0x148] sm:$0xff]  ;;  %v56_v54 = vld [vmem:[%s832_s0 + $0x150] sm:$0xff] }
  0x13   :  { %241 = vst [vmem:[%s835_s3 + $0xa8] sm:$0xff] %v177_v16  ;;  %242 = vst [vmem:[%s835_s3 + $0xb0] sm:$0xff] %v178_v17  ;;  %v114_v27 = vmul.f32 %v316_v1, %v43_v13  ;;  %v115_v28 = vmul.f32 %v316_v1, %v44_v14  ;;  %v181_v32 = vadd.f32 %v321_v2, %v110_v21  ;;  %v57_v55 = vld [vmem:[%s832_s0 + $0x158] sm:$0xff]  ;;  %v58_v60 = vld [vmem:[%s832_s0 + $0x160] sm:$0xff] }
  0x14   :  { %243 = vst [vmem:[%s835_s3 + $0xb8] sm:$0xff] %v179_v20  ;;  %v182_v33 = vadd.f32 %v321_v2, %v111_v22  ;;  %v183_v34 = vadd.f32 %v321_v2, %v112_v23  ;;  %v116_v35 = vmul.f32 %v316_v1, %v45_v19  ;;  %244 = vst [vmem:[%s835_s3 + $0xc0] sm:$0xff] %v180_v25  ;;  %v59_v61 = vld [vmem:[%s832_s0 + $0x168] sm:$0xff]  ;;  %v60_v62 = vld [vmem:[%s832_s0 + $0x170] sm:$0xff] }
  0x15   :  { %v184_v39 = vadd.f32 %v321_v2, %v113_v26  ;;  %v185_v40 = vadd.f32 %v321_v2, %v114_v27  ;;  %v186_v41 = vadd.f32 %v321_v2, %v115_v28  ;;  %v117_v42 = vmul.f32 %v316_v1, %v46_v24  ;;  %245 = vst [vmem:[%s835_s3 + $0xc8] sm:$0xff] %v181_v32  ;;  %v61_v5 = vld [vmem:[%s832_s0 + $0x178] sm:$0xff]  ;;  %v62_v10 = vld [vmem:[%s832_s0 + $0x180] sm:$0xff]  ;;  %v63_v15 = vld [vmem:[%s832_s0 + $0x188] sm:$0xff] }
  0x16   :  { %246 = vst [vmem:[%s835_s3 + $0xd0] sm:$0xff] %v182_v33  ;;  %247 = vst [vmem:[%s835_s3 + $0xd8] sm:$0xff] %v183_v34  ;;  %v187_v44 = vadd.f32 %v321_v2, %v116_v35  ;;  %v118_v45 = vmul.f32 %v316_v1, %v47_v29  ;;  %v119_v46 = vmul.f32 %v316_v1, %v48_v30  ;;  %v64_v16 = vld [vmem:[%s832_s0 + $0x190] sm:$0xff]  ;;  %v65_v17 = vld [vmem:[%s832_s0 + $0x198] sm:$0xff] }
  0x17   :  { %v120_v47 = vmul.f32 %v316_v1, %v49_v31  ;;  %248 = vst [vmem:[%s835_s3 + $0xe0] sm:$0xff] %v184_v39  ;;  %249 = vst [vmem:[%s835_s3 + $0xe8] sm:$0xff] %v185_v40  ;;  %v188_v49 = vadd.f32 %v321_v2, %v117_v42  ;;  %v121_v50 = vmul.f32 %v316_v1, %v50_v36  ;;  %v66_v22 = vld [vmem:[%s832_s0 + $0x1a0] sm:$0xff]  ;;  %v67_v23 = vld [vmem:[%s832_s0 + $0x1a8] sm:$0xff] }
  0x18   :  { %250 = vst [vmem:[%s835_s3 + $0xf0] sm:$0xff] %v186_v41  ;;  %v122_v51 = vmul.f32 %v316_v1, %v51_v37  ;;  %v123_v52 = vmul.f32 %v316_v1, %v52_v38  ;;  %251 = vst [vmem:[%s835_s3 + $0xf8] sm:$0xff] %v187_v44  ;;  %v189_v56 = vadd.f32 %v321_v2, %v118_v45  ;;  %v68_v24 = vld [vmem:[%s832_s0 + $0x1b0] sm:$0xff]  ;;  %v69_v29 = vld [vmem:[%s832_s0 + $0x1b8] sm:$0xff] }
  0x19   :  { %v190_v57 = vadd.f32 %v321_v2, %v119_v46  ;;  %v191_v58 = vadd.f32 %v321_v2, %v120_v47  ;;  %v124_v59 = vmul.f32 %v316_v1, %v53_v43  ;;  %252 = vst [vmem:[%s835_s3 + $0x100] sm:$0xff] %v188_v49  ;;  %v192_v63 = vadd.f32 %v321_v2, %v121_v50  ;;  %v70_v34 = vld [vmem:[%s832_s0 + $0x1c0] sm:$0xff]  ;;  %v71_v39 = vld [vmem:[%s832_s0 + $0x1c8] sm:$0xff]  ;;  %v72_v40 = vld [vmem:[%s832_s0 + $0x1d0] sm:$0xff] }
  0x1a   :  { %v193_v0 = vadd.f32 %v321_v2, %v122_v51  ;;  %v194_v3 = vadd.f32 %v321_v2, %v123_v52  ;;  %v125_v4 = vmul.f32 %v316_v1, %v54_v48  ;;  %253 = vst [vmem:[%s835_s3 + $0x108] sm:$0xff] %v189_v56  ;;  %v126_v7 = vmul.f32 %v316_v1, %v55_v53  ;;  %v73_v41 = vld [vmem:[%s832_s0 + $0x1d8] sm:$0xff]  ;;  %v74_v46 = vld [vmem:[%s832_s0 + $0x1e0] sm:$0xff]  ;;  %v75_v47 = vld [vmem:[%s832_s0 + $0x1e8] sm:$0xff] }
  0x1b   :  { %254 = vst [vmem:[%s835_s3 + $0x110] sm:$0xff] %v190_v57  ;;  %255 = vst [vmem:[%s835_s3 + $0x118] sm:$0xff] %v191_v58  ;;  %v195_v6 = vadd.f32 %v321_v2, %v124_v59  ;;  %v127_v8 = vmul.f32 %v316_v1, %v56_v54  ;;  %v128_v9 = vmul.f32 %v316_v1, %v57_v55  ;;  %v76_v48 = vld [vmem:[%s832_s0 + $0x1f0] sm:$0xff]  ;;  %v77_v53 = vld [vmem:[%s832_s0 + $0x1f8] sm:$0xff] }
  0x1c   :  { %256 = vst [vmem:[%s835_s3 + $0x120] sm:$0xff] %v192_v63  ;;  %257 = vst [vmem:[%s835_s3 + $0x128] sm:$0xff] %v193_v0  ;;  %v196_v11 = vadd.f32 %v321_v2, %v125_v4  ;;  %v129_v12 = vmul.f32 %v316_v1, %v58_v60  ;;  %v130_v13 = vmul.f32 %v316_v1, %v59_v61 }
  0x1d   :  { %258 = vst [vmem:[%s835_s3 + $0x130] sm:$0xff] %v194_v3  ;;  %v131_v14 = vmul.f32 %v316_v1, %v60_v62  ;;  %259 = vst [vmem:[%s835_s3 + $0x138] sm:$0xff] %v195_v6  ;;  %v197_v18 = vadd.f32 %v321_v2, %v126_v7  ;;  %v198_v19 = vadd.f32 %v321_v2, %v127_v8 }
  0x1e   :  { %v199_v20 = vadd.f32 %v321_v2, %v128_v9  ;;  %v132_v21 = vmul.f32 %v316_v1, %v61_v5  ;;  %260 = vst [vmem:[%s835_s3 + $0x140] sm:$0xff] %v196_v11  ;;  %v200_v25 = vadd.f32 %v321_v2, %v129_v12  ;;  %v201_v26 = vadd.f32 %v321_v2, %v130_v13 }
  0x1f   :  { %v202_v27 = vadd.f32 %v321_v2, %v131_v14  ;;  %v133_v28 = vmul.f32 %v316_v1, %v62_v10  ;;  %261 = vst [vmem:[%s835_s3 + $0x148] sm:$0xff] %v197_v18  ;;  %262 = vst [vmem:[%s835_s3 + $0x150] sm:$0xff] %v198_v19  ;;  %v134_v31 = vmul.f32 %v316_v1, %v63_v15 }
  0x20   :  { %263 = vst [vmem:[%s835_s3 + $0x158] sm:$0xff] %v199_v20  ;;  %v203_v30 = vadd.f32 %v321_v2, %v132_v21  ;;  %v135_v32 = vmul.f32 %v316_v1, %v64_v16  ;;  %v136_v33 = vmul.f32 %v316_v1, %v65_v17  ;;  %264 = vst [vmem:[%s835_s3 + $0x160] sm:$0xff] %v200_v25 }
  0x21   :  { %265 = vst [vmem:[%s835_s3 + $0x168] sm:$0xff] %v201_v26  ;;  %266 = vst [vmem:[%s835_s3 + $0x170] sm:$0xff] %v202_v27  ;;  %v204_v35 = vadd.f32 %v321_v2, %v133_v28  ;;  %v137_v36 = vmul.f32 %v316_v1, %v66_v22  ;;  %v138_v37 = vmul.f32 %v316_v1, %v67_v23 }
  0x22   :  { %v139_v38 = vmul.f32 %v316_v1, %v68_v24  ;;  %267 = vst [vmem:[%s835_s3 + $0x178] sm:$0xff] %v203_v30  ;;  %v205_v42 = vadd.f32 %v321_v2, %v134_v31  ;;  %v206_v43 = vadd.f32 %v321_v2, %v135_v32  ;;  %v207_v44 = vadd.f32 %v321_v2, %v136_v33 }
  0x23   :  { %v140_v45 = vmul.f32 %v316_v1, %v69_v29  ;;  %268 = vst [vmem:[%s835_s3 + $0x180] sm:$0xff] %v204_v35  ;;  %v208_v49 = vadd.f32 %v321_v2, %v137_v36  ;;  %v209_v50 = vadd.f32 %v321_v2, %v138_v37  ;;  %v141_v52 = vmul.f32 %v316_v1, %v70_v34 }
  0x24   :  { %v210_v51 = vadd.f32 %v321_v2, %v139_v38  ;;  %269 = vst [vmem:[%s835_s3 + $0x188] sm:$0xff] %v205_v42  ;;  %270 = vst [vmem:[%s835_s3 + $0x190] sm:$0xff] %v206_v43  ;;  %v142_v55 = vmul.f32 %v316_v1, %v71_v39  ;;  %v143_v56 = vmul.f32 %v316_v1, %v72_v40 }
  0x25   :  { %271 = vst [vmem:[%s835_s3 + $0x198] sm:$0xff] %v207_v44  ;;  %v211_v54 = vadd.f32 %v321_v2, %v140_v45  ;;  %v144_v57 = vmul.f32 %v316_v1, %v73_v41  ;;  %272 = vst [vmem:[%s835_s3 + $0x1a0] sm:$0xff] %v208_v49  ;;  %v212_v58 = vadd.f32 %v321_v2, %v141_v52 }
  0x26   :  { %273 = vst [vmem:[%s835_s3 + $0x1a8] sm:$0xff] %v209_v50  ;;  %274 = vst [vmem:[%s835_s3 + $0x1b0] sm:$0xff] %v210_v51  ;;  %v145_v59 = vmul.f32 %v316_v1, %v74_v46  ;;  %v146_v60 = vmul.f32 %v316_v1, %v75_v47  ;;  %v147_v61 = vmul.f32 %v316_v1, %v76_v48 }
  0x27   :  { %275 = vst [vmem:[%s835_s3 + $0x1b8] sm:$0xff] %v211_v54  ;;  %v213_v62 = vadd.f32 %v321_v2, %v142_v55  ;;  %v214_v63 = vadd.f32 %v321_v2, %v143_v56  ;;  %v215_v0 = vadd.f32 %v321_v2, %v144_v57  ;;  %v148_v3 = vmul.f32 %v316_v1, %v77_v53 }
  0x28   :  { %276 = vst [vmem:[%s835_s3 + $0x1c0] sm:$0xff] %v212_v58  ;;  %v216_v4 = vadd.f32 %v321_v2, %v145_v59  ;;  %v217_v5 = vadd.f32 %v321_v2, %v146_v60  ;;  %v218_v6 = vadd.f32 %v321_v2, %v147_v61 }
  0x29   :  { %277 = vst [vmem:[%s835_s3 + $0x1c8] sm:$0xff] %v213_v62  ;;  %278 = vst [vmem:[%s835_s3 + $0x1d0] sm:$0xff] %v214_v63  ;;  %v219_v1 = vadd.f32 %v321_v2, %v148_v3 }
  0x2a   :  { %279 = vst [vmem:[%s835_s3 + $0x1d8] sm:$0xff] %v215_v0  ;;  %280 = vst [vmem:[%s835_s3 + $0x1e0] sm:$0xff] %v216_v4 }
  0x2b   :  { %281 = vst [vmem:[%s835_s3 + $0x1e8] sm:$0xff] %v217_v5  ;;  %282 = vst [vmem:[%s835_s3 + $0x1f0] sm:$0xff] %v218_v6 }
  0x2c   :  { %283 = vst [vmem:[%s835_s3 + $0x1f8] sm:$0xff] %v219_v1 }

// kernel: gcn_forward.6
= control target key start
LH: loop header
LB: loop body
LE: loop exit
PB: predicated region body
PF: predicated region fallthrough
CT: control target
= control target key end

     0   :  { %v3413_v0 = vmov 0   ;;  %s4078_s1 = inlined_call_operand.vmem [shape: bf16[512,128], index: 1, kind: input, shape index: {}]   ;;  %s4079_s0 = inlined_call_operand.vmem [shape: s8[512,512], index: 0, kind: input, shape index: {}]   ;;  %s4080_s4 = inlined_call_operand.vmem [shape: bf16[512,128], index: 4, kind: output, shape index: {0}]   ;;  %s4081_s2 = inlined_call_operand.vmem [shape: bf16[512,128], index: 2, kind: input, shape index: {}]   ;;  %s4082_s3 = inlined_call_operand.vmem [shape: f32[1,128], index: 3, kind: input, shape index: {}]   ;;  %s4083_s5 = inlined_call_operand.vmem [shape: f32[1,128], index: 5, kind: output, shape index: {1}]   ;;  %s4084_s6 = inlined_call_operand.vmem [shape: f32[1,128], index: 6, kind: output, shape index: {2}]  }
   0x1   :  { %1246 = vmatprep.subr.bf16.mxu0 %v3413_v0  ;;  %1535 = vmatprep.subr.bf16.mxu1 %v3413_v0  ;;  %v3381_v1 = vld [vmem:[%s4078_s1] sm:$0xff]   ;;  %v3383_v3 = vld [vmem:[%s4078_s1 + $0x8] sm:$0xff]   ;;  %v3385_v5 = vld [vmem:[%s4078_s1 + $0x10] sm:$0xff]  }
   0x2   :  { %v3382_v2 = vld [vmem:[%s4078_s1 + $0x80] sm:$0xff]   ;;  %1247 = vmatpush1.bf16.msra.mxu0 %v3381_v1  ;;  %v3384_v4 = vld [vmem:[%s4078_s1 + $0x88] sm:$0xff]   ;;  %v3386_v6 = vld [vmem:[%s4078_s1 + $0x90] sm:$0xff]  }
   0x3   :  { %1536 = vmatpush1.bf16.msra.mxu1 %v3382_v2  ;;  %1248 = vmatprep.subr.bf16.mxu0 %v3413_v0  ;;  %v3387_v7 = vld [vmem:[%s4078_s1 + $0x18] sm:$0xff]   ;;  %v3389_v9 = vld [vmem:[%s4078_s1 + $0x20] sm:$0xff]   ;;  %v3391_v11 = vld [vmem:[%s4078_s1 + $0x28] sm:$0xff]  }
   0x4   :  { %1537 = vmatprep.subr.bf16.mxu1 %v3413_v0  ;;  %v3388_v8 = vld [vmem:[%s4078_s1 + $0x98] sm:$0xff]   ;;  %v3390_v10 = vld [vmem:[%s4078_s1 + $0xa0] sm:$0xff]   ;;  %v3392_v12 = vld [vmem:[%s4078_s1 + $0xa8] sm:$0xff]  }
   0x5   :  { %v3393_v13 = vld [vmem:[%s4078_s1 + $0x30] sm:$0xff]   ;;  %v3395_v15 = vld [vmem:[%s4078_s1 + $0x38] sm:$0xff]   ;;  %v3397_v17 = vld [vmem:[%s4078_s1 + $0x40] sm:$0xff]  }
   0x6   :  { %1249 = vmatpush1.bf16.msra.mxu0 %v3383_v3  ;;  %v3394_v14 = vld [vmem:[%s4078_s1 + $0xb0] sm:$0xff]   ;;  %v3396_v16 = vld [vmem:[%s4078_s1 + $0xb8] sm:$0xff]   ;;  %v3398_v18 = vld [vmem:[%s4078_s1 + $0xc0] sm:$0xff]  }
   0x7   :  { %1538 = vmatpush1.bf16.msra.mxu1 %v3384_v4  ;;  %1250 = vmatprep.subr.bf16.mxu0 %v3413_v0  ;;  %v89_v19 = vld [vmem:[%s4079_s0] sm:$0xff]  ;;  %v90_v20 = vld [vmem:[%s4079_s0 + $0x8] sm:$0xff]  ;;  %v3401_v29 = vld [vmem:[%s4078_s1 + $0x50] sm:$0xff]  }
   0x8   :  { %1539 = vmatprep.subr.bf16.mxu1 %v3413_v0  ;;  %v153_v21 = vunpack.c.l.s8.bf16 %v89_v19  ;;  %v155_v22 = vunpack.c.l.s8.bf16 %v90_v20  ;;  %v154_v23 = vunpack.c.h.s8.bf16 %v89_v19  ;;  %v156_v24 = vunpack.c.h.s8.bf16 %v90_v20  ;;  %v3399_v25 = vld [vmem:[%s4078_s1 + $0x48] sm:$0xff]   ;;  %v3402_v30 = vld [vmem:[%s4078_s1 + $0xd0] sm:$0xff]   ;;  %v3403_v31 = vld [vmem:[%s4078_s1 + $0x58] sm:$0xff]  }
   0x9   :  { %v3400_v26 = vld [vmem:[%s4078_s1 + $0xc8] sm:$0xff]   ;;  %v3404_v32 = vld [vmem:[%s4078_s1 + $0xd8] sm:$0xff]   ;;  %v3405_v33 = vld [vmem:[%s4078_s1 + $0x60] sm:$0xff]  }
   0xa   :  { %1251 = vmatpush1.bf16.msra.mxu0 %v3385_v5  ;;  %v3144_v27 = vcombine.high %v153_v21, %v155_v22  ;;  %v3146_v28 = vcombine.high %v154_v23, %v156_v24  ;;  %v3406_v34 = vld [vmem:[%s4078_s1 + $0xe0] sm:$0xff]   ;;  %v3407_v35 = vld [vmem:[%s4078_s1 + $0x68] sm:$0xff]   ;;  %v3409_v37 = vld [vmem:[%s4078_s1 + $0x70] sm:$0xff]   ;;  %v3143_v47 = vcombine.low %v153_v21, %v155_v22  ;;  %v3145_v48 = vcombine.low %v154_v23, %v156_v24 }
   0xb   :  { %1540 = vmatpush1.bf16.msra.mxu1 %v3386_v6  ;;  %1252 = vmatprep.subr.bf16.mxu0 %v3413_v0  ;;  %v3408_v36 = vld [vmem:[%s4078_s1 + $0xe8] sm:$0xff]   ;;  %v3410_v38 = vld [vmem:[%s4078_s1 + $0xf0] sm:$0xff]   ;;  %v92_v40 = vld [vmem:[%s4079_s0 + $0x18] sm:$0xff] }
   0xc   :  { %1541 = vmatprep.subr.bf16.mxu1 %v3413_v0  ;;  %1278 = vmatprep.mubr.bf16.mxu0 %v3144_v27  ;;  %v91_v39 = vld [vmem:[%s4079_s0 + $0x10] sm:$0xff]  ;;  %v3411_v41 = vld [vmem:[%s4078_s1 + $0x78] sm:$0xff]   ;;  %v159_v43 = vunpack.c.l.s8.bf16 %v92_v40  ;;  %v160_v46 = vunpack.c.h.s8.bf16 %v92_v40  ;;  %v93_v51 = vld [vmem:[%s4079_s0 + $0x20] sm:$0xff] }
   0xd   :  { %1567 = vmatprep.mubr.bf16.mxu1 %v3146_v28  ;;  %v157_v42 = vunpack.c.l.s8.bf16 %v91_v39  ;;  %v3412_v44 = vld [vmem:[%s4078_s1 + $0xf8] sm:$0xff]   ;;  %v158_v45 = vunpack.c.h.s8.bf16 %v91_v39  ;;  %v94_v52 = vld [vmem:[%s4079_s0 + $0x28] sm:$0xff]  ;;  %v161_v53 = vunpack.c.l.s8.bf16 %v93_v51  ;;  %v162_v55 = vunpack.c.h.s8.bf16 %v93_v51  ;;  %v95_v61 = vld [vmem:[%s4079_s0 + $0x30] sm:$0xff] }
   0xe   :  { %1253 = vmatpush1.bf16.msra.mxu0 %v3387_v7  ;;  %v163_v54 = vunpack.c.l.s8.bf16 %v94_v52  ;;  %v164_v56 = vunpack.c.h.s8.bf16 %v94_v52  ;;  %v96_v62 = vld [vmem:[%s4079_s0 + $0x38] sm:$0xff]  ;;  %v165_v63 = vunpack.c.l.s8.bf16 %v95_v61  ;;  %v166_v1 = vunpack.c.h.s8.bf16 %v95_v61  ;;  %v97_v7 = vld [vmem:[%s4079_s0 + $0x40] sm:$0xff]  ;;  %v102_v28 = vld [vmem:[%s4079_s0 + $0x68] sm:$0xff] }
   0xf   :  { %1542 = vmatpush1.bf16.msra.mxu1 %v3388_v8  ;;  %1254 = vmatprep.subr.bf16.mxu0 %v3413_v0  ;;  %v3148_v49 = vcombine.high %v157_v42, %v159_v43  ;;  %v3150_v50 = vcombine.high %v158_v45, %v160_v46  ;;  %v3147_v57 = vcombine.low %v157_v42, %v159_v43  ;;  %v168_v2 = vunpack.c.h.s8.bf16 %v96_v62  ;;  %v98_v8 = vld [vmem:[%s4079_s0 + $0x48] sm:$0xff]  ;;  %v101_v27 = vld [vmem:[%s4079_s0 + $0x60] sm:$0xff] }
  0x10   :  { %1543 = vmatprep.subr.bf16.mxu1 %v3413_v0  ;;  %v3149_v58 = vcombine.low %v158_v45, %v160_v46  ;;  %v3152_v59 = vcombine.high %v161_v53, %v163_v54  ;;  %v3154_v60 = vcombine.high %v162_v55, %v164_v56  ;;  %v3151_v3 = vcombine.low %v161_v53, %v163_v54 }
  0x11   :  { %v3153_v4 = vcombine.low %v162_v55, %v164_v56  ;;  %v3158_v6 = vcombine.high %v166_v1, %v168_v2 }
  0x12   :  { %1255 = vmatpush1.bf16.msra.mxu0 %v3389_v9  ;;  %v169_v9 = vunpack.c.l.s8.bf16 %v97_v7 }
  0x13   :  { %1544 = vmatpush1.bf16.msra.mxu1 %v3390_v10  ;;  %1256 = vmatprep.subr.bf16.mxu0 %v3413_v0  ;;  %v171_v10 = vunpack.c.l.s8.bf16 %v98_v8 }
  0x14   :  { %1545 = vmatprep.subr.bf16.mxu1 %v3413_v0 }
  0x15   :  { %v3159_v23 = vcombine.low %v169_v9, %v171_v10 }
  0x16   :  { %1257 = vmatpush1.bf16.msra.mxu0 %v3391_v11  ;;  %v170_v11 = vunpack.c.h.s8.bf16 %v97_v7 }
  0x17   :  { %1546 = vmatpush1.bf16.msra.mxu1 %v3392_v12  ;;  %1258 = vmatprep.subr.bf16.mxu0 %v3413_v0  ;;  %v172_v12 = vunpack.c.h.s8.bf16 %v98_v8 }
  0x18   :  { %1547 = vmatprep.subr.bf16.mxu1 %v3413_v0 }
  0x19   :  { %v3161_v24 = vcombine.low %v170_v11, %v172_v12 }
  0x1a   :  { %1259 = vmatpush1.bf16.msra.mxu0 %v3393_v13 }
  0x1b   :  { %1548 = vmatpush1.bf16.msra.mxu1 %v3394_v14  ;;  %1260 = vmatprep.subr.bf16.mxu0 %v3413_v0  ;;  %v3157_v14 = vcombine.low %v166_v1, %v168_v2 }
  0x1c   :  { %1549 = vmatprep.subr.bf16.mxu1 %v3413_v0 }
  0x1e   :  { %1261 = vmatpush1.bf16.msra.mxu0 %v3395_v15  ;;  %v3160_v15 = vcombine.high %v169_v9, %v171_v10 }
  0x1f   :  { %1550 = vmatpush1.bf16.msra.mxu1 %v3396_v16  ;;  %1262 = vmatprep.subr.bf16.mxu0 %v3413_v0  ;;  %v3162_v16 = vcombine.high %v170_v11, %v172_v12 }
  0x20   :  { %1551 = vmatprep.subr.bf16.mxu1 %v3413_v0 }
  0x22   :  { %1263 = vmatpush1.bf16.msra.mxu0 %v3397_v17  ;;  %v99_v17 = vld [vmem:[%s4079_s0 + $0x50] sm:$0xff] }
  0x23   :  { %1552 = vmatpush1.bf16.msra.mxu1 %v3398_v18  ;;  %1264 = vmatprep.subr.bf16.mxu0 %v3413_v0  ;;  %v100_v18 = vld [vmem:[%s4079_s0 + $0x58] sm:$0xff]  ;;  %v173_v19 = vunpack.c.l.s8.bf16 %v99_v17  ;;  %v174_v21 = vunpack.c.h.s8.bf16 %v99_v17 }
  0x24   :  { %1553 = vmatprep.subr.bf16.mxu1 %v3413_v0  ;;  %v175_v20 = vunpack.c.l.s8.bf16 %v100_v18  ;;  %v176_v22 = vunpack.c.h.s8.bf16 %v100_v18 }
  0x26   :  { %1265 = vmatpush1.bf16.msra.mxu0 %v3399_v25  ;;  %v3164_v25 = vcombine.high %v173_v19, %v175_v20 }
  0x27   :  { %1554 = vmatpush1.bf16.msra.mxu1 %v3400_v26  ;;  %1266 = vmatprep.subr.bf16.mxu0 %v3413_v0  ;;  %v3166_v26 = vcombine.high %v174_v21, %v176_v22 }
  0x28   :  { %1555 = vmatprep.subr.bf16.mxu1 %v3413_v0 }
  0x2a   :  { %1267 = vmatpush1.bf16.msra.mxu0 %v3401_v29  ;;  %v177_v29 = vunpack.c.l.s8.bf16 %v101_v27 }
  0x2b   :  { %1556 = vmatpush1.bf16.msra.mxu1 %v3402_v30  ;;  %1268 = vmatprep.subr.bf16.mxu0 %v3413_v0  ;;  %v179_v30 = vunpack.c.l.s8.bf16 %v102_v28 }
  0x2c   :  { %1557 = vmatprep.subr.bf16.mxu1 %v3413_v0 }
  0x2d   :  { %v3167_v43 = vcombine.low %v177_v29, %v179_v30 }
  0x2e   :  { %1269 = vmatpush1.bf16.msra.mxu0 %v3403_v31  ;;  %v178_v31 = vunpack.c.h.s8.bf16 %v101_v27 }
  0x2f   :  { %1558 = vmatpush1.bf16.msra.mxu1 %v3404_v32  ;;  %1270 = vmatprep.subr.bf16.mxu0 %v3413_v0  ;;  %v180_v32 = vunpack.c.h.s8.bf16 %v102_v28 }
  0x30   :  { %1559 = vmatprep.subr.bf16.mxu1 %v3413_v0 }
  0x32   :  { %1271 = vmatpush1.bf16.msra.mxu0 %v3405_v33  ;;  %v3163_v33 = vcombine.low %v173_v19, %v175_v20 }
  0x33   :  { %1560 = vmatpush1.bf16.msra.mxu1 %v3406_v34  ;;  %1272 = vmatprep.subr.bf16.mxu0 %v3413_v0  ;;  %v3165_v34 = vcombine.low %v174_v21, %v176_v22 }
  0x34   :  { %1561 = vmatprep.subr.bf16.mxu1 %v3413_v0 }
  0x36   :  { %1273 = vmatpush1.bf16.msra.mxu0 %v3407_v35  ;;  %v3168_v35 = vcombine.high %v177_v29, %v179_v30 }
  0x37   :  { %1562 = vmatpush1.bf16.msra.mxu1 %v3408_v36  ;;  %1274 = vmatprep.subr.bf16.mxu0 %v3413_v0  ;;  %v3170_v36 = vcombine.high %v178_v31, %v180_v32 }
  0x38   :  { %1563 = vmatprep.subr.bf16.mxu1 %v3413_v0 }
  0x3a   :  { %1275 = vmatpush1.bf16.msra.mxu0 %v3409_v37  ;;  %v103_v37 = vld [vmem:[%s4079_s0 + $0x70] sm:$0xff] }
  0x3b   :  { %1564 = vmatpush1.bf16.msra.mxu1 %v3410_v38  ;;  %1276 = vmatprep.subr.bf16.mxu0 %v3413_v0  ;;  %v104_v38 = vld [vmem:[%s4079_s0 + $0x78] sm:$0xff]  ;;  %v181_v39 = vunpack.c.l.s8.bf16 %v103_v37 }
  0x3c   :  { %1565 = vmatprep.subr.bf16.mxu1 %v3413_v0  ;;  %v167_v0 = vunpack.c.l.s8.bf16 %v96_v62  ;;  %v183_v40 = vunpack.c.l.s8.bf16 %v104_v38  ;;  %v184_v42 = vunpack.c.h.s8.bf16 %v104_v38 }
  0x3e   :  { %1277 = vmatpush1.bf16.msra.mxu0 %v3411_v41  ;;  %v3156_v5 = vcombine.high %v165_v63, %v167_v0  ;;  %v3155_v13 = vcombine.low %v165_v63, %v167_v0  ;;  %v182_v41 = vunpack.c.h.s8.bf16 %v103_v37  ;;  %v3172_v45 = vcombine.high %v181_v39, %v183_v40 }
  0x3f   :  { %1566 = vmatpush1.bf16.msra.mxu1 %v3412_v44  ;;  %v3169_v44 = vcombine.low %v178_v31, %v180_v32  ;;  %v3171_v53 = vcombine.low %v181_v39, %v183_v40 }
  0x40   :  { %v3174_v46 = vcombine.high %v182_v41, %v184_v42  ;;  %v3173_v54 = vcombine.low %v182_v41, %v184_v42 }
  0x41   :  { %1279 = vmatmul.mubr.bf16.vlgmr.msra.gmra.mrb[0].mxu0 %v3143_v47  ;;  %v105_v47 = vld [vmem:[%s4079_s0 + $0x80] sm:$0xff] }
  0x42   :  { %1568 = vmatmul.mubr.bf16.vlgmr.msra.gmra.mrb[0].mxu1 %v3145_v48  ;;  %1286 = vmatprep.mubr.bf16.mxu0 %v3148_v49  ;;  %v106_v48 = vld [vmem:[%s4079_s0 + $0x88] sm:$0xff]  ;;  %v185_v49 = vunpack.c.l.s8.bf16 %v105_v47  ;;  %v186_v51 = vunpack.c.h.s8.bf16 %v105_v47 }
  0x43   :  { %1575 = vmatprep.mubr.bf16.mxu1 %v3150_v50  ;;  %v187_v50 = vunpack.c.l.s8.bf16 %v106_v48  ;;  %v188_v52 = vunpack.c.h.s8.bf16 %v106_v48 }
  0x45   :  { %v3176_v55 = vcombine.high %v185_v49, %v187_v50  ;;  %v3178_v56 = vcombine.high %v186_v51, %v188_v52  ;;  %v3175_v63 = vcombine.low %v185_v49, %v187_v50  ;;  %v3177_v0 = vcombine.low %v186_v51, %v188_v52 }
  0x49   :  { %1287 = vmatmul.mubr.bf16.gmra.mrb[4].mxu0 %v3147_v57  ;;  %v107_v57 = vld [vmem:[%s4079_s0 + $0x90] sm:$0xff] }
  0x4a   :  { %1576 = vmatmul.mubr.bf16.gmra.mrb[4].mxu1 %v3149_v58  ;;  %1294 = vmatprep.mubr.bf16.mxu0 %v3152_v59  ;;  %v108_v58 = vld [vmem:[%s4079_s0 + $0x98] sm:$0xff]  ;;  %v189_v59 = vunpack.c.l.s8.bf16 %v107_v57  ;;  %v190_v61 = vunpack.c.h.s8.bf16 %v107_v57 }
  0x4b   :  { %1583 = vmatprep.mubr.bf16.mxu1 %v3154_v60  ;;  %v191_v60 = vunpack.c.l.s8.bf16 %v108_v58  ;;  %v192_v62 = vunpack.c.h.s8.bf16 %v108_v58  ;;  %v120_v57 = vld [vmem:[%s4079_s0 + $0xf8] sm:$0xff] }
  0x4d   :  { %v3180_v1 = vcombine.high %v189_v59, %v191_v60  ;;  %v3182_v2 = vcombine.high %v190_v61, %v192_v62  ;;  %v3179_v9 = vcombine.low %v189_v59, %v191_v60  ;;  %v3181_v10 = vcombine.low %v190_v61, %v192_v62 }
  0x4e   :  { %v215_v59 = vunpack.c.l.s8.bf16 %v120_v57  ;;  %v216_v61 = vunpack.c.h.s8.bf16 %v120_v57 }
  0x51   :  { %1295 = vmatmul.mubr.bf16.gmra.mrb[8].mxu0 %v3151_v3  ;;  %v109_v3 = vld [vmem:[%s4079_s0 + $0xa0] sm:$0xff] }
  0x52   :  { %1584 = vmatmul.mubr.bf16.gmra.mrb[8].mxu1 %v3153_v4  ;;  %1302 = vmatprep.mubr.bf16.mxu0 %v3156_v5  ;;  %v110_v4 = vld [vmem:[%s4079_s0 + $0xa8] sm:$0xff]  ;;  %v193_v5 = vunpack.c.l.s8.bf16 %v109_v3  ;;  %v194_v7 = vunpack.c.h.s8.bf16 %v109_v3 }
  0x53   :  { %1591 = vmatprep.mubr.bf16.mxu1 %v3158_v6  ;;  %v195_v6 = vunpack.c.l.s8.bf16 %v110_v4  ;;  %v196_v8 = vunpack.c.h.s8.bf16 %v110_v4  ;;  %v122_v3 = vld [vmem:[%s4079_s0 + $0x108] sm:$0xff] }
  0x55   :  { %v3184_v11 = vcombine.high %v193_v5, %v195_v6  ;;  %v3186_v12 = vcombine.high %v194_v7, %v196_v8  ;;  %v3183_v19 = vcombine.low %v193_v5, %v195_v6  ;;  %v3185_v20 = vcombine.low %v194_v7, %v196_v8 }
  0x56   :  { %v219_v5 = vunpack.c.l.s8.bf16 %v122_v3  ;;  %v220_v7 = vunpack.c.h.s8.bf16 %v122_v3 }
  0x59   :  { %1303 = vmatmul.mubr.bf16.gmra.mrb[12].mxu0 %v3155_v13  ;;  %v111_v13 = vld [vmem:[%s4079_s0 + $0xb0] sm:$0xff] }
  0x5a   :  { %1592 = vmatmul.mubr.bf16.gmra.mrb[12].mxu1 %v3157_v14  ;;  %1310 = vmatprep.mubr.bf16.mxu0 %v3160_v15  ;;  %v112_v14 = vld [vmem:[%s4079_s0 + $0xb8] sm:$0xff]  ;;  %v197_v15 = vunpack.c.l.s8.bf16 %v111_v13  ;;  %v198_v17 = vunpack.c.h.s8.bf16 %v111_v13 }
  0x5b   :  { %1599 = vmatprep.mubr.bf16.mxu1 %v3162_v16  ;;  %v199_v16 = vunpack.c.l.s8.bf16 %v112_v14  ;;  %v200_v18 = vunpack.c.h.s8.bf16 %v112_v14  ;;  %v124_v13 = vld [vmem:[%s4079_s0 + $0x118] sm:$0xff] }
  0x5d   :  { %v3188_v21 = vcombine.high %v197_v15, %v199_v16  ;;  %v3190_v22 = vcombine.high %v198_v17, %v200_v18  ;;  %v3187_v29 = vcombine.low %v197_v15, %v199_v16  ;;  %v3189_v30 = vcombine.low %v198_v17, %v200_v18 }
  0x5e   :  { %v223_v15 = vunpack.c.l.s8.bf16 %v124_v13  ;;  %v224_v17 = vunpack.c.h.s8.bf16 %v124_v13 }
  0x61   :  { %1311 = vmatmul.mubr.bf16.gmra.mrb[16].mxu0 %v3159_v23  ;;  %v113_v23 = vld [vmem:[%s4079_s0 + $0xc0] sm:$0xff] }
  0x62   :  { %1600 = vmatmul.mubr.bf16.gmra.mrb[16].mxu1 %v3161_v24  ;;  %1318 = vmatprep.mubr.bf16.mxu0 %v3164_v25  ;;  %v114_v24 = vld [vmem:[%s4079_s0 + $0xc8] sm:$0xff]  ;;  %v201_v25 = vunpack.c.l.s8.bf16 %v113_v23  ;;  %v202_v27 = vunpack.c.h.s8.bf16 %v113_v23 }
  0x63   :  { %1607 = vmatprep.mubr.bf16.mxu1 %v3166_v26  ;;  %v203_v26 = vunpack.c.l.s8.bf16 %v114_v24  ;;  %v204_v28 = vunpack.c.h.s8.bf16 %v114_v24  ;;  %v126_v23 = vld [vmem:[%s4079_s0 + $0x128] sm:$0xff] }
  0x65   :  { %v3192_v31 = vcombine.high %v201_v25, %v203_v26  ;;  %v3194_v32 = vcombine.high %v202_v27, %v204_v28  ;;  %v3191_v39 = vcombine.low %v201_v25, %v203_v26  ;;  %v3670_v40 = vcombine.low %v202_v27, %v204_v28 }
  0x66   :  { %v227_v25 = vunpack.c.l.s8.bf16 %v126_v23  ;;  %v228_v27 = vunpack.c.h.s8.bf16 %v126_v23 }
  0x69   :  { %1319 = vmatmul.mubr.bf16.gmra.mrb[20].mxu0 %v3163_v33  ;;  %v3659_v33 = vld [vmem:[%s4079_s0 + $0xd0] sm:$0xff] }
  0x6a   :  { %1608 = vmatmul.mubr.bf16.gmra.mrb[20].mxu1 %v3165_v34  ;;  %1326 = vmatprep.mubr.bf16.mxu0 %v3168_v35  ;;  %v3664_v34 = vld [vmem:[%s4079_s0 + $0xd8] sm:$0xff]  ;;  %v205_v35 = vunpack.c.l.s8.bf16 %v3659_v33  ;;  %v206_v37 = vunpack.c.h.s8.bf16 %v3659_v33 }
  0x6b   :  { %1615 = vmatprep.mubr.bf16.mxu1 %v3170_v36  ;;  %v207_v36 = vunpack.c.l.s8.bf16 %v3664_v34  ;;  %v208_v38 = vunpack.c.h.s8.bf16 %v3664_v34  ;;  %v128_v33 = vld [vmem:[%s4079_s0 + $0x138] sm:$0xff] }
  0x6d   :  { %v3676_v41 = vcombine.high %v205_v35, %v207_v36  ;;  %v3682_v42 = vcombine.high %v206_v37, %v208_v38  ;;  %v3195_v52 = vcombine.low %v205_v35, %v207_v36  ;;  %v231_v35 = vunpack.c.l.s8.bf16 %v128_v33 }
  0x71   :  { %1327 = vmatmul.mubr.bf16.gmra.mrb[24].mxu0 %v3167_v43  ;;  %v3687_v43 = vld [vmem:[%s4079_s0 + $0xe0] sm:$0xff] }
  0x72   :  { %1616 = vmatmul.mubr.bf16.gmra.mrb[24].mxu1 %v3169_v44  ;;  %1334 = vmatprep.mubr.bf16.mxu0 %v3172_v45  ;;  %v3692_v44 = vld [vmem:[%s4079_s0 + $0xe8] sm:$0xff]  ;;  %v3414_v45 = vmov 0.0|0.0   ;;  %v209_v48 = vunpack.c.l.s8.bf16 %v3687_v43  ;;  %v210_v50 = vunpack.c.h.s8.bf16 %v3687_v43 }
  0x73   :  { %1623 = vmatprep.mubr.bf16.mxu1 %v3174_v46  ;;  %v3694_v46 = vcombine.low %v3414_v45, %v3414_v45  ;;  %v3696_v47 = vcombine.high %v3414_v45, %v3414_v45  ;;  %v211_v49 = vunpack.c.l.s8.bf16 %v3692_v44  ;;  %v212_v51 = vunpack.c.h.s8.bf16 %v3692_v44  ;;  %v130_v43 = vld [vmem:[%s4079_s0 + $0x148] sm:$0xff] }
  0x74   :  { %v235_v45 = vunpack.c.l.s8.bf16 %v130_v43 }
  0x75   :  { %2863 = vst [vmem:[%s4080_s4 + $0x8] sm:$0xf] %v3694_v46  ;;  %2864 = vst [vmem:[%s4080_s4 + $0xc] sm:$0xf] %v3696_v47  ;;  %v3199_v62 = vcombine.low %v209_v48, %v211_v49 }
  0x76   :  { %2865 = vst [vmem:[%s4080_s4 + $0x10] sm:$0xf] %v3694_v46  ;;  %2866 = vst [vmem:[%s4080_s4 + $0x14] sm:$0xf] %v3696_v47 }
  0x77   :  { %2867 = vst [vmem:[%s4080_s4 + $0x18] sm:$0xf] %v3694_v46  ;;  %2868 = vst [vmem:[%s4080_s4 + $0x1c] sm:$0xf] %v3696_v47 }
  0x78   :  { %2869 = vst [vmem:[%s4080_s4 + $0x20] sm:$0xf] %v3694_v46  ;;  %2870 = vst [vmem:[%s4080_s4 + $0x24] sm:$0xf] %v3696_v47 }
  0x79   :  { %1335 = vmatmul.mubr.bf16.gmra.mrb[28].mxu0 %v3171_v53  ;;  %2871 = vst [vmem:[%s4080_s4 + $0x28] sm:$0xf] %v3694_v46  ;;  %2872 = vst [vmem:[%s4080_s4 + $0x2c] sm:$0xf] %v3696_v47  ;;  %v3197_v53 = vcombine.low %v206_v37, %v208_v38  ;;  %v232_v37 = vunpack.c.h.s8.bf16 %v128_v33 }
  0x7a   :  { %1624 = vmatmul.mubr.bf16.gmra.mrb[28].mxu1 %v3173_v54  ;;  %1342 = vmatprep.mubr.bf16.mxu0 %v3176_v55  ;;  %2873 = vst [vmem:[%s4080_s4 + $0x30] sm:$0xf] %v3694_v46  ;;  %2874 = vst [vmem:[%s4080_s4 + $0x34] sm:$0xf] %v3696_v47  ;;  %v3200_v54 = vcombine.high %v209_v48, %v211_v49  ;;  %v3202_v55 = vcombine.high %v210_v50, %v212_v51 }
  0x7b   :  { %1631 = vmatprep.mubr.bf16.mxu1 %v3178_v56  ;;  %2875 = vst [vmem:[%s4080_s4 + $0x38] sm:$0xf] %v3694_v46  ;;  %2876 = vst [vmem:[%s4080_s4 + $0x3c] sm:$0xf] %v3696_v47  ;;  %v119_v56 = vld [vmem:[%s4079_s0 + $0xf0] sm:$0xff] }
  0x7c   :  { %2877 = vst [vmem:[%s4080_s4 + $0x40] sm:$0xf] %v3694_v46  ;;  %2878 = vst [vmem:[%s4080_s4 + $0x44] sm:$0xf] %v3696_v47  ;;  %v213_v58 = vunpack.c.l.s8.bf16 %v119_v56  ;;  %v214_v60 = vunpack.c.h.s8.bf16 %v119_v56 }
  0x7d   :  { %2879 = vst [vmem:[%s4080_s4 + $0x48] sm:$0xf] %v3694_v46  ;;  %2880 = vst [vmem:[%s4080_s4 + $0x4c] sm:$0xf] %v3696_v47 }
  0x7e   :  { %2881 = vst [vmem:[%s4080_s4 + $0x50] sm:$0xf] %v3694_v46  ;;  %2882 = vst [vmem:[%s4080_s4 + $0x54] sm:$0xf] %v3696_v47  ;;  %v3203_v8 = vcombine.low %v213_v58, %v215_v59 }
  0x7f   :  { %2883 = vst [vmem:[%s4080_s4 + $0x58] sm:$0xf] %v3694_v46  ;;  %2884 = vst [vmem:[%s4080_s4 + $0x5c] sm:$0xf] %v3696_v47 }
  0x80   :  { %2885 = vst [vmem:[%s4080_s4 + $0x60] sm:$0xf] %v3694_v46  ;;  %2886 = vst [vmem:[%s4080_s4 + $0x64] sm:$0xf] %v3696_v47 }
  0x81   :  { %1343 = vmatmul.mubr.bf16.gmra.mrb[32].mxu0 %v3175_v63  ;;  %2887 = vst [vmem:[%s4080_s4 + $0x68] sm:$0xf] %v3694_v46  ;;  %2888 = vst [vmem:[%s4080_s4 + $0x6c] sm:$0xf] %v3696_v47  ;;  %v3201_v63 = vcombine.low %v210_v50, %v212_v51 }
  0x82   :  { %1632 = vmatmul.mubr.bf16.gmra.mrb[32].mxu1 %v3177_v0  ;;  %1350 = vmatprep.mubr.bf16.mxu0 %v3180_v1  ;;  %2889 = vst [vmem:[%s4080_s4 + $0x70] sm:$0xf] %v3694_v46  ;;  %2890 = vst [vmem:[%s4080_s4 + $0x74] sm:$0xf] %v3696_v47  ;;  %v3204_v0 = vcombine.high %v213_v58, %v215_v59  ;;  %v3206_v1 = vcombine.high %v214_v60, %v216_v61 }
  0x83   :  { %1639 = vmatprep.mubr.bf16.mxu1 %v3182_v2  ;;  %2891 = vst [vmem:[%s4080_s4 + $0x78] sm:$0xf] %v3694_v46  ;;  %2892 = vst [vmem:[%s4080_s4 + $0x7c] sm:$0xf] %v3696_v47  ;;  %v121_v2 = vld [vmem:[%s4079_s0 + $0x100] sm:$0xff] }
  0x84   :  { %2893 = vst [vmem:[%s4080_s4 + $0x80] sm:$0xf] %v3694_v46  ;;  %2894 = vst [vmem:[%s4080_s4 + $0x84] sm:$0xf] %v3696_v47  ;;  %v217_v4 = vunpack.c.l.s8.bf16 %v121_v2  ;;  %v218_v6 = vunpack.c.h.s8.bf16 %v121_v2 }
  0x85   :  { %2895 = vst [vmem:[%s4080_s4 + $0x88] sm:$0xf] %v3694_v46  ;;  %2896 = vst [vmem:[%s4080_s4 + $0x8c] sm:$0xf] %v3696_v47 }
  0x86   :  { %2897 = vst [vmem:[%s4080_s4 + $0x90] sm:$0xf] %v3694_v46  ;;  %2898 = vst [vmem:[%s4080_s4 + $0x94] sm:$0xf] %v3696_v47  ;;  %v3207_v18 = vcombine.low %v217_v4, %v219_v5 }
  0x87   :  { %2899 = vst [vmem:[%s4080_s4 + $0x98] sm:$0xf] %v3694_v46  ;;  %2900 = vst [vmem:[%s4080_s4 + $0x9c] sm:$0xf] %v3696_v47 }
  0x88   :  { %2901 = vst [vmem:[%s4080_s4 + $0xa0] sm:$0xf] %v3694_v46  ;;  %2902 = vst [vmem:[%s4080_s4 + $0xa4] sm:$0xf] %v3696_v47 }
  0x89   :  { %1351 = vmatmul.mubr.bf16.gmra.mrb[36].mxu0 %v3179_v9  ;;  %2903 = vst [vmem:[%s4080_s4 + $0xa8] sm:$0xf] %v3694_v46  ;;  %2904 = vst [vmem:[%s4080_s4 + $0xac] sm:$0xf] %v3696_v47  ;;  %v3205_v9 = vcombine.low %v214_v60, %v216_v61 }
  0x8a   :  { %1640 = vmatmul.mubr.bf16.gmra.mrb[36].mxu1 %v3181_v10  ;;  %1358 = vmatprep.mubr.bf16.mxu0 %v3184_v11  ;;  %2905 = vst [vmem:[%s4080_s4 + $0xb0] sm:$0xf] %v3694_v46  ;;  %2906 = vst [vmem:[%s4080_s4 + $0xb4] sm:$0xf] %v3696_v47  ;;  %v3208_v10 = vcombine.high %v217_v4, %v219_v5  ;;  %v3210_v11 = vcombine.high %v218_v6, %v220_v7 }
  0x8b   :  { %1647 = vmatprep.mubr.bf16.mxu1 %v3186_v12  ;;  %2907 = vst [vmem:[%s4080_s4 + $0xb8] sm:$0xf] %v3694_v46  ;;  %2908 = vst [vmem:[%s4080_s4 + $0xbc] sm:$0xf] %v3696_v47  ;;  %v123_v12 = vld [vmem:[%s4079_s0 + $0x110] sm:$0xff] }
  0x8c   :  { %2909 = vst [vmem:[%s4080_s4 + $0xc0] sm:$0xf] %v3694_v46  ;;  %2910 = vst [vmem:[%s4080_s4 + $0xc4] sm:$0xf] %v3696_v47  ;;  %v221_v14 = vunpack.c.l.s8.bf16 %v123_v12  ;;  %v222_v16 = vunpack.c.h.s8.bf16 %v123_v12 }
  0x8d   :  { %2911 = vst [vmem:[%s4080_s4 + $0xc8] sm:$0xf] %v3694_v46  ;;  %2912 = vst [vmem:[%s4080_s4 + $0xcc] sm:$0xf] %v3696_v47 }
  0x8e   :  { %2913 = vst [vmem:[%s4080_s4 + $0xd0] sm:$0xf] %v3694_v46  ;;  %2914 = vst [vmem:[%s4080_s4 + $0xd4] sm:$0xf] %v3696_v47  ;;  %v3211_v28 = vcombine.low %v221_v14, %v223_v15 }
  0x8f   :  { %2915 = vst [vmem:[%s4080_s4 + $0xd8] sm:$0xf] %v3694_v46  ;;  %2916 = vst [vmem:[%s4080_s4 + $0xdc] sm:$0xf] %v3696_v47 }
  0x90   :  { %2917 = vst [vmem:[%s4080_s4 + $0xe0] sm:$0xf] %v3694_v46  ;;  %2918 = vst [vmem:[%s4080_s4 + $0xe4] sm:$0xf] %v3696_v47 }
  0x91   :  { %1359 = vmatmul.mubr.bf16.gmra.mrb[40].mxu0 %v3183_v19  ;;  %2919 = vst [vmem:[%s4080_s4 + $0xe8] sm:$0xf] %v3694_v46  ;;  %2920 = vst [vmem:[%s4080_s4 + $0xec] sm:$0xf] %v3696_v47  ;;  %v3209_v19 = vcombine.low %v218_v6, %v220_v7 }
  0x92   :  { %1648 = vmatmul.mubr.bf16.gmra.mrb[40].mxu1 %v3185_v20  ;;  %1366 = vmatprep.mubr.bf16.mxu0 %v3188_v21  ;;  %2921 = vst [vmem:[%s4080_s4 + $0xf0] sm:$0xf] %v3694_v46  ;;  %2922 = vst [vmem:[%s4080_s4 + $0xf4] sm:$0xf] %v3696_v47  ;;  %v3212_v20 = vcombine.high %v221_v14, %v223_v15  ;;  %v3214_v21 = vcombine.high %v222_v16, %v224_v17 }
  0x93   :  { %1655 = vmatprep.mubr.bf16.mxu1 %v3190_v22  ;;  %2923 = vst [vmem:[%s4080_s4 + $0xf8] sm:$0xf] %v3694_v46  ;;  %2924 = vst [vmem:[%s4080_s4 + $0xfc] sm:$0xf] %v3696_v47  ;;  %v125_v22 = vld [vmem:[%s4079_s0 + $0x120] sm:$0xff]  ;;  %v236_v47 = vunpack.c.h.s8.bf16 %v130_v43 }
  0x94   :  { %v225_v24 = vunpack.c.l.s8.bf16 %v125_v22  ;;  %v226_v26 = vunpack.c.h.s8.bf16 %v125_v22 }
  0x96   :  { %v3215_v38 = vcombine.low %v225_v24, %v227_v25 }
  0x99   :  { %1367 = vmatmul.mubr.bf16.gmra.mrb[44].mxu0 %v3187_v29  ;;  %v3213_v29 = vcombine.low %v222_v16, %v224_v17 }
  0x9a   :  { %1656 = vmatmul.mubr.bf16.gmra.mrb[44].mxu1 %v3189_v30  ;;  %1374 = vmatprep.mubr.bf16.mxu0 %v3192_v31  ;;  %v3216_v30 = vcombine.high %v225_v24, %v227_v25  ;;  %v3218_v31 = vcombine.high %v226_v26, %v228_v27 }
  0x9b   :  { %1663 = vmatprep.mubr.bf16.mxu1 %v3194_v32  ;;  %v127_v32 = vld [vmem:[%s4079_s0 + $0x130] sm:$0xff] }
  0x9c   :  { %v229_v34 = vunpack.c.l.s8.bf16 %v127_v32  ;;  %v230_v36 = vunpack.c.h.s8.bf16 %v127_v32 }
  0x9e   :  { %v3219_v48 = vcombine.low %v229_v34, %v231_v35  ;;  %v3221_v49 = vcombine.low %v230_v36, %v232_v37 }
  0xa1   :  { %1375 = vmatmul.mubr.bf16.gmra.mrb[48].mxu0 %v3191_v39  ;;  %v3217_v39 = vcombine.low %v226_v26, %v228_v27 }
  0xa2   :  { %1664 = vmatmul.mubr.bf16.gmra.mrb[48].mxu1 %v3670_v40  ;;  %1382 = vmatprep.mubr.bf16.mxu0 %v3676_v41  ;;  %v3220_v40 = vcombine.high %v229_v34, %v231_v35  ;;  %v3222_v41 = vcombine.high %v230_v36, %v232_v37 }
  0xa3   :  { %1671 = vmatprep.mubr.bf16.mxu1 %v3682_v42  ;;  %v129_v42 = vld [vmem:[%s4079_s0 + $0x140] sm:$0xff] }
  0xa4   :  { %v233_v44 = vunpack.c.l.s8.bf16 %v129_v42  ;;  %v234_v46 = vunpack.c.h.s8.bf16 %v129_v42 }
  0xa6   :  { %v3224_v50 = vcombine.high %v233_v44, %v235_v45  ;;  %v3226_v51 = vcombine.high %v234_v46, %v236_v47  ;;  %v3223_v58 = vcombine.low %v233_v44, %v235_v45  ;;  %v3225_v59 = vcombine.low %v234_v46, %v236_v47 }
  0xa9   :  { %1383 = vmatmul.mubr.bf16.gmra.mrb[52].mxu0 %v3195_v52  ;;  %v131_v52 = vld [vmem:[%s4079_s0 + $0x150] sm:$0xff] }
  0xaa   :  { %1672 = vmatmul.mubr.bf16.gmra.mrb[52].mxu1 %v3197_v53  ;;  %1390 = vmatprep.mubr.bf16.mxu0 %v3200_v54  ;;  %v132_v53 = vld [vmem:[%s4079_s0 + $0x158] sm:$0xff]  ;;  %v237_v54 = vunpack.c.l.s8.bf16 %v131_v52  ;;  %v238_v56 = vunpack.c.h.s8.bf16 %v131_v52 }
  0xab   :  { %1679 = vmatprep.mubr.bf16.mxu1 %v3202_v55  ;;  %v239_v55 = vunpack.c.l.s8.bf16 %v132_v53  ;;  %v240_v57 = vunpack.c.h.s8.bf16 %v132_v53 }
  0xad   :  { %v3228_v60 = vcombine.high %v237_v54, %v239_v55  ;;  %v3230_v61 = vcombine.high %v238_v56, %v240_v57  ;;  %v3227_v4 = vcombine.low %v237_v54, %v239_v55  ;;  %v3229_v5 = vcombine.low %v238_v56, %v240_v57 }
  0xb1   :  { %1391 = vmatmul.mubr.bf16.gmra.mrb[56].mxu0 %v3199_v62  ;;  %v133_v62 = vld [vmem:[%s4079_s0 + $0x160] sm:$0xff] }
  0xb2   :  { %1680 = vmatmul.mubr.bf16.gmra.mrb[56].mxu1 %v3201_v63  ;;  %1398 = vmatprep.mubr.bf16.mxu0 %v3204_v0  ;;  %v134_v63 = vld [vmem:[%s4079_s0 + $0x168] sm:$0xff]  ;;  %v241_v0 = vunpack.c.l.s8.bf16 %v133_v62  ;;  %v242_v2 = vunpack.c.h.s8.bf16 %v133_v62 }
  0xb3   :  { %1687 = vmatprep.mubr.bf16.mxu1 %v3206_v1  ;;  %v243_v1 = vunpack.c.l.s8.bf16 %v134_v63  ;;  %v244_v3 = vunpack.c.h.s8.bf16 %v134_v63 }
  0xb5   :  { %v3232_v6 = vcombine.high %v241_v0, %v243_v1  ;;  %v3234_v7 = vcombine.high %v242_v2, %v244_v3  ;;  %v3231_v14 = vcombine.low %v241_v0, %v243_v1  ;;  %v3233_v15 = vcombine.low %v242_v2, %v244_v3  ;;  %v3303_v2 = vld [vmem:[%s4082_s3] ss:$0 sm:$0xff] }
  0xb6   :  { %v3371_v3 = vld [vmem:[%s4081_s2] sm:$0xff]  }
  0xb9   :  { %1399 = vmatmul.mubr.bf16.gmra.mrb[60].mxu0 %v3203_v8  ;;  %v135_v8 = vld [vmem:[%s4079_s0 + $0x170] sm:$0xff] }
  0xba   :  { %1688 = vmatmul.mubr.bf16.gmra.mrb[60].mxu1 %v3205_v9  ;;  %1406 = vmatprep.mubr.bf16.mxu0 %v3208_v10  ;;  %v136_v9 = vld [vmem:[%s4079_s0 + $0x178] sm:$0xff]  ;;  %v245_v10 = vunpack.c.l.s8.bf16 %v135_v8  ;;  %v246_v12 = vunpack.c.h.s8.bf16 %v135_v8 }
  0xbb   :  { %1695 = vmatprep.mubr.bf16.mxu1 %v3210_v11  ;;  %v247_v11 = vunpack.c.l.s8.bf16 %v136_v9  ;;  %v248_v13 = vunpack.c.h.s8.bf16 %v136_v9 }
  0xbd   :  { %v3236_v16 = vcombine.high %v245_v10, %v247_v11  ;;  %v3238_v17 = vcombine.high %v246_v12, %v248_v13  ;;  %v3235_v24 = vcombine.low %v245_v10, %v247_v11  ;;  %v3237_v25 = vcombine.low %v246_v12, %v248_v13 }
  0xc1   :  { %1407 = vmatmul.mubr.bf16.gmra.mrb[64].mxu0 %v3207_v18  ;;  %v137_v18 = vld [vmem:[%s4079_s0 + $0x180] sm:$0xff] }
  0xc2   :  { %1696 = vmatmul.mubr.bf16.gmra.mrb[64].mxu1 %v3209_v19  ;;  %1414 = vmatprep.mubr.bf16.mxu0 %v3212_v20  ;;  %v138_v19 = vld [vmem:[%s4079_s0 + $0x188] sm:$0xff]  ;;  %v249_v20 = vunpack.c.l.s8.bf16 %v137_v18  ;;  %v250_v22 = vunpack.c.h.s8.bf16 %v137_v18 }
  0xc3   :  { %1703 = vmatprep.mubr.bf16.mxu1 %v3214_v21  ;;  %v251_v21 = vunpack.c.l.s8.bf16 %v138_v19  ;;  %v252_v23 = vunpack.c.h.s8.bf16 %v138_v19 }
  0xc5   :  { %v3240_v26 = vcombine.high %v249_v20, %v251_v21  ;;  %v3242_v27 = vcombine.high %v250_v22, %v252_v23  ;;  %v3239_v34 = vcombine.low %v249_v20, %v251_v21  ;;  %v3241_v35 = vcombine.low %v250_v22, %v252_v23 }
  0xc6   :  { %v3373_v20 = vunpack.c.h.bf16 %v3371_v3 }
  0xc9   :  { %1415 = vmatmul.mubr.bf16.gmra.mrb[68].mxu0 %v3211_v28  ;;  %v139_v28 = vld [vmem:[%s4079_s0 + $0x190] sm:$0xff] }
  0xca   :  { %1704 = vmatmul.mubr.bf16.gmra.mrb[68].mxu1 %v3213_v29  ;;  %1422 = vmatprep.mubr.bf16.mxu0 %v3216_v30  ;;  %v140_v29 = vld [vmem:[%s4079_s0 + $0x198] sm:$0xff]  ;;  %v253_v30 = vunpack.c.l.s8.bf16 %v139_v28  ;;  %v254_v32 = vunpack.c.h.s8.bf16 %v139_v28 }
  0xcb   :  { %1711 = vmatprep.mubr.bf16.mxu1 %v3218_v31  ;;  %v255_v31 = vunpack.c.l.s8.bf16 %v140_v29  ;;  %v256_v33 = vunpack.c.h.s8.bf16 %v140_v29 }
  0xcd   :  { %v3244_v36 = vcombine.high %v253_v30, %v255_v31  ;;  %v3246_v37 = vcombine.high %v254_v32, %v256_v33  ;;  %v3243_v44 = vcombine.low %v253_v30, %v255_v31  ;;  %v3245_v45 = vcombine.low %v254_v32, %v256_v33 }
  0xd1   :  { %1423 = vmatmul.mubr.bf16.gmra.mrb[72].mxu0 %v3215_v38  ;;  %v141_v38 = vld [vmem:[%s4079_s0 + $0x1a0] sm:$0xff] }
  0xd2   :  { %1712 = vmatmul.mubr.bf16.gmra.mrb[72].mxu1 %v3217_v39  ;;  %1430 = vmatprep.mubr.bf16.mxu0 %v3220_v40  ;;  %v142_v39 = vld [vmem:[%s4079_s0 + $0x1a8] sm:$0xff]  ;;  %v257_v40 = vunpack.c.l.s8.bf16 %v141_v38  ;;  %v258_v42 = vunpack.c.h.s8.bf16 %v141_v38 }
  0xd3   :  { %1719 = vmatprep.mubr.bf16.mxu1 %v3222_v41  ;;  %v259_v41 = vunpack.c.l.s8.bf16 %v142_v39  ;;  %v260_v43 = vunpack.c.h.s8.bf16 %v142_v39 }
  0xd5   :  { %v3248_v46 = vcombine.high %v257_v40, %v259_v41  ;;  %v3250_v47 = vcombine.high %v258_v42, %v260_v43  ;;  %v3247_v54 = vcombine.low %v257_v40, %v259_v41  ;;  %v3249_v55 = vcombine.low %v258_v42, %v260_v43  ;;  %v149_v41 = vld [vmem:[%s4079_s0 + $0x1e0] sm:$0xff]  ;;  %v150_v42 = vld [vmem:[%s4079_s0 + $0x1e8] sm:$0xff] }
  0xd9   :  { %1431 = vmatmul.mubr.bf16.gmra.mrb[76].mxu0 %v3219_v48  ;;  %v143_v48 = vld [vmem:[%s4079_s0 + $0x1b0] sm:$0xff] }
  0xda   :  { %1720 = vmatmul.mubr.bf16.gmra.mrb[76].mxu1 %v3221_v49  ;;  %1438 = vmatprep.mubr.bf16.mxu0 %v3224_v50  ;;  %v144_v49 = vld [vmem:[%s4079_s0 + $0x1b8] sm:$0xff]  ;;  %v261_v50 = vunpack.c.l.s8.bf16 %v143_v48  ;;  %v262_v52 = vunpack.c.h.s8.bf16 %v143_v48 }
  0xdb   :  { %1727 = vmatprep.mubr.bf16.mxu1 %v3226_v51  ;;  %v263_v51 = vunpack.c.l.s8.bf16 %v144_v49  ;;  %v264_v53 = vunpack.c.h.s8.bf16 %v144_v49 }
  0xdd   :  { %v3252_v56 = vcombine.high %v261_v50, %v263_v51  ;;  %v3254_v57 = vcombine.high %v262_v52, %v264_v53  ;;  %v3253_v9 = vcombine.low %v262_v52, %v264_v53  ;;  %v274_v52 = vunpack.c.h.s8.bf16 %v149_v41 }
  0xde   :  { %v276_v53 = vunpack.c.h.s8.bf16 %v150_v42 }
  0xe1   :  { %1439 = vmatmul.mubr.bf16.gmra.mrb[80].mxu0 %v3223_v58  ;;  %v145_v58 = vld [vmem:[%s4079_s0 + $0x1c0] sm:$0xff] }
  0xe2   :  { %1728 = vmatmul.mubr.bf16.gmra.mrb[80].mxu1 %v3225_v59  ;;  %1446 = vmatprep.mubr.bf16.mxu0 %v3228_v60  ;;  %v146_v59 = vld [vmem:[%s4079_s0 + $0x1c8] sm:$0xff]  ;;  %v265_v60 = vunpack.c.l.s8.bf16 %v145_v58  ;;  %v266_v62 = vunpack.c.h.s8.bf16 %v145_v58 }
  0xe3   :  { %1735 = vmatprep.mubr.bf16.mxu1 %v3230_v61  ;;  %v267_v61 = vunpack.c.l.s8.bf16 %v146_v59  ;;  %v268_v63 = vunpack.c.h.s8.bf16 %v146_v59 }
  0xe5   :  { %v3256_v10 = vcombine.high %v265_v60, %v267_v61  ;;  %v3258_v13 = vcombine.high %v266_v62, %v268_v63  ;;  %v3255_v32 = vcombine.low %v265_v60, %v267_v61 }
  0xe9   :  { %1447 = vmatmul.mubr.bf16.gmra.mrb[84].mxu0 %v3227_v4 }
  0xea   :  { %1736 = vmatmul.mubr.bf16.gmra.mrb[84].mxu1 %v3229_v5  ;;  %1454 = vmatprep.mubr.bf16.mxu0 %v3232_v6  ;;  %v3251_v5 = vcombine.low %v261_v50, %v263_v51  ;;  %v273_v50 = vunpack.c.l.s8.bf16 %v149_v41  ;;  %v275_v51 = vunpack.c.l.s8.bf16 %v150_v42 }
  0xeb   :  { %1743 = vmatprep.mubr.bf16.mxu1 %v3234_v7 }
  0xf1   :  { %1455 = vmatmul.mubr.bf16.gmra.mrb[88].mxu0 %v3231_v14  ;;  %v147_v14 = vld [vmem:[%s4079_s0 + $0x1d0] sm:$0xff] }
  0xf2   :  { %1744 = vmatmul.mubr.bf16.gmra.mrb[88].mxu1 %v3233_v15  ;;  %1462 = vmatprep.mubr.bf16.mxu0 %v3236_v16  ;;  %v148_v15 = vld [vmem:[%s4079_s0 + $0x1d8] sm:$0xff]  ;;  %v269_v23 = vunpack.c.l.s8.bf16 %v147_v14 }
  0xf3   :  { %1751 = vmatprep.mubr.bf16.mxu1 %v3238_v17  ;;  %v3372_v17 = vunpack.c.l.bf16 %v3371_v3 }
  0xf9   :  { %1463 = vmatmul.mubr.bf16.gmra.mrb[92].mxu0 %v3235_v24  ;;  %v271_v24 = vunpack.c.l.s8.bf16 %v148_v15 }
  0xfa   :  { %1752 = vmatmul.mubr.bf16.gmra.mrb[92].mxu1 %v3237_v25  ;;  %1470 = vmatprep.mubr.bf16.mxu0 %v3240_v26  ;;  %v270_v25 = vunpack.c.h.s8.bf16 %v147_v14  ;;  %v272_v26 = vunpack.c.h.s8.bf16 %v148_v15 }
  0xfb   :  { %1759 = vmatprep.mubr.bf16.mxu1 %v3242_v27  ;;  %v3259_v59 = vcombine.low %v269_v23, %v271_v24 }
  0xfc   :  { %v3262_v40 = vcombine.high %v270_v25, %v272_v26 }
 0x101   :  { %1471 = vmatmul.mubr.bf16.gmra.mrb[96].mxu0 %v3239_v34 }
 0x102   :  { %1760 = vmatmul.mubr.bf16.gmra.mrb[96].mxu1 %v3241_v35  ;;  %1478 = vmatprep.mubr.bf16.mxu0 %v3244_v36  ;;  %v3257_v36 = vcombine.low %v266_v62, %v268_v63 }
 0x103   :  { %1767 = vmatprep.mubr.bf16.mxu1 %v3246_v37  ;;  %v3260_v37 = vcombine.high %v269_v23, %v271_v24 }
 0x109   :  { %1479 = vmatmul.mubr.bf16.gmra.mrb[100].mxu0 %v3243_v44 }
 0x10a   :  { %1768 = vmatmul.mubr.bf16.gmra.mrb[100].mxu1 %v3245_v45  ;;  %1486 = vmatprep.mubr.bf16.mxu0 %v3248_v46 }
 0x10b   :  { %1775 = vmatprep.mubr.bf16.mxu1 %v3250_v47 }
 0x111   :  { %1487 = vmatmul.mubr.bf16.gmra.mrb[104].mxu0 %v3247_v54 }
 0x112   :  { %1776 = vmatmul.mubr.bf16.gmra.mrb[104].mxu1 %v3249_v55  ;;  %1494 = vmatprep.mubr.bf16.mxu0 %v3252_v56 }
 0x113   :  { %1783 = vmatprep.mubr.bf16.mxu1 %v3254_v57 }
 0x114   :  { %v1280_v0 = vpop.f32.mrb[0].mxu0 }
 0x115   :  { %v1569_v1 = vpop.f32.mrb[0].mxu1  ;;  %v1282_v4 = vpop.f32.mrb[1].mxu0 }
 0x116   :  { %v1570_v6 = vadd.f32 %v1569_v1, %v1280_v0  ;;  %v1571_v7 = vpop.f32.mrb[1].mxu1  ;;  %v1283_v8 = vpop.f32.mrb[2].mxu0  ;;  %v3261_v0 = vcombine.low %v270_v25, %v272_v26  ;;  %v3264_v1 = vcombine.high %v273_v50, %v275_v51  ;;  %v3266_v4 = vcombine.high %v274_v52, %v276_v53 }
 0x117   :  { %v1572_v11 = vpop.f32.mrb[2].mxu1  ;;  %v1285_v12 = vpop.f32.mrb[3].mxu0  ;;  %v3265_v25 = vcombine.low %v274_v52, %v276_v53 }
 0x118   :  { %v2026_v16 = vadd.f32 %v3303_v2, %v1570_v6  ;;  %v1573_v18 = vadd.f32 %v1572_v11, %v1283_v8  ;;  %v1574_v19 = vpop.f32.mrb[3].mxu1  ;;  %v152_v6 = vld [vmem:[%s4079_s0 + $0x1f8] sm:$0xff] }
 0x119   :  { %1495 = vmatmul.mubr.bf16.gmra.mrb[108].mxu0 %v3251_v5  ;;  %v151_v5 = vld [vmem:[%s4079_s0 + $0x1f0] sm:$0xff]  ;;  %v280_v15 = vunpack.c.h.s8.bf16 %v152_v6 }
 0x11a   :  { %v2090_v21 = vmax.f32 %v2026_v16, 0.0  ;;  %v2027_v22 = vadd.f32 %v3303_v2, %v1573_v18  ;;  %1784 = vmatmul.mubr.bf16.gmra.mrb[108].mxu1 %v3253_v9  ;;  %1502 = vmatprep.mubr.bf16.mxu0 %v3256_v10  ;;  %v277_v12 = vunpack.c.l.s8.bf16 %v151_v5  ;;  %v278_v14 = vunpack.c.h.s8.bf16 %v151_v5 }
 0x11b   :  { %1791 = vmatprep.mubr.bf16.mxu1 %v3258_v13  ;;  %v279_v13 = vunpack.c.l.s8.bf16 %v152_v6 }
 0x11c   :  { %v2282_v27 = vadd.f32 %v3372_v17, %v2090_v21  ;;  %v2091_v28 = vmax.f32 %v2027_v22, 0.0  ;;  %v1288_v29 = vpop.f32.mrb[4].mxu0  ;;  %v3263_v21 = vcombine.low %v273_v50, %v275_v51 }
 0x11d   :  { %v1577_v30 = vpop.f32.mrb[4].mxu1  ;;  %v1290_v31 = vpop.f32.mrb[5].mxu0  ;;  %v3268_v26 = vcombine.high %v277_v12, %v279_v13  ;;  %v3270_v29 = vcombine.high %v278_v14, %v280_v15 }
 0x11e   :  { %v2283_v33 = vadd.f32 %v3373_v20, %v2091_v28  ;;  %v1579_v34 = vpop.f32.mrb[5].mxu1  ;;  %v1291_v35 = vpop.f32.mrb[6].mxu0  ;;  %v2995_v43 = vmul.f32 %v2282_v27, %v2282_v27 }
 0x11f   :  { %v1580_v38 = vpop.f32.mrb[6].mxu1  ;;  %v1293_v39 = vpop.f32.mrb[7].mxu0  ;;  %v3267_v34 = vcombine.low %v277_v12, %v279_v13 }
 0x120   :  { %v3377_v44 = vpack.c.bf16 %v2283_v33, %v2282_v27  ;;  %v2925_v45 = vadd.f32 %v2283_v33, %v2282_v27  ;;  %v2996_v46 = vmul.f32 %v2283_v33, %v2283_v33  ;;  %v1582_v47 = vpop.f32.mrb[7].mxu1 }
 0x121   :  { %1503 = vmatmul.mubr.bf16.gmra.mrb[112].mxu0 %v3255_v32 }
 0x122   :  { %3378 = vst [vmem:[%s4080_s4] sm:$0xff] %v3377_v44   ;;  %v2988_v48 = vrot.slane %v2925_v45, 4  ;;  %v3059_v49 = vadd.f32 %v2996_v46, %v2995_v43  ;;  %1792 = vmatmul.mubr.bf16.gmra.mrb[112].mxu1 %v3257_v36  ;;  %1510 = vmatprep.mubr.bf16.mxu0 %v3260_v37  ;;  %v3269_v37 = vcombine.low %v278_v14, %v280_v15 }
 0x123   :  { %1799 = vmatprep.mubr.bf16.mxu1 %v3262_v40 }
 0x124   :  { %v2989_v54 = vadd.f32 %v2988_v48, %v2925_v45  ;;  %v3122_v55 = vrot.slane %v3059_v49, 4  ;;  %v1296_v56 = vpop.f32.mrb[8].mxu0 }
 0x125   :  { %v1585_v57 = vpop.f32.mrb[8].mxu1  ;;  %v1298_v58 = vpop.f32.mrb[9].mxu0 }
 0x126   :  { %v2990_v60 = vrot.slane %v2989_v54, 2  ;;  %v3123_v61 = vadd.f32 %v3122_v55, %v3059_v49  ;;  %v1587_v62 = vpop.f32.mrb[9].mxu1  ;;  %v1299_v63 = vpop.f32.mrb[10].mxu0 }
 0x127   :  { %v1588_v2 = vpop.f32.mrb[10].mxu1  ;;  %v1301_v3 = vpop.f32.mrb[11].mxu0 }
 0x128   :  { %v2991_v7 = vadd.f32 %v2990_v60, %v2989_v54  ;;  %v3124_v8 = vrot.slane %v3123_v61, 2  ;;  %v1590_v9 = vpop.f32.mrb[11].mxu1 }
 0x129   :  { %1511 = vmatmul.mubr.bf16.gmra.mrb[116].mxu0 %v3259_v59 }
 0x12a   :  { %v2992_v10 = vrot.slane %v2991_v7, 1  ;;  %v3125_v11 = vadd.f32 %v3124_v8, %v3123_v61  ;;  %1800 = vmatmul.mubr.bf16.gmra.mrb[116].mxu1 %v3261_v0  ;;  %1518 = vmatprep.mubr.bf16.mxu0 %v3264_v1 }
 0x12b   :  { %1807 = vmatprep.mubr.bf16.mxu1 %v3266_v4 }
 0x12c   :  { %v2993_v16 = vadd.f32 %v2992_v10, %v2991_v7  ;;  %v3126_v17 = vrot.slane %v3125_v11, 1  ;;  %v1304_v18 = vpop.f32.mrb[12].mxu0 }
 0x12d   :  { %v1593_v19 = vpop.f32.mrb[12].mxu1  ;;  %v1306_v20 = vpop.f32.mrb[13].mxu0 }
 0x12e   :  { %2994 = vst [vmem:[%s4083_s5] sm:$0x1] %v2993_v16  ;;  %v3127_v22 = vadd.f32 %v3126_v17, %v3125_v11  ;;  %v1595_v23 = vpop.f32.mrb[13].mxu1  ;;  %v1307_v24 = vpop.f32.mrb[14].mxu0 }
 0x12f   :  { %v1596_v27 = vpop.f32.mrb[14].mxu1  ;;  %v1309_v28 = vpop.f32.mrb[15].mxu0 }
 0x130   :  { %3128 = vst [vmem:[%s4084_s6] sm:$0x1] %v3127_v22  ;;  %v1598_v30 = vpop.f32.mrb[15].mxu1 }
 0x131   :  { %1519 = vmatmul.mubr.bf16.gmra.mrb[120].mxu0 %v3263_v21 }
 0x132   :  { %1808 = vmatmul.mubr.bf16.gmra.mrb[120].mxu1 %v3265_v25  ;;  %1526 = vmatprep.mubr.bf16.mxu0 %v3268_v26 }
 0x133   :  { %1815 = vmatprep.mubr.bf16.mxu1 %v3270_v29 }
 0x134   :  { %v1312_v31 = vpop.f32.mrb[16].mxu0 }
 0x135   :  { %v1601_v32 = vpop.f32.mrb[16].mxu1  ;;  %v1314_v33 = vpop.f32.mrb[17].mxu0 }
 0x136   :  { %v1603_v35 = vpop.f32.mrb[17].mxu1  ;;  %v1315_v36 = vpop.f32.mrb[18].mxu0 }
 0x137   :  { %v1604_v38 = vpop.f32.mrb[18].mxu1  ;;  %v1317_v39 = vpop.f32.mrb[19].mxu0 }
 0x138   :  { %v1606_v40 = vpop.f32.mrb[19].mxu1 }
 0x139   :  { %1527 = vmatmul.mubr.bf16.gmra.mrb[124].mxu0 %v3267_v34 }
 0x13a   :  { %1816 = vmatmul.mubr.bf16.gmra.mrb[124].mxu1 %v3269_v37 }
 0x13c   :  { %v1320_v41 = vpop.f32.mrb[20].mxu0 }
 0x13d   :  { %v1609_v42 = vpop.f32.mrb[20].mxu1  ;;  %v1322_v43 = vpop.f32.mrb[21].mxu0 }
 0x13e   :  { %v1611_v44 = vpop.f32.mrb[21].mxu1  ;;  %v1323_v45 = vpop.f32.mrb[22].mxu0 }
 0x13f   :  { %v1612_v46 = vpop.f32.mrb[22].mxu1  ;;  %v1325_v47 = vpop.f32.mrb[23].mxu0 }
 0x140   :  { %v1614_v48 = vpop.f32.mrb[23].mxu1 }
 0x144   :  { %v1328_v49 = vpop.f32.mrb[24].mxu0 }
 0x145   :  { %v1617_v50 = vpop.f32.mrb[24].mxu1  ;;  %v1330_v51 = vpop.f32.mrb[25].mxu0 }
 0x146   :  { %v1619_v52 = vpop.f32.mrb[25].mxu1  ;;  %v1331_v53 = vpop.f32.mrb[26].mxu0 }
 0x147   :  { %v1620_v54 = vpop.f32.mrb[26].mxu1  ;;  %v1333_v55 = vpop.f32.mrb[27].mxu0 }
 0x148   :  { %v1622_v56 = vpop.f32.mrb[27].mxu1 }
 0x14c   :  { %v1336_v57 = vpop.f32.mrb[28].mxu0 }
 0x14d   :  { %v1625_v58 = vpop.f32.mrb[28].mxu1  ;;  %v1338_v59 = vpop.f32.mrb[29].mxu0 }
 0x14e   :  { %v1627_v60 = vpop.f32.mrb[29].mxu1  ;;  %v1339_v61 = vpop.f32.mrb[30].mxu0 }
 0x14f   :  { %v1628_v62 = vpop.f32.mrb[30].mxu1  ;;  %v1341_v63 = vpop.f32.mrb[31].mxu0 }
 0x150   :  { %v1630_v0 = vpop.f32.mrb[31].mxu1 }
 0x154   :  { %v1344_v1 = vpop.f32.mrb[32].mxu0 }
 0x155   :  { %v1633_v2 = vpop.f32.mrb[32].mxu1  ;;  %v1346_v3 = vpop.f32.mrb[33].mxu0 }
 0x156   :  { %v1635_v4 = vpop.f32.mrb[33].mxu1  ;;  %v1347_v5 = vpop.f32.mrb[34].mxu0 }
 0x157   :  { %v1636_v6 = vpop.f32.mrb[34].mxu1  ;;  %v1349_v7 = vpop.f32.mrb[35].mxu0 }
 0x158   :  { %v1638_v8 = vpop.f32.mrb[35].mxu1 }
 0x15c   :  { %v1352_v9 = vpop.f32.mrb[36].mxu0 }
 0x15d   :  { %v1641_v10 = vpop.f32.mrb[36].mxu1  ;;  %v1354_v11 = vpop.f32.mrb[37].mxu0 }
 0x15e   :  { %v1643_v12 = vpop.f32.mrb[37].mxu1  ;;  %v1355_v13 = vpop.f32.mrb[38].mxu0 }
 0x15f   :  { %v1644_v14 = vpop.f32.mrb[38].mxu1  ;;  %v1357_v15 = vpop.f32.mrb[39].mxu0 }
 0x160   :  { %v1646_v16 = vpop.f32.mrb[39].mxu1 }
 0x164   :  { %v1360_v17 = vpop.f32.mrb[40].mxu0 }
 0x165   :  { %v1649_v18 = vpop.f32.mrb[40].mxu1  ;;  %v1362_v19 = vpop.f32.mrb[41].mxu0 }
 0x166   :  { %v1651_v20 = vpop.f32.mrb[41].mxu1  ;;  %v1363_v21 = vpop.f32.mrb[42].mxu0 }
 0x167   :  { %v1652_v22 = vpop.f32.mrb[42].mxu1  ;;  %v1365_v23 = vpop.f32.mrb[43].mxu0 }
 0x168   :  { %v1654_v24 = vpop.f32.mrb[43].mxu1 }
 0x16c   :  { %v1368_v25 = vpop.f32.mrb[44].mxu0 }
 0x16d   :  { %v1657_v26 = vpop.f32.mrb[44].mxu1  ;;  %v1370_v27 = vpop.f32.mrb[45].mxu0 }
 0x16e   :  { %v1659_v28 = vpop.f32.mrb[45].mxu1  ;;  %v1371_v29 = vpop.f32.mrb[46].mxu0 }
 0x16f   :  { %v1660_v30 = vpop.f32.mrb[46].mxu1  ;;  %v1373_v31 = vpop.f32.mrb[47].mxu0 }
 0x170   :  { %v1662_v32 = vpop.f32.mrb[47].mxu1 }
 0x174   :  { %v1376_v33 = vpop.f32.mrb[48].mxu0 }
 0x175   :  { %v1665_v34 = vpop.f32.mrb[48].mxu1  ;;  %v1378_v35 = vpop.f32.mrb[49].mxu0 }
 0x176   :  { %v1667_v36 = vpop.f32.mrb[49].mxu1  ;;  %v1379_v37 = vpop.f32.mrb[50].mxu0 }
 0x177   :  { %v1668_v38 = vpop.f32.mrb[50].mxu1  ;;  %v1381_v39 = vpop.f32.mrb[51].mxu0 }
 0x178   :  { %v1670_v40 = vpop.f32.mrb[51].mxu1 }
 0x17c   :  { %v1384_v41 = vpop.f32.mrb[52].mxu0 }
 0x17d   :  { %v1673_v42 = vpop.f32.mrb[52].mxu1  ;;  %v1386_v43 = vpop.f32.mrb[53].mxu0 }
 0x17e   :  { %v1675_v44 = vpop.f32.mrb[53].mxu1  ;;  %v1387_v45 = vpop.f32.mrb[54].mxu0 }
 0x17f   :  { %v1676_v46 = vpop.f32.mrb[54].mxu1  ;;  %v1389_v47 = vpop.f32.mrb[55].mxu0 }
 0x180   :  { %v1678_v48 = vpop.f32.mrb[55].mxu1 }
 0x184   :  { %v1392_v49 = vpop.f32.mrb[56].mxu0 }
 0x185   :  { %v1681_v50 = vpop.f32.mrb[56].mxu1  ;;  %v1394_v51 = vpop.f32.mrb[57].mxu0 }
 0x186   :  { %v1683_v52 = vpop.f32.mrb[57].mxu1  ;;  %v1395_v53 = vpop.f32.mrb[58].mxu0 }
 0x187   :  { %v1684_v54 = vpop.f32.mrb[58].mxu1  ;;  %v1397_v55 = vpop.f32.mrb[59].mxu0 }
 0x188   :  { %v1686_v56 = vpop.f32.mrb[59].mxu1 }
 0x18c   :  { %v1400_v57 = vpop.f32.mrb[60].mxu0 }
 0x18d   :  { %v1689_v58 = vpop.f32.mrb[60].mxu1  ;;  %v1402_v59 = vpop.f32.mrb[61].mxu0 }
 0x18e   :  { %v1691_v60 = vpop.f32.mrb[61].mxu1  ;;  %v1403_v61 = vpop.f32.mrb[62].mxu0 }
 0x18f   :  { %v1692_v62 = vpop.f32.mrb[62].mxu1  ;;  %v1405_v63 = vpop.f32.mrb[63].mxu0 }
 0x190   :  { %v1694_v0 = vpop.f32.mrb[63].mxu1 }
 0x194   :  { %v1408_v1 = vpop.f32.mrb[64].mxu0 }
 0x195   :  { %v1697_v2 = vpop.f32.mrb[64].mxu1  ;;  %v1410_v3 = vpop.f32.mrb[65].mxu0 }
 0x196   :  { %v1699_v4 = vpop.f32.mrb[65].mxu1  ;;  %v1411_v5 = vpop.f32.mrb[66].mxu0 }
 0x197   :  { %v1700_v6 = vpop.f32.mrb[66].mxu1  ;;  %v1413_v7 = vpop.f32.mrb[67].mxu0 }
 0x198   :  { %v1702_v8 = vpop.f32.mrb[67].mxu1 }
 0x19c   :  { %v1416_v9 = vpop.f32.mrb[68].mxu0 }
 0x19d   :  { %v1705_v10 = vpop.f32.mrb[68].mxu1  ;;  %v1418_v11 = vpop.f32.mrb[69].mxu0 }
 0x19e   :  { %v1707_v12 = vpop.f32.mrb[69].mxu1  ;;  %v1419_v13 = vpop.f32.mrb[70].mxu0 }
 0x19f   :  { %v1708_v14 = vpop.f32.mrb[70].mxu1  ;;  %v1421_v15 = vpop.f32.mrb[71].mxu0 }
 0x1a0   :  { %v1710_v16 = vpop.f32.mrb[71].mxu1 }
 0x1a4   :  { %v1424_v17 = vpop.f32.mrb[72].mxu0 }
 0x1a5   :  { %v1713_v18 = vpop.f32.mrb[72].mxu1  ;;  %v1426_v19 = vpop.f32.mrb[73].mxu0 }
 0x1a6   :  { %v1715_v20 = vpop.f32.mrb[73].mxu1  ;;  %v1427_v21 = vpop.f32.mrb[74].mxu0 }
 0x1a7   :  { %v1716_v22 = vpop.f32.mrb[74].mxu1  ;;  %v1429_v23 = vpop.f32.mrb[75].mxu0 }
 0x1a8   :  { %v1718_v24 = vpop.f32.mrb[75].mxu1 }
 0x1ac   :  { %v1432_v25 = vpop.f32.mrb[76].mxu0 }
 0x1ad   :  { %v1721_v26 = vpop.f32.mrb[76].mxu1  ;;  %v1434_v27 = vpop.f32.mrb[77].mxu0 }
 0x1ae   :  { %v1723_v28 = vpop.f32.mrb[77].mxu1  ;;  %v1435_v29 = vpop.f32.mrb[78].mxu0 }
 0x1af   :  { %v1724_v30 = vpop.f32.mrb[78].mxu1  ;;  %v1437_v31 = vpop.f32.mrb[79].mxu0 }
 0x1b0   :  { %v1726_v32 = vpop.f32.mrb[79].mxu1 }
 0x1b4   :  { %v1440_v33 = vpop.f32.mrb[80].mxu0 }
 0x1b5   :  { %v1729_v34 = vpop.f32.mrb[80].mxu1  ;;  %v1442_v35 = vpop.f32.mrb[81].mxu0 }
 0x1b6   :  { %v1731_v36 = vpop.f32.mrb[81].mxu1  ;;  %v1443_v37 = vpop.f32.mrb[82].mxu0 }
 0x1b7   :  { %v1732_v38 = vpop.f32.mrb[82].mxu1  ;;  %v1445_v39 = vpop.f32.mrb[83].mxu0 }
 0x1b8   :  { %v1734_v40 = vpop.f32.mrb[83].mxu1 }
 0x1bc   :  { %v1448_v41 = vpop.f32.mrb[84].mxu0 }
 0x1bd   :  { %v1737_v42 = vpop.f32.mrb[84].mxu1  ;;  %v1450_v43 = vpop.f32.mrb[85].mxu0 }
 0x1be   :  { %v1739_v44 = vpop.f32.mrb[85].mxu1  ;;  %v1451_v45 = vpop.f32.mrb[86].mxu0 }
 0x1bf   :  { %v1740_v46 = vpop.f32.mrb[86].mxu1  ;;  %v1453_v47 = vpop.f32.mrb[87].mxu0 }
 0x1c0   :  { %v1742_v48 = vpop.f32.mrb[87].mxu1 }
 0x1c4   :  { %v1456_v49 = vpop.f32.mrb[88].mxu0 }
 0x1c5   :  { %v1745_v50 = vpop.f32.mrb[88].mxu1  ;;  %v1458_v51 = vpop.f32.mrb[89].mxu0 }
 0x1c6   :  { %v1747_v52 = vpop.f32.mrb[89].mxu1  ;;  %v1459_v53 = vpop.f32.mrb[90].mxu0 }
 0x1c7   :  { %v1748_v54 = vpop.f32.mrb[90].mxu1  ;;  %v1461_v55 = vpop.f32.mrb[91].mxu0 }
 0x1c8   :  { %v1750_v56 = vpop.f32.mrb[91].mxu1 }
 0x1cc   :  { %v1464_v57 = vpop.f32.mrb[92].mxu0 }
 0x1cd   :  { %v1753_v58 = vpop.f32.mrb[92].mxu1  ;;  %v1466_v59 = vpop.f32.mrb[93].mxu0 }
 0x1ce   :  { %v1755_v60 = vpop.f32.mrb[93].mxu1  ;;  %v1467_v61 = vpop.f32.mrb[94].mxu0 }
 0x1cf   :  { %v1756_v62 = vpop.f32.mrb[94].mxu1  ;;  %v1469_v63 = vpop.f32.mrb[95].mxu0 }
 0x1d0   :  { %v1758_v0 = vpop.f32.mrb[95].mxu1 }
 0x1d4   :  { %v1472_v1 = vpop.f32.mrb[96].mxu0 }
 0x1d5   :  { %v1761_v2 = vpop.f32.mrb[96].mxu1  ;;  %v1474_v3 = vpop.f32.mrb[97].mxu0 }
 0x1d6   :  { %v1763_v4 = vpop.f32.mrb[97].mxu1  ;;  %v1475_v5 = vpop.f32.mrb[98].mxu0 }
 0x1d7   :  { %v1764_v6 = vpop.f32.mrb[98].mxu1  ;;  %v1477_v7 = vpop.f32.mrb[99].mxu0 }
 0x1d8   :  { %v1766_v8 = vpop.f32.mrb[99].mxu1 }
 0x1dc   :  { %v1480_v9 = vpop.f32.mrb[100].mxu0 }
 0x1dd   :  { %v1769_v10 = vpop.f32.mrb[100].mxu1  ;;  %v1482_v11 = vpop.f32.mrb[101].mxu0 }
 0x1de   :  { %v1771_v12 = vpop.f32.mrb[101].mxu1  ;;  %v1483_v13 = vpop.f32.mrb[102].mxu0 }
 0x1df   :  { %v1772_v14 = vpop.f32.mrb[102].mxu1  ;;  %v1485_v15 = vpop.f32.mrb[103].mxu0 }
 0x1e0   :  { %v1774_v16 = vpop.f32.mrb[103].mxu1 }
 0x1e4   :  { %v1488_v17 = vpop.f32.mrb[104].mxu0 }
 0x1e5   :  { %v1777_v18 = vpop.f32.mrb[104].mxu1  ;;  %v1490_v19 = vpop.f32.mrb[105].mxu0 }
 0x1e6   :  { %v1779_v20 = vpop.f32.mrb[105].mxu1  ;;  %v1491_v21 = vpop.f32.mrb[106].mxu0 }
 0x1e7   :  { %v1780_v22 = vpop.f32.mrb[106].mxu1  ;;  %v1493_v23 = vpop.f32.mrb[107].mxu0 }
 0x1e8   :  { %v1782_v24 = vpop.f32.mrb[107].mxu1 }
 0x1ec   :  { %v1496_v25 = vpop.f32.mrb[108].mxu0 }
 0x1ed   :  { %v1785_v26 = vpop.f32.mrb[108].mxu1  ;;  %v1498_v27 = vpop.f32.mrb[109].mxu0 }
 0x1ee   :  { %v1787_v28 = vpop.f32.mrb[109].mxu1  ;;  %v1499_v29 = vpop.f32.mrb[110].mxu0 }
 0x1ef   :  { %v1788_v30 = vpop.f32.mrb[110].mxu1  ;;  %v1501_v31 = vpop.f32.mrb[111].mxu0 }
 0x1f0   :  { %v1790_v32 = vpop.f32.mrb[111].mxu1 }
 0x1f4   :  { %v1504_v33 = vpop.f32.mrb[112].mxu0 }
 0x1f5   :  { %v1793_v34 = vpop.f32.mrb[112].mxu1  ;;  %v1506_v35 = vpop.f32.mrb[113].mxu0 }
 0x1f6   :  { %v1795_v36 = vpop.f32.mrb[113].mxu1  ;;  %v1507_v37 = vpop.f32.mrb[114].mxu0 }
 0x1f7   :  { %v1796_v38 = vpop.f32.mrb[114].mxu1  ;;  %v1509_v39 = vpop.f32.mrb[115].mxu0 }
 0x1f8   :  { %v1798_v40 = vpop.f32.mrb[115].mxu1 }
 0x1fc   :  { %v1512_v41 = vpop.f32.mrb[116].mxu0 }
 0x1fd   :  { %v1801_v42 = vpop.f32.mrb[116].mxu1  ;;  %v1514_v43 = vpop.f32.mrb[117].mxu0 }
 0x1fe   :  { %v1803_v44 = vpop.f32.mrb[117].mxu1  ;;  %v1515_v45 = vpop.f32.mrb[118].mxu0 }
 0x1ff   :  { %v1804_v46 = vpop.f32.mrb[118].mxu1  ;;  %v1517_v47 = vpop.f32.mrb[119].mxu0 }
 0x200   :  { %v1806_v48 = vpop.f32.mrb[119].mxu1 }
 0x204   :  { %v1520_v49 = vpop.f32.mrb[120].mxu0 }
 0x205   :  { %v1809_v50 = vpop.f32.mrb[120].mxu1  ;;  %v1522_v51 = vpop.f32.mrb[121].mxu0 }
 0x206   :  { %v1811_v52 = vpop.f32.mrb[121].mxu1  ;;  %v1523_v53 = vpop.f32.mrb[122].mxu0 }
 0x207   :  { %v1812_v54 = vpop.f32.mrb[122].mxu1  ;;  %v1525_v55 = vpop.f32.mrb[123].mxu0 }
 0x208   :  { %v1814_v56 = vpop.f32.mrb[123].mxu1 }
 0x20c   :  { %v1528_v57 = vpop.f32.mrb[124].mxu0 }
 0x20d   :  { %v1817_v58 = vpop.f32.mrb[124].mxu1  ;;  %v1530_v59 = vpop.f32.mrb[125].mxu0 }
 0x20e   :  { %v1819_v60 = vpop.f32.mrb[125].mxu1  ;;  %v1531_v61 = vpop.f32.mrb[126].mxu0 }
 0x20f   :  { %v1820_v62 = vpop.f32.mrb[126].mxu1  ;;  %v1533_v63 = vpop.f32.mrb[127].mxu0 }
 0x210   :  { %v1822_v0 = vpop.f32.mrb[127].mxu1 }

// kernel: gcn_forward.8
= control target key start
LH: loop header
LB: loop body
LE: loop exit
PB: predicated region body
PF: predicated region fallthrough
CT: control target
= control target key end

     0   :  { %v3086_v0 = vmov 0   ;;  %s3691_s1 = inlined_call_operand.vmem [shape: bf16[512,128], index: 1, kind: input, shape index: {}]   ;;  %s3692_s0 = inlined_call_operand.vmem [shape: s8[512,512], index: 0, kind: input, shape index: {}]   ;;  %s3693_s4 = inlined_call_operand.vmem [shape: f32[512,128], index: 4, kind: output, shape index: {0}]   ;;  %s3694_s2 = inlined_call_operand.vmem [shape: bf16[512,128], index: 2, kind: input, shape index: {}]   ;;  %s3695_s3 = inlined_call_operand.vmem [shape: f32[1,128], index: 3, kind: input, shape index: {}]   ;;  %s3696_s5 = inlined_call_operand.vmem [shape: f32[1,128], index: 5, kind: output, shape index: {1}]   ;;  %s3697_s6 = inlined_call_operand.vmem [shape: f32[1,128], index: 6, kind: output, shape index: {2}]  }
   0x1   :  { %1246 = vmatprep.subr.bf16.mxu0 %v3086_v0  ;;  %1535 = vmatprep.subr.bf16.mxu1 %v3086_v0  ;;  %v3054_v1 = vld [vmem:[%s3691_s1] sm:$0xff]   ;;  %v3056_v3 = vld [vmem:[%s3691_s1 + $0x8] sm:$0xff]   ;;  %v3058_v5 = vld [vmem:[%s3691_s1 + $0x10] sm:$0xff]  }
   0x2   :  { %v3055_v2 = vld [vmem:[%s3691_s1 + $0x80] sm:$0xff]   ;;  %1247 = vmatpush1.bf16.msra.mxu0 %v3054_v1  ;;  %v3057_v4 = vld [vmem:[%s3691_s1 + $0x88] sm:$0xff]   ;;  %v3059_v6 = vld [vmem:[%s3691_s1 + $0x90] sm:$0xff]  }
   0x3   :  { %1536 = vmatpush1.bf16.msra.mxu1 %v3055_v2  ;;  %1248 = vmatprep.subr.bf16.mxu0 %v3086_v0  ;;  %v3060_v7 = vld [vmem:[%s3691_s1 + $0x18] sm:$0xff]   ;;  %v3062_v9 = vld [vmem:[%s3691_s1 + $0x20] sm:$0xff]   ;;  %v3064_v11 = vld [vmem:[%s3691_s1 + $0x28] sm:$0xff]  }
   0x4   :  { %1537 = vmatprep.subr.bf16.mxu1 %v3086_v0  ;;  %v3061_v8 = vld [vmem:[%s3691_s1 + $0x98] sm:$0xff]   ;;  %v3063_v10 = vld [vmem:[%s3691_s1 + $0xa0] sm:$0xff]   ;;  %v3065_v12 = vld [vmem:[%s3691_s1 + $0xa8] sm:$0xff]  }
   0x5   :  { %v3066_v13 = vld [vmem:[%s3691_s1 + $0x30] sm:$0xff]   ;;  %v3068_v15 = vld [vmem:[%s3691_s1 + $0x38] sm:$0xff]   ;;  %v3070_v17 = vld [vmem:[%s3691_s1 + $0x40] sm:$0xff]  }
   0x6   :  { %1249 = vmatpush1.bf16.msra.mxu0 %v3056_v3  ;;  %v3067_v14 = vld [vmem:[%s3691_s1 + $0xb0] sm:$0xff]   ;;  %v3069_v16 = vld [vmem:[%s3691_s1 + $0xb8] sm:$0xff]   ;;  %v3071_v18 = vld [vmem:[%s3691_s1 + $0xc0] sm:$0xff]  }
   0x7   :  { %1538 = vmatpush1.bf16.msra.mxu1 %v3057_v4  ;;  %1250 = vmatprep.subr.bf16.mxu0 %v3086_v0  ;;  %v89_v19 = vld [vmem:[%s3692_s0] sm:$0xff]  ;;  %v90_v20 = vld [vmem:[%s3692_s0 + $0x8] sm:$0xff]  ;;  %v3074_v29 = vld [vmem:[%s3691_s1 + $0x50] sm:$0xff]  }
   0x8   :  { %1539 = vmatprep.subr.bf16.mxu1 %v3086_v0  ;;  %v153_v21 = vunpack.c.l.s8.bf16 %v89_v19  ;;  %v155_v22 = vunpack.c.l.s8.bf16 %v90_v20  ;;  %v154_v23 = vunpack.c.h.s8.bf16 %v89_v19  ;;  %v156_v24 = vunpack.c.h.s8.bf16 %v90_v20  ;;  %v3072_v25 = vld [vmem:[%s3691_s1 + $0x48] sm:$0xff]   ;;  %v3075_v30 = vld [vmem:[%s3691_s1 + $0xd0] sm:$0xff]   ;;  %v3076_v31 = vld [vmem:[%s3691_s1 + $0x58] sm:$0xff]  }
   0x9   :  { %v3073_v26 = vld [vmem:[%s3691_s1 + $0xc8] sm:$0xff]   ;;  %v3077_v32 = vld [vmem:[%s3691_s1 + $0xd8] sm:$0xff]   ;;  %v3078_v33 = vld [vmem:[%s3691_s1 + $0x60] sm:$0xff]  }
   0xa   :  { %1251 = vmatpush1.bf16.msra.mxu0 %v3058_v5  ;;  %v2888_v27 = vcombine.high %v153_v21, %v155_v22  ;;  %v2890_v28 = vcombine.high %v154_v23, %v156_v24  ;;  %v3079_v34 = vld [vmem:[%s3691_s1 + $0xe0] sm:$0xff]   ;;  %v3080_v35 = vld [vmem:[%s3691_s1 + $0x68] sm:$0xff]   ;;  %v3082_v37 = vld [vmem:[%s3691_s1 + $0x70] sm:$0xff]   ;;  %v2887_v47 = vcombine.low %v153_v21, %v155_v22  ;;  %v2889_v48 = vcombine.low %v154_v23, %v156_v24 }
   0xb   :  { %1540 = vmatpush1.bf16.msra.mxu1 %v3059_v6  ;;  %1252 = vmatprep.subr.bf16.mxu0 %v3086_v0  ;;  %v3081_v36 = vld [vmem:[%s3691_s1 + $0xe8] sm:$0xff]   ;;  %v3083_v38 = vld [vmem:[%s3691_s1 + $0xf0] sm:$0xff]   ;;  %v92_v40 = vld [vmem:[%s3692_s0 + $0x18] sm:$0xff] }
   0xc   :  { %1541 = vmatprep.subr.bf16.mxu1 %v3086_v0  ;;  %1278 = vmatprep.mubr.bf16.mxu0 %v2888_v27  ;;  %v91_v39 = vld [vmem:[%s3692_s0 + $0x10] sm:$0xff]  ;;  %v3084_v41 = vld [vmem:[%s3691_s1 + $0x78] sm:$0xff]   ;;  %v159_v43 = vunpack.c.l.s8.bf16 %v92_v40  ;;  %v160_v46 = vunpack.c.h.s8.bf16 %v92_v40  ;;  %v93_v51 = vld [vmem:[%s3692_s0 + $0x20] sm:$0xff] }
   0xd   :  { %1567 = vmatprep.mubr.bf16.mxu1 %v2890_v28  ;;  %v157_v42 = vunpack.c.l.s8.bf16 %v91_v39  ;;  %v3085_v44 = vld [vmem:[%s3691_s1 + $0xf8] sm:$0xff]   ;;  %v158_v45 = vunpack.c.h.s8.bf16 %v91_v39  ;;  %v94_v52 = vld [vmem:[%s3692_s0 + $0x28] sm:$0xff]  ;;  %v161_v53 = vunpack.c.l.s8.bf16 %v93_v51  ;;  %v162_v55 = vunpack.c.h.s8.bf16 %v93_v51  ;;  %v95_v61 = vld [vmem:[%s3692_s0 + $0x30] sm:$0xff] }
   0xe   :  { %1253 = vmatpush1.bf16.msra.mxu0 %v3060_v7  ;;  %v163_v54 = vunpack.c.l.s8.bf16 %v94_v52  ;;  %v164_v56 = vunpack.c.h.s8.bf16 %v94_v52  ;;  %v96_v62 = vld [vmem:[%s3692_s0 + $0x38] sm:$0xff]  ;;  %v165_v63 = vunpack.c.l.s8.bf16 %v95_v61  ;;  %v166_v1 = vunpack.c.h.s8.bf16 %v95_v61  ;;  %v97_v7 = vld [vmem:[%s3692_s0 + $0x40] sm:$0xff]  ;;  %v102_v28 = vld [vmem:[%s3692_s0 + $0x68] sm:$0xff] }
   0xf   :  { %1542 = vmatpush1.bf16.msra.mxu1 %v3061_v8  ;;  %1254 = vmatprep.subr.bf16.mxu0 %v3086_v0  ;;  %v2892_v49 = vcombine.high %v157_v42, %v159_v43  ;;  %v2894_v50 = vcombine.high %v158_v45, %v160_v46  ;;  %v2891_v57 = vcombine.low %v157_v42, %v159_v43  ;;  %v168_v2 = vunpack.c.h.s8.bf16 %v96_v62  ;;  %v98_v8 = vld [vmem:[%s3692_s0 + $0x48] sm:$0xff]  ;;  %v101_v27 = vld [vmem:[%s3692_s0 + $0x60] sm:$0xff] }
  0x10   :  { %1543 = vmatprep.subr.bf16.mxu1 %v3086_v0  ;;  %v2893_v58 = vcombine.low %v158_v45, %v160_v46  ;;  %v2896_v59 = vcombine.high %v161_v53, %v163_v54  ;;  %v2898_v60 = vcombine.high %v162_v55, %v164_v56  ;;  %v2895_v3 = vcombine.low %v161_v53, %v163_v54 }
  0x11   :  { %v2897_v4 = vcombine.low %v162_v55, %v164_v56  ;;  %v2902_v6 = vcombine.high %v166_v1, %v168_v2 }
  0x12   :  { %1255 = vmatpush1.bf16.msra.mxu0 %v3062_v9  ;;  %v169_v9 = vunpack.c.l.s8.bf16 %v97_v7 }
  0x13   :  { %1544 = vmatpush1.bf16.msra.mxu1 %v3063_v10  ;;  %1256 = vmatprep.subr.bf16.mxu0 %v3086_v0  ;;  %v171_v10 = vunpack.c.l.s8.bf16 %v98_v8 }
  0x14   :  { %1545 = vmatprep.subr.bf16.mxu1 %v3086_v0 }
  0x15   :  { %v2903_v23 = vcombine.low %v169_v9, %v171_v10 }
  0x16   :  { %1257 = vmatpush1.bf16.msra.mxu0 %v3064_v11  ;;  %v170_v11 = vunpack.c.h.s8.bf16 %v97_v7 }
  0x17   :  { %1546 = vmatpush1.bf16.msra.mxu1 %v3065_v12  ;;  %1258 = vmatprep.subr.bf16.mxu0 %v3086_v0  ;;  %v172_v12 = vunpack.c.h.s8.bf16 %v98_v8 }
  0x18   :  { %1547 = vmatprep.subr.bf16.mxu1 %v3086_v0 }
  0x19   :  { %v2905_v24 = vcombine.low %v170_v11, %v172_v12 }
  0x1a   :  { %1259 = vmatpush1.bf16.msra.mxu0 %v3066_v13 }
  0x1b   :  { %1548 = vmatpush1.bf16.msra.mxu1 %v3067_v14  ;;  %1260 = vmatprep.subr.bf16.mxu0 %v3086_v0  ;;  %v2901_v14 = vcombine.low %v166_v1, %v168_v2 }
  0x1c   :  { %1549 = vmatprep.subr.bf16.mxu1 %v3086_v0 }
  0x1e   :  { %1261 = vmatpush1.bf16.msra.mxu0 %v3068_v15  ;;  %v2904_v15 = vcombine.high %v169_v9, %v171_v10 }
  0x1f   :  { %1550 = vmatpush1.bf16.msra.mxu1 %v3069_v16  ;;  %1262 = vmatprep.subr.bf16.mxu0 %v3086_v0  ;;  %v2906_v16 = vcombine.high %v170_v11, %v172_v12 }
  0x20   :  { %1551 = vmatprep.subr.bf16.mxu1 %v3086_v0 }
  0x22   :  { %1263 = vmatpush1.bf16.msra.mxu0 %v3070_v17  ;;  %v99_v17 = vld [vmem:[%s3692_s0 + $0x50] sm:$0xff] }
  0x23   :  { %1552 = vmatpush1.bf16.msra.mxu1 %v3071_v18  ;;  %1264 = vmatprep.subr.bf16.mxu0 %v3086_v0  ;;  %v100_v18 = vld [vmem:[%s3692_s0 + $0x58] sm:$0xff]  ;;  %v173_v19 = vunpack.c.l.s8.bf16 %v99_v17  ;;  %v174_v21 = vunpack.c.h.s8.bf16 %v99_v17 }
  0x24   :  { %1553 = vmatprep.subr.bf16.mxu1 %v3086_v0  ;;  %v175_v20 = vunpack.c.l.s8.bf16 %v100_v18  ;;  %v176_v22 = vunpack.c.h.s8.bf16 %v100_v18 }
  0x26   :  { %1265 = vmatpush1.bf16.msra.mxu0 %v3072_v25  ;;  %v2908_v25 = vcombine.high %v173_v19, %v175_v20 }
  0x27   :  { %1554 = vmatpush1.bf16.msra.mxu1 %v3073_v26  ;;  %1266 = vmatprep.subr.bf16.mxu0 %v3086_v0  ;;  %v2910_v26 = vcombine.high %v174_v21, %v176_v22 }
  0x28   :  { %1555 = vmatprep.subr.bf16.mxu1 %v3086_v0 }
  0x2a   :  { %1267 = vmatpush1.bf16.msra.mxu0 %v3074_v29  ;;  %v177_v29 = vunpack.c.l.s8.bf16 %v101_v27 }
  0x2b   :  { %1556 = vmatpush1.bf16.msra.mxu1 %v3075_v30  ;;  %1268 = vmatprep.subr.bf16.mxu0 %v3086_v0  ;;  %v179_v30 = vunpack.c.l.s8.bf16 %v102_v28 }
  0x2c   :  { %1557 = vmatprep.subr.bf16.mxu1 %v3086_v0 }
  0x2d   :  { %v2911_v43 = vcombine.low %v177_v29, %v179_v30 }
  0x2e   :  { %1269 = vmatpush1.bf16.msra.mxu0 %v3076_v31  ;;  %v178_v31 = vunpack.c.h.s8.bf16 %v101_v27 }
  0x2f   :  { %1558 = vmatpush1.bf16.msra.mxu1 %v3077_v32  ;;  %1270 = vmatprep.subr.bf16.mxu0 %v3086_v0  ;;  %v180_v32 = vunpack.c.h.s8.bf16 %v102_v28 }
  0x30   :  { %1559 = vmatprep.subr.bf16.mxu1 %v3086_v0 }
  0x32   :  { %1271 = vmatpush1.bf16.msra.mxu0 %v3078_v33  ;;  %v2907_v33 = vcombine.low %v173_v19, %v175_v20 }
  0x33   :  { %1560 = vmatpush1.bf16.msra.mxu1 %v3079_v34  ;;  %1272 = vmatprep.subr.bf16.mxu0 %v3086_v0  ;;  %v2909_v34 = vcombine.low %v174_v21, %v176_v22 }
  0x34   :  { %1561 = vmatprep.subr.bf16.mxu1 %v3086_v0 }
  0x36   :  { %1273 = vmatpush1.bf16.msra.mxu0 %v3080_v35  ;;  %v2912_v35 = vcombine.high %v177_v29, %v179_v30 }
  0x37   :  { %1562 = vmatpush1.bf16.msra.mxu1 %v3081_v36  ;;  %1274 = vmatprep.subr.bf16.mxu0 %v3086_v0  ;;  %v2914_v36 = vcombine.high %v178_v31, %v180_v32 }
  0x38   :  { %1563 = vmatprep.subr.bf16.mxu1 %v3086_v0 }
  0x3a   :  { %1275 = vmatpush1.bf16.msra.mxu0 %v3082_v37  ;;  %v103_v37 = vld [vmem:[%s3692_s0 + $0x70] sm:$0xff] }
  0x3b   :  { %1564 = vmatpush1.bf16.msra.mxu1 %v3083_v38  ;;  %1276 = vmatprep.subr.bf16.mxu0 %v3086_v0  ;;  %v104_v38 = vld [vmem:[%s3692_s0 + $0x78] sm:$0xff]  ;;  %v181_v39 = vunpack.c.l.s8.bf16 %v103_v37 }
  0x3c   :  { %1565 = vmatprep.subr.bf16.mxu1 %v3086_v0  ;;  %v167_v0 = vunpack.c.l.s8.bf16 %v96_v62  ;;  %v183_v40 = vunpack.c.l.s8.bf16 %v104_v38  ;;  %v184_v42 = vunpack.c.h.s8.bf16 %v104_v38 }
  0x3e   :  { %1277 = vmatpush1.bf16.msra.mxu0 %v3084_v41  ;;  %v2900_v5 = vcombine.high %v165_v63, %v167_v0  ;;  %v2899_v13 = vcombine.low %v165_v63, %v167_v0  ;;  %v182_v41 = vunpack.c.h.s8.bf16 %v103_v37  ;;  %v2916_v45 = vcombine.high %v181_v39, %v183_v40 }
  0x3f   :  { %1566 = vmatpush1.bf16.msra.mxu1 %v3085_v44  ;;  %v2913_v44 = vcombine.low %v178_v31, %v180_v32  ;;  %v2915_v53 = vcombine.low %v181_v39, %v183_v40 }
  0x40   :  { %v2918_v46 = vcombine.high %v182_v41, %v184_v42  ;;  %v2917_v54 = vcombine.low %v182_v41, %v184_v42 }
  0x41   :  { %1279 = vmatmul.mubr.bf16.vlgmr.msra.gmra.mrb[0].mxu0 %v2887_v47  ;;  %v105_v47 = vld [vmem:[%s3692_s0 + $0x80] sm:$0xff] }
  0x42   :  { %1568 = vmatmul.mubr.bf16.vlgmr.msra.gmra.mrb[0].mxu1 %v2889_v48  ;;  %1286 = vmatprep.mubr.bf16.mxu0 %v2892_v49  ;;  %v106_v48 = vld [vmem:[%s3692_s0 + $0x88] sm:$0xff]  ;;  %v185_v49 = vunpack.c.l.s8.bf16 %v105_v47  ;;  %v186_v51 = vunpack.c.h.s8.bf16 %v105_v47 }
  0x43   :  { %1575 = vmatprep.mubr.bf16.mxu1 %v2894_v50  ;;  %v187_v50 = vunpack.c.l.s8.bf16 %v106_v48  ;;  %v188_v52 = vunpack.c.h.s8.bf16 %v106_v48 }
  0x45   :  { %v2920_v55 = vcombine.high %v185_v49, %v187_v50  ;;  %v2922_v56 = vcombine.high %v186_v51, %v188_v52  ;;  %v2919_v63 = vcombine.low %v185_v49, %v187_v50  ;;  %v2921_v0 = vcombine.low %v186_v51, %v188_v52 }
  0x49   :  { %1287 = vmatmul.mubr.bf16.gmra.mrb[4].mxu0 %v2891_v57  ;;  %v107_v57 = vld [vmem:[%s3692_s0 + $0x90] sm:$0xff] }
  0x4a   :  { %1576 = vmatmul.mubr.bf16.gmra.mrb[4].mxu1 %v2893_v58  ;;  %1294 = vmatprep.mubr.bf16.mxu0 %v2896_v59  ;;  %v108_v58 = vld [vmem:[%s3692_s0 + $0x98] sm:$0xff]  ;;  %v189_v59 = vunpack.c.l.s8.bf16 %v107_v57  ;;  %v190_v61 = vunpack.c.h.s8.bf16 %v107_v57 }
  0x4b   :  { %1583 = vmatprep.mubr.bf16.mxu1 %v2898_v60  ;;  %v191_v60 = vunpack.c.l.s8.bf16 %v108_v58  ;;  %v192_v62 = vunpack.c.h.s8.bf16 %v108_v58 }
  0x4d   :  { %v2924_v1 = vcombine.high %v189_v59, %v191_v60  ;;  %v2926_v2 = vcombine.high %v190_v61, %v192_v62  ;;  %v2923_v9 = vcombine.low %v189_v59, %v191_v60  ;;  %v2925_v10 = vcombine.low %v190_v61, %v192_v62 }
  0x51   :  { %1295 = vmatmul.mubr.bf16.gmra.mrb[8].mxu0 %v2895_v3  ;;  %v109_v3 = vld [vmem:[%s3692_s0 + $0xa0] sm:$0xff] }
  0x52   :  { %1584 = vmatmul.mubr.bf16.gmra.mrb[8].mxu1 %v2897_v4  ;;  %1302 = vmatprep.mubr.bf16.mxu0 %v2900_v5  ;;  %v110_v4 = vld [vmem:[%s3692_s0 + $0xa8] sm:$0xff]  ;;  %v193_v5 = vunpack.c.l.s8.bf16 %v109_v3  ;;  %v194_v7 = vunpack.c.h.s8.bf16 %v109_v3 }
  0x53   :  { %1591 = vmatprep.mubr.bf16.mxu1 %v2902_v6  ;;  %v195_v6 = vunpack.c.l.s8.bf16 %v110_v4  ;;  %v196_v8 = vunpack.c.h.s8.bf16 %v110_v4 }
  0x55   :  { %v2928_v11 = vcombine.high %v193_v5, %v195_v6  ;;  %v2930_v12 = vcombine.high %v194_v7, %v196_v8  ;;  %v2927_v19 = vcombine.low %v193_v5, %v195_v6  ;;  %v2929_v20 = vcombine.low %v194_v7, %v196_v8 }
  0x59   :  { %1303 = vmatmul.mubr.bf16.gmra.mrb[12].mxu0 %v2899_v13  ;;  %v111_v13 = vld [vmem:[%s3692_s0 + $0xb0] sm:$0xff] }
  0x5a   :  { %1592 = vmatmul.mubr.bf16.gmra.mrb[12].mxu1 %v2901_v14  ;;  %1310 = vmatprep.mubr.bf16.mxu0 %v2904_v15  ;;  %v112_v14 = vld [vmem:[%s3692_s0 + $0xb8] sm:$0xff]  ;;  %v197_v15 = vunpack.c.l.s8.bf16 %v111_v13  ;;  %v198_v17 = vunpack.c.h.s8.bf16 %v111_v13 }
  0x5b   :  { %1599 = vmatprep.mubr.bf16.mxu1 %v2906_v16  ;;  %v199_v16 = vunpack.c.l.s8.bf16 %v112_v14  ;;  %v200_v18 = vunpack.c.h.s8.bf16 %v112_v14 }
  0x5d   :  { %v2932_v21 = vcombine.high %v197_v15, %v199_v16  ;;  %v2934_v22 = vcombine.high %v198_v17, %v200_v18  ;;  %v2931_v29 = vcombine.low %v197_v15, %v199_v16  ;;  %v2933_v30 = vcombine.low %v198_v17, %v200_v18 }
  0x61   :  { %1311 = vmatmul.mubr.bf16.gmra.mrb[16].mxu0 %v2903_v23  ;;  %v113_v23 = vld [vmem:[%s3692_s0 + $0xc0] sm:$0xff] }
  0x62   :  { %1600 = vmatmul.mubr.bf16.gmra.mrb[16].mxu1 %v2905_v24  ;;  %1318 = vmatprep.mubr.bf16.mxu0 %v2908_v25  ;;  %v114_v24 = vld [vmem:[%s3692_s0 + $0xc8] sm:$0xff]  ;;  %v201_v25 = vunpack.c.l.s8.bf16 %v113_v23  ;;  %v202_v27 = vunpack.c.h.s8.bf16 %v113_v23 }
  0x63   :  { %1607 = vmatprep.mubr.bf16.mxu1 %v2910_v26  ;;  %v203_v26 = vunpack.c.l.s8.bf16 %v114_v24  ;;  %v204_v28 = vunpack.c.h.s8.bf16 %v114_v24 }
  0x65   :  { %v2936_v31 = vcombine.high %v201_v25, %v203_v26  ;;  %v2938_v32 = vcombine.high %v202_v27, %v204_v28  ;;  %v3343_v39 = vcombine.low %v201_v25, %v203_v26  ;;  %v3345_v40 = vcombine.low %v202_v27, %v204_v28 }
  0x69   :  { %1319 = vmatmul.mubr.bf16.gmra.mrb[20].mxu0 %v2907_v33  ;;  %v3332_v33 = vld [vmem:[%s3692_s0 + $0xd0] sm:$0xff] }
  0x6a   :  { %1608 = vmatmul.mubr.bf16.gmra.mrb[20].mxu1 %v2909_v34  ;;  %1326 = vmatprep.mubr.bf16.mxu0 %v2912_v35  ;;  %v3337_v34 = vld [vmem:[%s3692_s0 + $0xd8] sm:$0xff]  ;;  %v205_v35 = vunpack.c.l.s8.bf16 %v3332_v33  ;;  %v206_v37 = vunpack.c.h.s8.bf16 %v3332_v33 }
  0x6b   :  { %1615 = vmatprep.mubr.bf16.mxu1 %v2914_v36  ;;  %v207_v36 = vunpack.c.l.s8.bf16 %v3337_v34  ;;  %v208_v38 = vunpack.c.h.s8.bf16 %v3337_v34 }
  0x6d   :  { %v3351_v41 = vcombine.high %v205_v35, %v207_v36  ;;  %v3357_v42 = vcombine.high %v206_v37, %v208_v38  ;;  %v2939_v50 = vcombine.low %v205_v35, %v207_v36  ;;  %v2941_v51 = vcombine.low %v206_v37, %v208_v38 }
  0x71   :  { %1327 = vmatmul.mubr.bf16.gmra.mrb[24].mxu0 %v2911_v43  ;;  %v3362_v43 = vld [vmem:[%s3692_s0 + $0xe0] sm:$0xff] }
  0x72   :  { %1616 = vmatmul.mubr.bf16.gmra.mrb[24].mxu1 %v2913_v44  ;;  %1334 = vmatprep.mubr.bf16.mxu0 %v2916_v45  ;;  %v3367_v44 = vld [vmem:[%s3692_s0 + $0xe8] sm:$0xff]  ;;  %v3087_v45 = vmov 0.0   ;;  %v210_v48 = vunpack.c.h.s8.bf16 %v3362_v43 }
  0x73   :  { %1623 = vmatprep.mubr.bf16.mxu1 %v2918_v46  ;;  %2607 = vst [vmem:[%s3693_s4 + $0x10] sm:$0xff] %v3087_v45  ;;  %2608 = vst [vmem:[%s3693_s4 + $0x18] sm:$0xff] %v3087_v45  ;;  %v209_v46 = vunpack.c.l.s8.bf16 %v3362_v43  ;;  %v211_v47 = vunpack.c.l.s8.bf16 %v3367_v44  ;;  %v212_v49 = vunpack.c.h.s8.bf16 %v3367_v44 }
  0x74   :  { %2609 = vst [vmem:[%s3693_s4 + $0x20] sm:$0xff] %v3087_v45  ;;  %2610 = vst [vmem:[%s3693_s4 + $0x28] sm:$0xff] %v3087_v45 }
  0x75   :  { %2611 = vst [vmem:[%s3693_s4 + $0x30] sm:$0xff] %v3087_v45  ;;  %2612 = vst [vmem:[%s3693_s4 + $0x38] sm:$0xff] %v3087_v45  ;;  %v2944_v52 = vcombine.high %v209_v46, %v211_v47  ;;  %v2943_v60 = vcombine.low %v209_v46, %v211_v47  ;;  %v2945_v61 = vcombine.low %v210_v48, %v212_v49 }
  0x76   :  { %2613 = vst [vmem:[%s3693_s4 + $0x40] sm:$0xff] %v3087_v45  ;;  %2614 = vst [vmem:[%s3693_s4 + $0x48] sm:$0xff] %v3087_v45 }
  0x77   :  { %2615 = vst [vmem:[%s3693_s4 + $0x50] sm:$0xff] %v3087_v45  ;;  %2616 = vst [vmem:[%s3693_s4 + $0x58] sm:$0xff] %v3087_v45 }
  0x78   :  { %2617 = vst [vmem:[%s3693_s4 + $0x60] sm:$0xff] %v3087_v45  ;;  %2618 = vst [vmem:[%s3693_s4 + $0x68] sm:$0xff] %v3087_v45 }
  0x79   :  { %1335 = vmatmul.mubr.bf16.gmra.mrb[28].mxu0 %v2915_v53  ;;  %2619 = vst [vmem:[%s3693_s4 + $0x70] sm:$0xff] %v3087_v45  ;;  %2620 = vst [vmem:[%s3693_s4 + $0x78] sm:$0xff] %v3087_v45  ;;  %v2946_v53 = vcombine.high %v210_v48, %v212_v49 }
  0x7a   :  { %1624 = vmatmul.mubr.bf16.gmra.mrb[28].mxu1 %v2917_v54  ;;  %1342 = vmatprep.mubr.bf16.mxu0 %v2920_v55  ;;  %2621 = vst [vmem:[%s3693_s4 + $0x80] sm:$0xff] %v3087_v45  ;;  %2622 = vst [vmem:[%s3693_s4 + $0x88] sm:$0xff] %v3087_v45  ;;  %v119_v54 = vld [vmem:[%s3692_s0 + $0xf0] sm:$0xff]  ;;  %v120_v55 = vld [vmem:[%s3692_s0 + $0xf8] sm:$0xff] }
  0x7b   :  { %1631 = vmatprep.mubr.bf16.mxu1 %v2922_v56  ;;  %2623 = vst [vmem:[%s3693_s4 + $0x90] sm:$0xff] %v3087_v45  ;;  %2624 = vst [vmem:[%s3693_s4 + $0x98] sm:$0xff] %v3087_v45  ;;  %v213_v56 = vunpack.c.l.s8.bf16 %v119_v54  ;;  %v215_v57 = vunpack.c.l.s8.bf16 %v120_v55  ;;  %v214_v58 = vunpack.c.h.s8.bf16 %v119_v54  ;;  %v216_v59 = vunpack.c.h.s8.bf16 %v120_v55 }
  0x7c   :  { %2625 = vst [vmem:[%s3693_s4 + $0xa0] sm:$0xff] %v3087_v45  ;;  %2626 = vst [vmem:[%s3693_s4 + $0xa8] sm:$0xff] %v3087_v45 }
  0x7d   :  { %2627 = vst [vmem:[%s3693_s4 + $0xb0] sm:$0xff] %v3087_v45  ;;  %2628 = vst [vmem:[%s3693_s4 + $0xb8] sm:$0xff] %v3087_v45  ;;  %v2948_v62 = vcombine.high %v213_v56, %v215_v57  ;;  %v2947_v6 = vcombine.low %v213_v56, %v215_v57  ;;  %v2949_v7 = vcombine.low %v214_v58, %v216_v59 }
  0x7e   :  { %2629 = vst [vmem:[%s3693_s4 + $0xc0] sm:$0xff] %v3087_v45  ;;  %2630 = vst [vmem:[%s3693_s4 + $0xc8] sm:$0xff] %v3087_v45 }
  0x7f   :  { %2631 = vst [vmem:[%s3693_s4 + $0xd0] sm:$0xff] %v3087_v45  ;;  %2632 = vst [vmem:[%s3693_s4 + $0xd8] sm:$0xff] %v3087_v45 }
  0x80   :  { %2633 = vst [vmem:[%s3693_s4 + $0xe0] sm:$0xff] %v3087_v45  ;;  %2634 = vst [vmem:[%s3693_s4 + $0xe8] sm:$0xff] %v3087_v45 }
  0x81   :  { %1343 = vmatmul.mubr.bf16.gmra.mrb[32].mxu0 %v2919_v63  ;;  %2635 = vst [vmem:[%s3693_s4 + $0xf0] sm:$0xff] %v3087_v45  ;;  %2636 = vst [vmem:[%s3693_s4 + $0xf8] sm:$0xff] %v3087_v45  ;;  %v2950_v63 = vcombine.high %v214_v58, %v216_v59 }
  0x82   :  { %1632 = vmatmul.mubr.bf16.gmra.mrb[32].mxu1 %v2921_v0  ;;  %1350 = vmatprep.mubr.bf16.mxu0 %v2924_v1  ;;  %2637 = vst [vmem:[%s3693_s4 + $0x100] sm:$0xff] %v3087_v45  ;;  %2638 = vst [vmem:[%s3693_s4 + $0x108] sm:$0xff] %v3087_v45  ;;  %v121_v0 = vld [vmem:[%s3692_s0 + $0x100] sm:$0xff]  ;;  %v122_v1 = vld [vmem:[%s3692_s0 + $0x108] sm:$0xff] }
  0x83   :  { %1639 = vmatprep.mubr.bf16.mxu1 %v2926_v2  ;;  %2639 = vst [vmem:[%s3693_s4 + $0x110] sm:$0xff] %v3087_v45  ;;  %2640 = vst [vmem:[%s3693_s4 + $0x118] sm:$0xff] %v3087_v45  ;;  %v217_v2 = vunpack.c.l.s8.bf16 %v121_v0  ;;  %v219_v3 = vunpack.c.l.s8.bf16 %v122_v1  ;;  %v218_v4 = vunpack.c.h.s8.bf16 %v121_v0  ;;  %v220_v5 = vunpack.c.h.s8.bf16 %v122_v1 }
  0x84   :  { %2641 = vst [vmem:[%s3693_s4 + $0x120] sm:$0xff] %v3087_v45  ;;  %2642 = vst [vmem:[%s3693_s4 + $0x128] sm:$0xff] %v3087_v45 }
  0x85   :  { %2643 = vst [vmem:[%s3693_s4 + $0x130] sm:$0xff] %v3087_v45  ;;  %2644 = vst [vmem:[%s3693_s4 + $0x138] sm:$0xff] %v3087_v45  ;;  %v2952_v8 = vcombine.high %v217_v2, %v219_v3  ;;  %v2951_v16 = vcombine.low %v217_v2, %v219_v3  ;;  %v2953_v17 = vcombine.low %v218_v4, %v220_v5 }
  0x86   :  { %2645 = vst [vmem:[%s3693_s4 + $0x140] sm:$0xff] %v3087_v45  ;;  %2646 = vst [vmem:[%s3693_s4 + $0x148] sm:$0xff] %v3087_v45 }
  0x87   :  { %2647 = vst [vmem:[%s3693_s4 + $0x150] sm:$0xff] %v3087_v45  ;;  %2648 = vst [vmem:[%s3693_s4 + $0x158] sm:$0xff] %v3087_v45 }
  0x88   :  { %2649 = vst [vmem:[%s3693_s4 + $0x160] sm:$0xff] %v3087_v45  ;;  %2650 = vst [vmem:[%s3693_s4 + $0x168] sm:$0xff] %v3087_v45 }
  0x89   :  { %1351 = vmatmul.mubr.bf16.gmra.mrb[36].mxu0 %v2923_v9  ;;  %2651 = vst [vmem:[%s3693_s4 + $0x170] sm:$0xff] %v3087_v45  ;;  %2652 = vst [vmem:[%s3693_s4 + $0x178] sm:$0xff] %v3087_v45  ;;  %v2954_v9 = vcombine.high %v218_v4, %v220_v5 }
  0x8a   :  { %1640 = vmatmul.mubr.bf16.gmra.mrb[36].mxu1 %v2925_v10  ;;  %1358 = vmatprep.mubr.bf16.mxu0 %v2928_v11  ;;  %2653 = vst [vmem:[%s3693_s4 + $0x180] sm:$0xff] %v3087_v45  ;;  %2654 = vst [vmem:[%s3693_s4 + $0x188] sm:$0xff] %v3087_v45  ;;  %v123_v10 = vld [vmem:[%s3692_s0 + $0x110] sm:$0xff]  ;;  %v124_v11 = vld [vmem:[%s3692_s0 + $0x118] sm:$0xff] }
  0x8b   :  { %1647 = vmatprep.mubr.bf16.mxu1 %v2930_v12  ;;  %2655 = vst [vmem:[%s3693_s4 + $0x190] sm:$0xff] %v3087_v45  ;;  %2656 = vst [vmem:[%s3693_s4 + $0x198] sm:$0xff] %v3087_v45  ;;  %v221_v12 = vunpack.c.l.s8.bf16 %v123_v10  ;;  %v223_v13 = vunpack.c.l.s8.bf16 %v124_v11  ;;  %v222_v14 = vunpack.c.h.s8.bf16 %v123_v10  ;;  %v224_v15 = vunpack.c.h.s8.bf16 %v124_v11 }
  0x8c   :  { %2657 = vst [vmem:[%s3693_s4 + $0x1a0] sm:$0xff] %v3087_v45  ;;  %2658 = vst [vmem:[%s3693_s4 + $0x1a8] sm:$0xff] %v3087_v45 }
  0x8d   :  { %2659 = vst [vmem:[%s3693_s4 + $0x1b0] sm:$0xff] %v3087_v45  ;;  %2660 = vst [vmem:[%s3693_s4 + $0x1b8] sm:$0xff] %v3087_v45  ;;  %v2956_v18 = vcombine.high %v221_v12, %v223_v13  ;;  %v2955_v26 = vcombine.low %v221_v12, %v223_v13  ;;  %v2957_v27 = vcombine.low %v222_v14, %v224_v15 }
  0x8e   :  { %2661 = vst [vmem:[%s3693_s4 + $0x1c0] sm:$0xff] %v3087_v45  ;;  %2662 = vst [vmem:[%s3693_s4 + $0x1c8] sm:$0xff] %v3087_v45 }
  0x8f   :  { %2663 = vst [vmem:[%s3693_s4 + $0x1d0] sm:$0xff] %v3087_v45  ;;  %2664 = vst [vmem:[%s3693_s4 + $0x1d8] sm:$0xff] %v3087_v45 }
  0x90   :  { %2665 = vst [vmem:[%s3693_s4 + $0x1e0] sm:$0xff] %v3087_v45  ;;  %2666 = vst [vmem:[%s3693_s4 + $0x1e8] sm:$0xff] %v3087_v45 }
  0x91   :  { %1359 = vmatmul.mubr.bf16.gmra.mrb[40].mxu0 %v2927_v19  ;;  %2667 = vst [vmem:[%s3693_s4 + $0x1f0] sm:$0xff] %v3087_v45  ;;  %2668 = vst [vmem:[%s3693_s4 + $0x1f8] sm:$0xff] %v3087_v45  ;;  %v2958_v19 = vcombine.high %v222_v14, %v224_v15 }
  0x92   :  { %1648 = vmatmul.mubr.bf16.gmra.mrb[40].mxu1 %v2929_v20  ;;  %1366 = vmatprep.mubr.bf16.mxu0 %v2932_v21  ;;  %v125_v20 = vld [vmem:[%s3692_s0 + $0x120] sm:$0xff]  ;;  %v126_v21 = vld [vmem:[%s3692_s0 + $0x128] sm:$0xff] }
  0x93   :  { %1655 = vmatprep.mubr.bf16.mxu1 %v2934_v22  ;;  %v225_v22 = vunpack.c.l.s8.bf16 %v125_v20  ;;  %v227_v23 = vunpack.c.l.s8.bf16 %v126_v21  ;;  %v226_v24 = vunpack.c.h.s8.bf16 %v125_v20  ;;  %v228_v25 = vunpack.c.h.s8.bf16 %v126_v21 }
  0x95   :  { %v2960_v28 = vcombine.high %v225_v22, %v227_v23  ;;  %v2959_v36 = vcombine.low %v225_v22, %v227_v23  ;;  %v2961_v37 = vcombine.low %v226_v24, %v228_v25 }
  0x99   :  { %1367 = vmatmul.mubr.bf16.gmra.mrb[44].mxu0 %v2931_v29  ;;  %v2962_v29 = vcombine.high %v226_v24, %v228_v25 }
  0x9a   :  { %1656 = vmatmul.mubr.bf16.gmra.mrb[44].mxu1 %v2933_v30  ;;  %1374 = vmatprep.mubr.bf16.mxu0 %v2936_v31  ;;  %v127_v30 = vld [vmem:[%s3692_s0 + $0x130] sm:$0xff]  ;;  %v128_v31 = vld [vmem:[%s3692_s0 + $0x138] sm:$0xff] }
  0x9b   :  { %1663 = vmatprep.mubr.bf16.mxu1 %v2938_v32  ;;  %v229_v32 = vunpack.c.l.s8.bf16 %v127_v30  ;;  %v231_v33 = vunpack.c.l.s8.bf16 %v128_v31  ;;  %v230_v34 = vunpack.c.h.s8.bf16 %v127_v30  ;;  %v232_v35 = vunpack.c.h.s8.bf16 %v128_v31 }
  0x9d   :  { %v2964_v38 = vcombine.high %v229_v32, %v231_v33  ;;  %v2963_v46 = vcombine.low %v229_v32, %v231_v33  ;;  %v2965_v47 = vcombine.low %v230_v34, %v232_v35 }
  0xa1   :  { %1375 = vmatmul.mubr.bf16.gmra.mrb[48].mxu0 %v3343_v39  ;;  %v2966_v39 = vcombine.high %v230_v34, %v232_v35 }
  0xa2   :  { %1664 = vmatmul.mubr.bf16.gmra.mrb[48].mxu1 %v3345_v40  ;;  %1382 = vmatprep.mubr.bf16.mxu0 %v3351_v41  ;;  %v129_v40 = vld [vmem:[%s3692_s0 + $0x140] sm:$0xff]  ;;  %v130_v41 = vld [vmem:[%s3692_s0 + $0x148] sm:$0xff] }
  0xa3   :  { %1671 = vmatprep.mubr.bf16.mxu1 %v3357_v42  ;;  %v233_v42 = vunpack.c.l.s8.bf16 %v129_v40  ;;  %v235_v43 = vunpack.c.l.s8.bf16 %v130_v41  ;;  %v234_v44 = vunpack.c.h.s8.bf16 %v129_v40  ;;  %v236_v45 = vunpack.c.h.s8.bf16 %v130_v41 }
  0xa5   :  { %v2968_v48 = vcombine.high %v233_v42, %v235_v43  ;;  %v2970_v49 = vcombine.high %v234_v44, %v236_v45  ;;  %v2967_v56 = vcombine.low %v233_v42, %v235_v43  ;;  %v2969_v57 = vcombine.low %v234_v44, %v236_v45 }
  0xa9   :  { %1383 = vmatmul.mubr.bf16.gmra.mrb[52].mxu0 %v2939_v50  ;;  %v131_v50 = vld [vmem:[%s3692_s0 + $0x150] sm:$0xff] }
  0xaa   :  { %1672 = vmatmul.mubr.bf16.gmra.mrb[52].mxu1 %v2941_v51  ;;  %1390 = vmatprep.mubr.bf16.mxu0 %v2944_v52  ;;  %v132_v51 = vld [vmem:[%s3692_s0 + $0x158] sm:$0xff]  ;;  %v237_v52 = vunpack.c.l.s8.bf16 %v131_v50  ;;  %v238_v54 = vunpack.c.h.s8.bf16 %v131_v50 }
  0xab   :  { %1679 = vmatprep.mubr.bf16.mxu1 %v2946_v53  ;;  %v239_v53 = vunpack.c.l.s8.bf16 %v132_v51  ;;  %v240_v55 = vunpack.c.h.s8.bf16 %v132_v51 }
  0xad   :  { %v2972_v58 = vcombine.high %v237_v52, %v239_v53  ;;  %v2974_v59 = vcombine.high %v238_v54, %v240_v55  ;;  %v2971_v2 = vcombine.low %v237_v52, %v239_v53  ;;  %v2973_v3 = vcombine.low %v238_v54, %v240_v55 }
  0xb1   :  { %1391 = vmatmul.mubr.bf16.gmra.mrb[56].mxu0 %v2943_v60  ;;  %v133_v60 = vld [vmem:[%s3692_s0 + $0x160] sm:$0xff] }
  0xb2   :  { %1680 = vmatmul.mubr.bf16.gmra.mrb[56].mxu1 %v2945_v61  ;;  %1398 = vmatprep.mubr.bf16.mxu0 %v2948_v62  ;;  %v134_v61 = vld [vmem:[%s3692_s0 + $0x168] sm:$0xff]  ;;  %v241_v62 = vunpack.c.l.s8.bf16 %v133_v60  ;;  %v242_v0 = vunpack.c.h.s8.bf16 %v133_v60 }
  0xb3   :  { %1687 = vmatprep.mubr.bf16.mxu1 %v2950_v63  ;;  %v243_v63 = vunpack.c.l.s8.bf16 %v134_v61  ;;  %v244_v1 = vunpack.c.h.s8.bf16 %v134_v61 }
  0xb5   :  { %v2976_v4 = vcombine.high %v241_v62, %v243_v63  ;;  %v2978_v5 = vcombine.high %v242_v0, %v244_v1  ;;  %v2975_v12 = vcombine.low %v241_v62, %v243_v63  ;;  %v2977_v13 = vcombine.low %v242_v0, %v244_v1  ;;  %v3047_v0 = vld [vmem:[%s3695_s3] ss:$0 sm:$0xff] }
  0xb6   :  { %v3049_v1 = vld [vmem:[%s3694_s2] sm:$0xff]  }
  0xb9   :  { %1399 = vmatmul.mubr.bf16.gmra.mrb[60].mxu0 %v2947_v6  ;;  %v135_v6 = vld [vmem:[%s3692_s0 + $0x170] sm:$0xff] }
  0xba   :  { %1688 = vmatmul.mubr.bf16.gmra.mrb[60].mxu1 %v2949_v7  ;;  %1406 = vmatprep.mubr.bf16.mxu0 %v2952_v8  ;;  %v136_v7 = vld [vmem:[%s3692_s0 + $0x178] sm:$0xff]  ;;  %v245_v8 = vunpack.c.l.s8.bf16 %v135_v6  ;;  %v246_v10 = vunpack.c.h.s8.bf16 %v135_v6 }
  0xbb   :  { %1695 = vmatprep.mubr.bf16.mxu1 %v2954_v9  ;;  %v247_v9 = vunpack.c.l.s8.bf16 %v136_v7  ;;  %v248_v11 = vunpack.c.h.s8.bf16 %v136_v7 }
  0xbd   :  { %v2980_v14 = vcombine.high %v245_v8, %v247_v9  ;;  %v2982_v15 = vcombine.high %v246_v10, %v248_v11  ;;  %v2979_v22 = vcombine.low %v245_v8, %v247_v9  ;;  %v2981_v23 = vcombine.low %v246_v10, %v248_v11 }
  0xc1   :  { %1407 = vmatmul.mubr.bf16.gmra.mrb[64].mxu0 %v2951_v16  ;;  %v137_v16 = vld [vmem:[%s3692_s0 + $0x180] sm:$0xff] }
  0xc2   :  { %1696 = vmatmul.mubr.bf16.gmra.mrb[64].mxu1 %v2953_v17  ;;  %1414 = vmatprep.mubr.bf16.mxu0 %v2956_v18  ;;  %v138_v17 = vld [vmem:[%s3692_s0 + $0x188] sm:$0xff]  ;;  %v249_v18 = vunpack.c.l.s8.bf16 %v137_v16  ;;  %v250_v20 = vunpack.c.h.s8.bf16 %v137_v16 }
  0xc3   :  { %1703 = vmatprep.mubr.bf16.mxu1 %v2958_v19  ;;  %v251_v19 = vunpack.c.l.s8.bf16 %v138_v17  ;;  %v252_v21 = vunpack.c.h.s8.bf16 %v138_v17 }
  0xc5   :  { %v2984_v24 = vcombine.high %v249_v18, %v251_v19  ;;  %v2986_v25 = vcombine.high %v250_v20, %v252_v21  ;;  %v2983_v32 = vcombine.low %v249_v18, %v251_v19  ;;  %v2985_v33 = vcombine.low %v250_v20, %v252_v21 }
  0xc6   :  { %v3051_v18 = vunpack.c.h.bf16 %v3049_v1 }
  0xc9   :  { %1415 = vmatmul.mubr.bf16.gmra.mrb[68].mxu0 %v2955_v26  ;;  %v139_v26 = vld [vmem:[%s3692_s0 + $0x190] sm:$0xff] }
  0xca   :  { %1704 = vmatmul.mubr.bf16.gmra.mrb[68].mxu1 %v2957_v27  ;;  %1422 = vmatprep.mubr.bf16.mxu0 %v2960_v28  ;;  %v140_v27 = vld [vmem:[%s3692_s0 + $0x198] sm:$0xff]  ;;  %v253_v28 = vunpack.c.l.s8.bf16 %v139_v26  ;;  %v254_v30 = vunpack.c.h.s8.bf16 %v139_v26 }
  0xcb   :  { %1711 = vmatprep.mubr.bf16.mxu1 %v2962_v29  ;;  %v255_v29 = vunpack.c.l.s8.bf16 %v140_v27  ;;  %v256_v31 = vunpack.c.h.s8.bf16 %v140_v27 }
  0xcd   :  { %v2988_v34 = vcombine.high %v253_v28, %v255_v29  ;;  %v2990_v35 = vcombine.high %v254_v30, %v256_v31  ;;  %v2987_v42 = vcombine.low %v253_v28, %v255_v29  ;;  %v2989_v43 = vcombine.low %v254_v30, %v256_v31 }
  0xd1   :  { %1423 = vmatmul.mubr.bf16.gmra.mrb[72].mxu0 %v2959_v36  ;;  %v141_v36 = vld [vmem:[%s3692_s0 + $0x1a0] sm:$0xff] }
  0xd2   :  { %1712 = vmatmul.mubr.bf16.gmra.mrb[72].mxu1 %v2961_v37  ;;  %1430 = vmatprep.mubr.bf16.mxu0 %v2964_v38  ;;  %v142_v37 = vld [vmem:[%s3692_s0 + $0x1a8] sm:$0xff]  ;;  %v257_v38 = vunpack.c.l.s8.bf16 %v141_v36  ;;  %v258_v40 = vunpack.c.h.s8.bf16 %v141_v36 }
  0xd3   :  { %1719 = vmatprep.mubr.bf16.mxu1 %v2966_v39  ;;  %v259_v39 = vunpack.c.l.s8.bf16 %v142_v37  ;;  %v260_v41 = vunpack.c.h.s8.bf16 %v142_v37 }
  0xd5   :  { %v2992_v44 = vcombine.high %v257_v38, %v259_v39  ;;  %v2994_v45 = vcombine.high %v258_v40, %v260_v41  ;;  %v2991_v52 = vcombine.low %v257_v38, %v259_v39  ;;  %v2993_v53 = vcombine.low %v258_v40, %v260_v41  ;;  %v149_v39 = vld [vmem:[%s3692_s0 + $0x1e0] sm:$0xff]  ;;  %v150_v40 = vld [vmem:[%s3692_s0 + $0x1e8] sm:$0xff] }
  0xd9   :  { %1431 = vmatmul.mubr.bf16.gmra.mrb[76].mxu0 %v2963_v46  ;;  %v143_v46 = vld [vmem:[%s3692_s0 + $0x1b0] sm:$0xff] }
  0xda   :  { %1720 = vmatmul.mubr.bf16.gmra.mrb[76].mxu1 %v2965_v47  ;;  %1438 = vmatprep.mubr.bf16.mxu0 %v2968_v48  ;;  %v144_v47 = vld [vmem:[%s3692_s0 + $0x1b8] sm:$0xff]  ;;  %v261_v48 = vunpack.c.l.s8.bf16 %v143_v46  ;;  %v262_v50 = vunpack.c.h.s8.bf16 %v143_v46 }
  0xdb   :  { %1727 = vmatprep.mubr.bf16.mxu1 %v2970_v49  ;;  %v263_v49 = vunpack.c.l.s8.bf16 %v144_v47  ;;  %v264_v51 = vunpack.c.h.s8.bf16 %v144_v47  ;;  %v273_v47 = vunpack.c.l.s8.bf16 %v149_v39 }
  0xdd   :  { %v2996_v54 = vcombine.high %v261_v48, %v263_v49  ;;  %v2998_v55 = vcombine.high %v262_v50, %v264_v51  ;;  %v2997_v7 = vcombine.low %v262_v50, %v264_v51  ;;  %v276_v50 = vunpack.c.h.s8.bf16 %v150_v40 }
  0xe1   :  { %1439 = vmatmul.mubr.bf16.gmra.mrb[80].mxu0 %v2967_v56  ;;  %v145_v56 = vld [vmem:[%s3692_s0 + $0x1c0] sm:$0xff] }
  0xe2   :  { %1728 = vmatmul.mubr.bf16.gmra.mrb[80].mxu1 %v2969_v57  ;;  %1446 = vmatprep.mubr.bf16.mxu0 %v2972_v58  ;;  %v146_v57 = vld [vmem:[%s3692_s0 + $0x1c8] sm:$0xff]  ;;  %v265_v58 = vunpack.c.l.s8.bf16 %v145_v56  ;;  %v266_v60 = vunpack.c.h.s8.bf16 %v145_v56 }
  0xe3   :  { %1735 = vmatprep.mubr.bf16.mxu1 %v2974_v59  ;;  %v267_v59 = vunpack.c.l.s8.bf16 %v146_v57  ;;  %v268_v61 = vunpack.c.h.s8.bf16 %v146_v57 }
  0xe5   :  { %v3000_v8 = vcombine.high %v265_v58, %v267_v59  ;;  %v3002_v11 = vcombine.high %v266_v60, %v268_v61  ;;  %v2999_v30 = vcombine.low %v265_v58, %v267_v59 }
  0xe9   :  { %1447 = vmatmul.mubr.bf16.gmra.mrb[84].mxu0 %v2971_v2 }
  0xea   :  { %1736 = vmatmul.mubr.bf16.gmra.mrb[84].mxu1 %v2973_v3  ;;  %1454 = vmatprep.mubr.bf16.mxu0 %v2976_v4  ;;  %v2995_v3 = vcombine.low %v261_v48, %v263_v49  ;;  %v275_v48 = vunpack.c.l.s8.bf16 %v150_v40  ;;  %v274_v49 = vunpack.c.h.s8.bf16 %v149_v39 }
  0xeb   :  { %1743 = vmatprep.mubr.bf16.mxu1 %v2978_v5 }
  0xf1   :  { %1455 = vmatmul.mubr.bf16.gmra.mrb[88].mxu0 %v2975_v12  ;;  %v147_v12 = vld [vmem:[%s3692_s0 + $0x1d0] sm:$0xff] }
  0xf2   :  { %1744 = vmatmul.mubr.bf16.gmra.mrb[88].mxu1 %v2977_v13  ;;  %1462 = vmatprep.mubr.bf16.mxu0 %v2980_v14  ;;  %v148_v13 = vld [vmem:[%s3692_s0 + $0x1d8] sm:$0xff]  ;;  %v269_v21 = vunpack.c.l.s8.bf16 %v147_v12 }
  0xf3   :  { %1751 = vmatprep.mubr.bf16.mxu1 %v2982_v15  ;;  %v3050_v15 = vunpack.c.l.bf16 %v3049_v1  ;;  %v3010_v1 = vcombine.high %v274_v49, %v276_v50 }
  0xf9   :  { %1463 = vmatmul.mubr.bf16.gmra.mrb[92].mxu0 %v2979_v22  ;;  %v271_v22 = vunpack.c.l.s8.bf16 %v148_v13 }
  0xfa   :  { %1752 = vmatmul.mubr.bf16.gmra.mrb[92].mxu1 %v2981_v23  ;;  %1470 = vmatprep.mubr.bf16.mxu0 %v2984_v24  ;;  %v270_v23 = vunpack.c.h.s8.bf16 %v147_v12  ;;  %v272_v24 = vunpack.c.h.s8.bf16 %v148_v13 }
  0xfb   :  { %1759 = vmatprep.mubr.bf16.mxu1 %v2986_v25  ;;  %v3003_v56 = vcombine.low %v269_v21, %v271_v22 }
  0xfc   :  { %v3006_v38 = vcombine.high %v270_v23, %v272_v24 }
 0x101   :  { %1471 = vmatmul.mubr.bf16.gmra.mrb[96].mxu0 %v2983_v32 }
 0x102   :  { %1760 = vmatmul.mubr.bf16.gmra.mrb[96].mxu1 %v2985_v33  ;;  %1478 = vmatprep.mubr.bf16.mxu0 %v2988_v34  ;;  %v3001_v34 = vcombine.low %v266_v60, %v268_v61  ;;  %v3005_v61 = vcombine.low %v270_v23, %v272_v24 }
 0x103   :  { %1767 = vmatprep.mubr.bf16.mxu1 %v2990_v35  ;;  %v3004_v35 = vcombine.high %v269_v21, %v271_v22  ;;  %v3009_v22 = vcombine.low %v274_v49, %v276_v50 }
 0x109   :  { %1479 = vmatmul.mubr.bf16.gmra.mrb[100].mxu0 %v2987_v42 }
 0x10a   :  { %1768 = vmatmul.mubr.bf16.gmra.mrb[100].mxu1 %v2989_v43  ;;  %1486 = vmatprep.mubr.bf16.mxu0 %v2992_v44 }
 0x10b   :  { %1775 = vmatprep.mubr.bf16.mxu1 %v2994_v45 }
 0x111   :  { %1487 = vmatmul.mubr.bf16.gmra.mrb[104].mxu0 %v2991_v52 }
 0x112   :  { %1776 = vmatmul.mubr.bf16.gmra.mrb[104].mxu1 %v2993_v53  ;;  %1494 = vmatprep.mubr.bf16.mxu0 %v2996_v54 }
 0x113   :  { %1783 = vmatprep.mubr.bf16.mxu1 %v2998_v55 }
 0x114   :  { %v1280_v62 = vpop.f32.mrb[0].mxu0 }
 0x115   :  { %v1569_v63 = vpop.f32.mrb[0].mxu1  ;;  %v1282_v2 = vpop.f32.mrb[1].mxu0 }
 0x116   :  { %v1570_v4 = vadd.f32 %v1569_v63, %v1280_v62  ;;  %v1571_v5 = vpop.f32.mrb[1].mxu1  ;;  %v1283_v6 = vpop.f32.mrb[2].mxu0  ;;  %v3008_v62 = vcombine.high %v273_v47, %v275_v48  ;;  %v151_v2 = vld [vmem:[%s3692_s0 + $0x1f0] sm:$0xff] }
 0x117   :  { %v1572_v9 = vpop.f32.mrb[2].mxu1  ;;  %v1285_v10 = vpop.f32.mrb[3].mxu0 }
 0x118   :  { %v2026_v14 = vadd.f32 %v3047_v0, %v1570_v4  ;;  %v1573_v16 = vadd.f32 %v1572_v9, %v1283_v6  ;;  %v1574_v17 = vpop.f32.mrb[3].mxu1  ;;  %v277_v9 = vunpack.c.l.s8.bf16 %v151_v2 }
 0x119   :  { %1495 = vmatmul.mubr.bf16.gmra.mrb[108].mxu0 %v2995_v3  ;;  %v152_v3 = vld [vmem:[%s3692_s0 + $0x1f8] sm:$0xff] }
 0x11a   :  { %v2090_v19 = vmax.f32 %v2026_v14, 0.0  ;;  %v2027_v20 = vadd.f32 %v3047_v0, %v1573_v16  ;;  %1784 = vmatmul.mubr.bf16.gmra.mrb[108].mxu1 %v2997_v7  ;;  %1502 = vmatprep.mubr.bf16.mxu0 %v3000_v8  ;;  %v279_v10 = vunpack.c.l.s8.bf16 %v152_v3  ;;  %v280_v12 = vunpack.c.h.s8.bf16 %v152_v3 }
 0x11b   :  { %1791 = vmatprep.mubr.bf16.mxu1 %v3002_v11  ;;  %v278_v11 = vunpack.c.h.s8.bf16 %v151_v2 }
 0x11c   :  { %v2282_v25 = vadd.f32 %v3050_v15, %v2090_v19  ;;  %v2091_v26 = vmax.f32 %v2027_v20, 0.0  ;;  %v1288_v27 = vpop.f32.mrb[4].mxu0  ;;  %v3012_v23 = vcombine.high %v277_v9, %v279_v10 }
 0x11d   :  { %v1577_v28 = vpop.f32.mrb[4].mxu1  ;;  %v1290_v29 = vpop.f32.mrb[5].mxu0 }
 0x11e   :  { %2605 = vst [vmem:[%s3693_s4] sm:$0xff] %v2282_v25  ;;  %v2283_v31 = vadd.f32 %v3051_v18, %v2091_v26  ;;  %v1579_v32 = vpop.f32.mrb[5].mxu1  ;;  %v1291_v33 = vpop.f32.mrb[6].mxu0  ;;  %v2739_v41 = vmul.f32 %v2282_v25, %v2282_v25  ;;  %v3007_v18 = vcombine.low %v273_v47, %v275_v48  ;;  %v3014_v26 = vcombine.high %v278_v11, %v280_v12 }
 0x11f   :  { %v1580_v36 = vpop.f32.mrb[6].mxu1  ;;  %v1293_v37 = vpop.f32.mrb[7].mxu0 }
 0x120   :  { %2606 = vst [vmem:[%s3693_s4 + $0x8] sm:$0xff] %v2283_v31  ;;  %v2669_v42 = vadd.f32 %v2283_v31, %v2282_v25  ;;  %v2740_v43 = vmul.f32 %v2283_v31, %v2283_v31  ;;  %v1582_v44 = vpop.f32.mrb[7].mxu1  ;;  %v3011_v31 = vcombine.low %v277_v9, %v279_v10 }
 0x121   :  { %1503 = vmatmul.mubr.bf16.gmra.mrb[112].mxu0 %v2999_v30 }
 0x122   :  { %v2732_v45 = vrot.slane %v2669_v42, 4  ;;  %v2803_v46 = vadd.f32 %v2740_v43, %v2739_v41  ;;  %1792 = vmatmul.mubr.bf16.gmra.mrb[112].mxu1 %v3001_v34  ;;  %1510 = vmatprep.mubr.bf16.mxu0 %v3004_v35  ;;  %v3013_v34 = vcombine.low %v278_v11, %v280_v12 }
 0x123   :  { %1799 = vmatprep.mubr.bf16.mxu1 %v3006_v38 }
 0x124   :  { %v2733_v51 = vadd.f32 %v2732_v45, %v2669_v42  ;;  %v2866_v52 = vrot.slane %v2803_v46, 4  ;;  %v1296_v53 = vpop.f32.mrb[8].mxu0 }
 0x125   :  { %v1585_v54 = vpop.f32.mrb[8].mxu1  ;;  %v1298_v55 = vpop.f32.mrb[9].mxu0 }
 0x126   :  { %v2734_v57 = vrot.slane %v2733_v51, 2  ;;  %v2867_v58 = vadd.f32 %v2866_v52, %v2803_v46  ;;  %v1587_v59 = vpop.f32.mrb[9].mxu1  ;;  %v1299_v60 = vpop.f32.mrb[10].mxu0 }
 0x127   :  { %v1588_v63 = vpop.f32.mrb[10].mxu1  ;;  %v1301_v0 = vpop.f32.mrb[11].mxu0 }
 0x128   :  { %v2735_v4 = vadd.f32 %v2734_v57, %v2733_v51  ;;  %v2868_v5 = vrot.slane %v2867_v58, 2  ;;  %v1590_v6 = vpop.f32.mrb[11].mxu1 }
 0x129   :  { %1511 = vmatmul.mubr.bf16.gmra.mrb[116].mxu0 %v3003_v56 }
 0x12a   :  { %v2736_v7 = vrot.slane %v2735_v4, 1  ;;  %v2869_v8 = vadd.f32 %v2868_v5, %v2867_v58  ;;  %1800 = vmatmul.mubr.bf16.gmra.mrb[116].mxu1 %v3005_v61  ;;  %1518 = vmatprep.mubr.bf16.mxu0 %v3008_v62 }
 0x12b   :  { %1807 = vmatprep.mubr.bf16.mxu1 %v3010_v1 }
 0x12c   :  { %v2737_v13 = vadd.f32 %v2736_v7, %v2735_v4  ;;  %v2870_v14 = vrot.slane %v2869_v8, 1  ;;  %v1304_v15 = vpop.f32.mrb[12].mxu0 }
 0x12d   :  { %v1593_v16 = vpop.f32.mrb[12].mxu1  ;;  %v1306_v17 = vpop.f32.mrb[13].mxu0 }
 0x12e   :  { %2738 = vst [vmem:[%s3696_s5] sm:$0x1] %v2737_v13  ;;  %v2871_v19 = vadd.f32 %v2870_v14, %v2869_v8  ;;  %v1595_v20 = vpop.f32.mrb[13].mxu1  ;;  %v1307_v21 = vpop.f32.mrb[14].mxu0 }
 0x12f   :  { %v1596_v24 = vpop.f32.mrb[14].mxu1  ;;  %v1309_v25 = vpop.f32.mrb[15].mxu0 }
 0x130   :  { %2872 = vst [vmem:[%s3697_s6] sm:$0x1] %v2871_v19  ;;  %v1598_v27 = vpop.f32.mrb[15].mxu1 }
 0x131   :  { %1519 = vmatmul.mubr.bf16.gmra.mrb[120].mxu0 %v3007_v18 }
 0x132   :  { %1808 = vmatmul.mubr.bf16.gmra.mrb[120].mxu1 %v3009_v22  ;;  %1526 = vmatprep.mubr.bf16.mxu0 %v3012_v23 }
 0x133   :  { %1815 = vmatprep.mubr.bf16.mxu1 %v3014_v26 }
 0x134   :  { %v1312_v28 = vpop.f32.mrb[16].mxu0 }
 0x135   :  { %v1601_v29 = vpop.f32.mrb[16].mxu1  ;;  %v1314_v30 = vpop.f32.mrb[17].mxu0 }
 0x136   :  { %v1603_v32 = vpop.f32.mrb[17].mxu1  ;;  %v1315_v33 = vpop.f32.mrb[18].mxu0 }
 0x137   :  { %v1604_v35 = vpop.f32.mrb[18].mxu1  ;;  %v1317_v36 = vpop.f32.mrb[19].mxu0 }
 0x138   :  { %v1606_v37 = vpop.f32.mrb[19].mxu1 }
 0x139   :  { %1527 = vmatmul.mubr.bf16.gmra.mrb[124].mxu0 %v3011_v31 }
 0x13a   :  { %1816 = vmatmul.mubr.bf16.gmra.mrb[124].mxu1 %v3013_v34 }
 0x13c   :  { %v1320_v38 = vpop.f32.mrb[20].mxu0 }
 0x13d   :  { %v1609_v39 = vpop.f32.mrb[20].mxu1  ;;  %v1322_v40 = vpop.f32.mrb[21].mxu0 }
 0x13e   :  { %v1611_v41 = vpop.f32.mrb[21].mxu1  ;;  %v1323_v42 = vpop.f32.mrb[22].mxu0 }
 0x13f   :  { %v1612_v43 = vpop.f32.mrb[22].mxu1  ;;  %v1325_v44 = vpop.f32.mrb[23].mxu0 }
 0x140   :  { %v1614_v45 = vpop.f32.mrb[23].mxu1 }
 0x144   :  { %v1328_v46 = vpop.f32.mrb[24].mxu0 }
 0x145   :  { %v1617_v47 = vpop.f32.mrb[24].mxu1  ;;  %v1330_v48 = vpop.f32.mrb[25].mxu0 }
 0x146   :  { %v1619_v49 = vpop.f32.mrb[25].mxu1  ;;  %v1331_v50 = vpop.f32.mrb[26].mxu0 }
 0x147   :  { %v1620_v51 = vpop.f32.mrb[26].mxu1  ;;  %v1333_v52 = vpop.f32.mrb[27].mxu0 }
 0x148   :  { %v1622_v53 = vpop.f32.mrb[27].mxu1 }
 0x14c   :  { %v1336_v54 = vpop.f32.mrb[28].mxu0 }
 0x14d   :  { %v1625_v55 = vpop.f32.mrb[28].mxu1  ;;  %v1338_v56 = vpop.f32.mrb[29].mxu0 }
 0x14e   :  { %v1627_v57 = vpop.f32.mrb[29].mxu1  ;;  %v1339_v58 = vpop.f32.mrb[30].mxu0 }
 0x14f   :  { %v1628_v59 = vpop.f32.mrb[30].mxu1  ;;  %v1341_v60 = vpop.f32.mrb[31].mxu0 }
 0x150   :  { %v1630_v61 = vpop.f32.mrb[31].mxu1 }
 0x154   :  { %v1344_v62 = vpop.f32.mrb[32].mxu0 }
 0x155   :  { %v1633_v63 = vpop.f32.mrb[32].mxu1  ;;  %v1346_v0 = vpop.f32.mrb[33].mxu0 }
 0x156   :  { %v1635_v1 = vpop.f32.mrb[33].mxu1  ;;  %v1347_v2 = vpop.f32.mrb[34].mxu0 }
 0x157   :  { %v1636_v3 = vpop.f32.mrb[34].mxu1  ;;  %v1349_v4 = vpop.f32.mrb[35].mxu0 }
 0x158   :  { %v1638_v5 = vpop.f32.mrb[35].mxu1 }
 0x15c   :  { %v1352_v6 = vpop.f32.mrb[36].mxu0 }
 0x15d   :  { %v1641_v7 = vpop.f32.mrb[36].mxu1  ;;  %v1354_v8 = vpop.f32.mrb[37].mxu0 }
 0x15e   :  { %v1643_v9 = vpop.f32.mrb[37].mxu1  ;;  %v1355_v10 = vpop.f32.mrb[38].mxu0 }
 0x15f   :  { %v1644_v11 = vpop.f32.mrb[38].mxu1  ;;  %v1357_v12 = vpop.f32.mrb[39].mxu0 }
 0x160   :  { %v1646_v13 = vpop.f32.mrb[39].mxu1 }
 0x164   :  { %v1360_v14 = vpop.f32.mrb[40].mxu0 }
 0x165   :  { %v1649_v15 = vpop.f32.mrb[40].mxu1  ;;  %v1362_v16 = vpop.f32.mrb[41].mxu0 }
 0x166   :  { %v1651_v17 = vpop.f32.mrb[41].mxu1  ;;  %v1363_v18 = vpop.f32.mrb[42].mxu0 }
 0x167   :  { %v1652_v19 = vpop.f32.mrb[42].mxu1  ;;  %v1365_v20 = vpop.f32.mrb[43].mxu0 }
 0x168   :  { %v1654_v21 = vpop.f32.mrb[43].mxu1 }
 0x16c   :  { %v1368_v22 = vpop.f32.mrb[44].mxu0 }
 0x16d   :  { %v1657_v23 = vpop.f32.mrb[44].mxu1  ;;  %v1370_v24 = vpop.f32.mrb[45].mxu0 }
 0x16e   :  { %v1659_v25 = vpop.f32.mrb[45].mxu1  ;;  %v1371_v26 = vpop.f32.mrb[46].mxu0 }
 0x16f   :  { %v1660_v27 = vpop.f32.mrb[46].mxu1  ;;  %v1373_v28 = vpop.f32.mrb[47].mxu0 }
 0x170   :  { %v1662_v29 = vpop.f32.mrb[47].mxu1 }
 0x174   :  { %v1376_v30 = vpop.f32.mrb[48].mxu0 }
 0x175   :  { %v1665_v31 = vpop.f32.mrb[48].mxu1  ;;  %v1378_v32 = vpop.f32.mrb[49].mxu0 }
 0x176   :  { %v1667_v33 = vpop.f32.mrb[49].mxu1  ;;  %v1379_v34 = vpop.f32.mrb[50].mxu0 }
 0x177   :  { %v1668_v35 = vpop.f32.mrb[50].mxu1  ;;  %v1381_v36 = vpop.f32.mrb[51].mxu0 }
 0x178   :  { %v1670_v37 = vpop.f32.mrb[51].mxu1 }
 0x17c   :  { %v1384_v38 = vpop.f32.mrb[52].mxu0 }
 0x17d   :  { %v1673_v39 = vpop.f32.mrb[52].mxu1  ;;  %v1386_v40 = vpop.f32.mrb[53].mxu0 }
 0x17e   :  { %v1675_v41 = vpop.f32.mrb[53].mxu1  ;;  %v1387_v42 = vpop.f32.mrb[54].mxu0 }
 0x17f   :  { %v1676_v43 = vpop.f32.mrb[54].mxu1  ;;  %v1389_v44 = vpop.f32.mrb[55].mxu0 }
 0x180   :  { %v1678_v45 = vpop.f32.mrb[55].mxu1 }
 0x184   :  { %v1392_v46 = vpop.f32.mrb[56].mxu0 }
 0x185   :  { %v1681_v47 = vpop.f32.mrb[56].mxu1  ;;  %v1394_v48 = vpop.f32.mrb[57].mxu0 }
 0x186   :  { %v1683_v49 = vpop.f32.mrb[57].mxu1  ;;  %v1395_v50 = vpop.f32.mrb[58].mxu0 }
 0x187   :  { %v1684_v51 = vpop.f32.mrb[58].mxu1  ;;  %v1397_v52 = vpop.f32.mrb[59].mxu0 }
 0x188   :  { %v1686_v53 = vpop.f32.mrb[59].mxu1 }
 0x18c   :  { %v1400_v54 = vpop.f32.mrb[60].mxu0 }
 0x18d   :  { %v1689_v55 = vpop.f32.mrb[60].mxu1  ;;  %v1402_v56 = vpop.f32.mrb[61].mxu0 }
 0x18e   :  { %v1691_v57 = vpop.f32.mrb[61].mxu1  ;;  %v1403_v58 = vpop.f32.mrb[62].mxu0 }
 0x18f   :  { %v1692_v59 = vpop.f32.mrb[62].mxu1  ;;  %v1405_v60 = vpop.f32.mrb[63].mxu0 }
 0x190   :  { %v1694_v61 = vpop.f32.mrb[63].mxu1 }
 0x194   :  { %v1408_v62 = vpop.f32.mrb[64].mxu0 }
 0x195   :  { %v1697_v63 = vpop.f32.mrb[64].mxu1  ;;  %v1410_v0 = vpop.f32.mrb[65].mxu0 }
 0x196   :  { %v1699_v1 = vpop.f32.mrb[65].mxu1  ;;  %v1411_v2 = vpop.f32.mrb[66].mxu0 }
 0x197   :  { %v1700_v3 = vpop.f32.mrb[66].mxu1  ;;  %v1413_v4 = vpop.f32.mrb[67].mxu0 }
 0x198   :  { %v1702_v5 = vpop.f32.mrb[67].mxu1 }
 0x19c   :  { %v1416_v6 = vpop.f32.mrb[68].mxu0 }
 0x19d   :  { %v1705_v7 = vpop.f32.mrb[68].mxu1  ;;  %v1418_v8 = vpop.f32.mrb[69].mxu0 }
 0x19e   :  { %v1707_v9 = vpop.f32.mrb[69].mxu1  ;;  %v1419_v10 = vpop.f32.mrb[70].mxu0 }
 0x19f   :  { %v1708_v11 = vpop.f32.mrb[70].mxu1  ;;  %v1421_v12 = vpop.f32.mrb[71].mxu0 }
 0x1a0   :  { %v1710_v13 = vpop.f32.mrb[71].mxu1 }
 0x1a4   :  { %v1424_v14 = vpop.f32.mrb[72].mxu0 }
 0x1a5   :  { %v1713_v15 = vpop.f32.mrb[72].mxu1  ;;  %v1426_v16 = vpop.f32.mrb[73].mxu0 }
 0x1a6   :  { %v1715_v17 = vpop.f32.mrb[73].mxu1  ;;  %v1427_v18 = vpop.f32.mrb[74].mxu0 }
 0x1a7   :  { %v1716_v19 = vpop.f32.mrb[74].mxu1  ;;  %v1429_v20 = vpop.f32.mrb[75].mxu0 }
 0x1a8   :  { %v1718_v21 = vpop.f32.mrb[75].mxu1 }
 0x1ac   :  { %v1432_v22 = vpop.f32.mrb[76].mxu0 }
 0x1ad   :  { %v1721_v23 = vpop.f32.mrb[76].mxu1  ;;  %v1434_v24 = vpop.f32.mrb[77].mxu0 }
 0x1ae   :  { %v1723_v25 = vpop.f32.mrb[77].mxu1  ;;  %v1435_v26 = vpop.f32.mrb[78].mxu0 }
 0x1af   :  { %v1724_v27 = vpop.f32.mrb[78].mxu1  ;;  %v1437_v28 = vpop.f32.mrb[79].mxu0 }
 0x1b0   :  { %v1726_v29 = vpop.f32.mrb[79].mxu1 }
 0x1b4   :  { %v1440_v30 = vpop.f32.mrb[80].mxu0 }
 0x1b5   :  { %v1729_v31 = vpop.f32.mrb[80].mxu1  ;;  %v1442_v32 = vpop.f32.mrb[81].mxu0 }
 0x1b6   :  { %v1731_v33 = vpop.f32.mrb[81].mxu1  ;;  %v1443_v34 = vpop.f32.mrb[82].mxu0 }
 0x1b7   :  { %v1732_v35 = vpop.f32.mrb[82].mxu1  ;;  %v1445_v36 = vpop.f32.mrb[83].mxu0 }
 0x1b8   :  { %v1734_v37 = vpop.f32.mrb[83].mxu1 }
 0x1bc   :  { %v1448_v38 = vpop.f32.mrb[84].mxu0 }
 0x1bd   :  { %v1737_v39 = vpop.f32.mrb[84].mxu1  ;;  %v1450_v40 = vpop.f32.mrb[85].mxu0 }
 0x1be   :  { %v1739_v41 = vpop.f32.mrb[85].mxu1  ;;  %v1451_v42 = vpop.f32.mrb[86].mxu0 }
 0x1bf   :  { %v1740_v43 = vpop.f32.mrb[86].mxu1  ;;  %v1453_v44 = vpop.f32.mrb[87].mxu0 }
 0x1c0   :  { %v1742_v45 = vpop.f32.mrb[87].mxu1 }
 0x1c4   :  { %v1456_v46 = vpop.f32.mrb[88].mxu0 }
 0x1c5   :  { %v1745_v47 = vpop.f32.mrb[88].mxu1  ;;  %v1458_v48 = vpop.f32.mrb[89].mxu0 }
 0x1c6   :  { %v1747_v49 = vpop.f32.mrb[89].mxu1  ;;  %v1459_v50 = vpop.f32.mrb[90].mxu0 }
 0x1c7   :  { %v1748_v51 = vpop.f32.mrb[90].mxu1  ;;  %v1461_v52 = vpop.f32.mrb[91].mxu0 }
 0x1c8   :  { %v1750_v53 = vpop.f32.mrb[91].mxu1 }
 0x1cc   :  { %v1464_v54 = vpop.f32.mrb[92].mxu0 }
 0x1cd   :  { %v1753_v55 = vpop.f32.mrb[92].mxu1  ;;  %v1466_v56 = vpop.f32.mrb[93].mxu0 }
 0x1ce   :  { %v1755_v57 = vpop.f32.mrb[93].mxu1  ;;  %v1467_v58 = vpop.f32.mrb[94].mxu0 }
 0x1cf   :  { %v1756_v59 = vpop.f32.mrb[94].mxu1  ;;  %v1469_v60 = vpop.f32.mrb[95].mxu0 }
 0x1d0   :  { %v1758_v61 = vpop.f32.mrb[95].mxu1 }
 0x1d4   :  { %v1472_v62 = vpop.f32.mrb[96].mxu0 }
 0x1d5   :  { %v1761_v63 = vpop.f32.mrb[96].mxu1  ;;  %v1474_v0 = vpop.f32.mrb[97].mxu0 }
 0x1d6   :  { %v1763_v1 = vpop.f32.mrb[97].mxu1  ;;  %v1475_v2 = vpop.f32.mrb[98].mxu0 }
 0x1d7   :  { %v1764_v3 = vpop.f32.mrb[98].mxu1  ;;  %v1477_v4 = vpop.f32.mrb[99].mxu0 }
 0x1d8   :  { %v1766_v5 = vpop.f32.mrb[99].mxu1 }
 0x1dc   :  { %v1480_v6 = vpop.f32.mrb[100].mxu0 }
 0x1dd   :  { %v1769_v7 = vpop.f32.mrb[100].mxu1  ;;  %v1482_v8 = vpop.f32.mrb[101].mxu0 }
 0x1de   :  { %v1771_v9 = vpop.f32.mrb[101].mxu1  ;;  %v1483_v10 = vpop.f32.mrb[102].mxu0 }
 0x1df   :  { %v1772_v11 = vpop.f32.mrb[102].mxu1  ;;  %v1485_v12 = vpop.f32.mrb[103].mxu0 }
 0x1e0   :  { %v1774_v13 = vpop.f32.mrb[103].mxu1 }
 0x1e4   :  { %v1488_v14 = vpop.f32.mrb[104].mxu0 }
 0x1e5   :  { %v1777_v15 = vpop.f32.mrb[104].mxu1  ;;  %v1490_v16 = vpop.f32.mrb[105].mxu0 }
 0x1e6   :  { %v1779_v17 = vpop.f32.mrb[105].mxu1  ;;  %v1491_v18 = vpop.f32.mrb[106].mxu0 }
 0x1e7   :  { %v1780_v19 = vpop.f32.mrb[106].mxu1  ;;  %v1493_v20 = vpop.f32.mrb[107].mxu0 }
 0x1e8   :  { %v1782_v21 = vpop.f32.mrb[107].mxu1 }
 0x1ec   :  { %v1496_v22 = vpop.f32.mrb[108].mxu0 }
 0x1ed   :  { %v1785_v23 = vpop.f32.mrb[108].mxu1  ;;  %v1498_v24 = vpop.f32.mrb[109].mxu0 }
 0x1ee   :  { %v1787_v25 = vpop.f32.mrb[109].mxu1  ;;  %v1499_v26 = vpop.f32.mrb[110].mxu0 }
 0x1ef   :  { %v1788_v27 = vpop.f32.mrb[110].mxu1  ;;  %v1501_v28 = vpop.f32.mrb[111].mxu0 }
 0x1f0   :  { %v1790_v29 = vpop.f32.mrb[111].mxu1 }
 0x1f4   :  { %v1504_v30 = vpop.f32.mrb[112].mxu0 }
 0x1f5   :  { %v1793_v31 = vpop.f32.mrb[112].mxu1  ;;  %v1506_v32 = vpop.f32.mrb[113].mxu0 }
 0x1f6   :  { %v1795_v33 = vpop.f32.mrb[113].mxu1  ;;  %v1507_v34 = vpop.f32.mrb[114].mxu0 }
 0x1f7   :  { %v1796_v35 = vpop.f32.mrb[114].mxu1  ;;  %v1509_v36 = vpop.f32.mrb[115].mxu0 }
 0x1f8   :  { %v1798_v37 = vpop.f32.mrb[115].mxu1 }
 0x1fc   :  { %v1512_v38 = vpop.f32.mrb[116].mxu0 }
 0x1fd   :  { %v1801_v39 = vpop.f32.mrb[116].mxu1  ;;  %v1514_v40 = vpop.f32.mrb[117].mxu0 }
 0x1fe   :  { %v1803_v41 = vpop.f32.mrb[117].mxu1  ;;  %v1515_v42 = vpop.f32.mrb[118].mxu0 }
 0x1ff   :  { %v1804_v43 = vpop.f32.mrb[118].mxu1  ;;  %v1517_v44 = vpop.f32.mrb[119].mxu0 }
 0x200   :  { %v1806_v45 = vpop.f32.mrb[119].mxu1 }
 0x204   :  { %v1520_v46 = vpop.f32.mrb[120].mxu0 }
 0x205   :  { %v1809_v47 = vpop.f32.mrb[120].mxu1  ;;  %v1522_v48 = vpop.f32.mrb[121].mxu0 }
 0x206   :  { %v1811_v49 = vpop.f32.mrb[121].mxu1  ;;  %v1523_v50 = vpop.f32.mrb[122].mxu0 }
 0x207   :  { %v1812_v51 = vpop.f32.mrb[122].mxu1  ;;  %v1525_v52 = vpop.f32.mrb[123].mxu0 }
 0x208   :  { %v1814_v53 = vpop.f32.mrb[123].mxu1 }
 0x20c   :  { %v1528_v54 = vpop.f32.mrb[124].mxu0 }
 0x20d   :  { %v1817_v55 = vpop.f32.mrb[124].mxu1  ;;  %v1530_v56 = vpop.f32.mrb[125].mxu0 }
 0x20e   :  { %v1819_v57 = vpop.f32.mrb[125].mxu1  ;;  %v1531_v58 = vpop.f32.mrb[126].mxu0 }
 0x20f   :  { %v1820_v59 = vpop.f32.mrb[126].mxu1  ;;  %v1533_v60 = vpop.f32.mrb[127].mxu0 }
 0x210   :  { %v1822_v61 = vpop.f32.mrb[127].mxu1 }

</bundles_post_ra>
